<compile_context>
chip_gen: v5e
topology: v5e:2x2
jax: 0.10.0
libtpu: 0.0.40
codegen_flags: <defaults>
</compile_context>

<pallas_src>
import jax
import jax.numpy as jnp
from jax import lax
from jax.experimental import pallas as pl
from jax.experimental.pallas import tpu as pltpu

# ---- model hyper-parameters (from the PyTorch script) ----------------------
N_STATES = 6        # env.observation_space.shape[0] for HIVPatient
N_ACTIONS = 4       # env.action_space.n for HIVPatient
N_NEURONS = 256
DEPTH = 10          # number of hidden->hidden layers

# ---- padded sizes / tiling --------------------------------------------------
LANE = 128
N_STATES_PAD = LANE            # 6  -> 128 (zero-padded input features / W_in rows)
N_ACTIONS_PAD = LANE           # 4  -> 128 (zero-padded output columns)
SUB = 16                       # bf16 sublane packing: batch tiles are multiples of 16
TB_MAX = 512                   # max batch rows per grid step
MIN_SPLIT = 128                # only split across >=2 tiles if each gets >= this many rows


def _cdiv(a, b):
    return (a + b - 1) // b


def _round_up(a, m):
    return _cdiv(a, m) * m


def _pick_tiling(B):
    """Return (tile_rows, n_tiles). Static Python ints (B is static under jit)."""
    b = _round_up(max(B, 1), SUB)
    if b < 2 * MIN_SPLIT:
        # act()-style / small batch: one small tile, minimal padded DMA & matmul
        return b, 1
    # training-sized batch: big tiles, and always >= 2 so both v7x cores engage
    n_tiles = max(2, _cdiv(b, TB_MAX))
    tb = _round_up(_cdiv(b, n_tiles), SUB)
    n_tiles = _cdiv(b, tb)
    return tb, n_tiles


def dqn_kernel(x_ref, w_in_ref, b_in_ref, w_hid_ref, b_hid_ref,
               w_out_ref, b_out_ref, o_ref):
    # layer 0: (TB,128) @ (128,256); x already bf16, f32 accumulate
    h = jnp.dot(x_ref[...], w_in_ref[...], preferred_element_type=jnp.float32)
    h = jnp.maximum(h + b_in_ref[...], 0.0).astype(jnp.bfloat16)

    # 10 hidden layers, fully unrolled (static indices -> zero-cost ref views,
    # LLO scheduler can overlap weight loads / MXU pushes across layers)
    for i in range(DEPTH):
        hh = jnp.dot(h, w_hid_ref[i], preferred_element_type=jnp.float32)
        h = jnp.maximum(hh + b_hid_ref[i], 0.0).astype(jnp.bfloat16)

    # output layer (no activation), lane-dense padded to 128 columns, f32 store
    out = jnp.dot(h, w_out_ref[...], preferred_element_type=jnp.float32)
    o_ref[...] = out + b_out_ref[...]


def prepare_params(params):
    """One-time weight prep: lane-pad and cast matmul weights to bf16.

    Do this ONCE (e.g. after each target-network sync), not per forward call.
    """
    w_in, b_in, w_hid, b_hid, w_out, b_out = params

    w_in_p = jnp.zeros((N_STATES_PAD, N_NEURONS), jnp.bfloat16)
    w_in_p = w_in_p.at[:N_STATES, :].set(w_in.astype(jnp.bfloat16))
    b_in_p = b_in.reshape(1, N_NEURONS).astype(jnp.float32)

    w_hid_p = w_hid.astype(jnp.bfloat16)                        # (DEPTH,256,256)
    b_hid_p = b_hid.reshape(DEPTH, 1, N_NEURONS).astype(jnp.float32)

    w_out_p = jnp.zeros((N_NEURONS, N_ACTIONS_PAD), jnp.bfloat16)
    w_out_p = w_out_p.at[:, :N_ACTIONS].set(w_out.astype(jnp.bfloat16))
    b_out_p = jnp.zeros((1, N_ACTIONS_PAD), jnp.float32)
    b_out_p = b_out_p.at[:, :N_ACTIONS].set(b_out.astype(jnp.float32))

    return (w_in_p, b_in_p, w_hid_p, b_hid_p, w_out_p, b_out_p)


def dqn_forward(x, prepared):
    """x: (B, N_STATES) float32.  prepared = prepare_params(params).
    Returns (B, N_ACTIONS) float32."""
    w_in_p, b_in_p, w_hid_p, b_hid_p, w_out_p, b_out_p = prepared
    B = x.shape[0]
    tb, n_tiles = _pick_tiling(B)
    B_pad = tb * n_tiles

    # x is padded into a bf16 buffer (halves x DMA; zeros are harmless: W_in
    # rows >= N_STATES are 0, padded batch rows are sliced off below)
    x_p = jnp.zeros((B_pad, N_STATES_PAD), jnp.bfloat16)
    x_p = x_p.at[:B, :N_STATES].set(x.astype(jnp.bfloat16))

    const2 = lambda i: (0, 0)
    const3 = lambda i: (0, 0, 0)

    out = pl.pallas_call(
        dqn_kernel,
        out_shape=jax.ShapeDtypeStruct((B_pad, N_ACTIONS_PAD), jnp.float32),
        grid=(n_tiles,),
        in_specs=[
            pl.BlockSpec((tb, N_STATES_PAD), lambda i: (i, 0)),          # x (bf16)
            pl.BlockSpec((N_STATES_PAD, N_NEURONS), const2),             # w_in
            pl.BlockSpec((1, N_NEURONS), const2),                        # b_in
            pl.BlockSpec((DEPTH, N_NEURONS, N_NEURONS), const3),         # w_hid
            pl.BlockSpec((DEPTH, 1, N_NEURONS), const3),                 # b_hid
            pl.BlockSpec((N_NEURONS, N_ACTIONS_PAD), const2),            # w_out
            pl.BlockSpec((1, N_ACTIONS_PAD), const2),                    # b_out
        ],
        out_specs=pl.BlockSpec((tb, N_ACTIONS_PAD), lambda i: (i, 0)),
        compiler_params=pltpu.CompilerParams(
            dimension_semantics=("parallel",),
            vmem_limit_bytes=32 * 1024 * 1024,
        ),
    )(x_p, w_in_p, b_in_p, w_hid_p, b_hid_p, w_out_p, b_out_p)

    return out[:B, :N_ACTIONS]


def init_params(key):
    """Deterministic init mimicking PyTorch nn.Linear default (U(-1/sqrt(fan_in), +))."""
    ks = jax.random.split(key, 6)

    def uni(k, shape, fan_in):
        bound = 1.0 / jnp.sqrt(jnp.float32(fan_in))
        return jax.random.uniform(k, shape, jnp.float32, -bound, bound)

    w_in = uni(ks[0], (N_STATES, N_NEURONS), N_STATES)
    b_in = uni(ks[1], (N_NEURONS,), N_STATES)
    w_hid = uni(ks[2], (DEPTH, N_NEURONS, N_NEURONS), N_NEURONS)
    b_hid = uni(ks[3], (DEPTH, N_NEURONS), N_NEURONS)
    w_out = uni(ks[4], (N_NEURONS, N_ACTIONS), N_NEURONS)
    b_out = uni(ks[5], (N_ACTIONS,), N_NEURONS)
    return (w_in, b_in, w_hid, b_hid, w_out, b_out)


def dqn_reference(x, params):
    """Pure-JAX reference with the same mixed precision as the kernel
    (bf16 matmul operands / activations, f32 accumulation & bias)."""
    w_in, b_in, w_hid, b_hid, w_out, b_out = params
    h = jnp.dot(x.astype(jnp.bfloat16), w_in.astype(jnp.bfloat16),
                preferred_element_type=jnp.float32) + b_in
    h = jnp.maximum(h, 0.0).astype(jnp.bfloat16)
    for i in range(DEPTH):
        h = jnp.dot(h, w_hid[i].astype(jnp.bfloat16),
                    preferred_element_type=jnp.float32) + b_hid[i]
        h = jnp.maximum(h, 0.0).astype(jnp.bfloat16)
    return jnp.dot(h, w_out.astype(jnp.bfloat16),
                   preferred_element_type=jnp.float32) + b_out


if __name__ == "__main__":
    key = jax.random.PRNGKey(0)
    k_p, k_x1, k_x2 = jax.random.split(key, 3)
    params = init_params(k_p)
    prepared = prepare_params(params)          # one-time prep, outside forward

    fwd = jax.jit(dqn_forward)

    # small act()-style batch (single small tile path)
    B = 2
    x = jax.random.normal(k_x1, (B, N_STATES), jnp.float32)
    out = jax.block_until_ready(fwd(x, prepared))
    ref = dqn_reference(x, params)
    assert out.shape == (B, N_ACTIONS)
    assert jnp.allclose(out, ref, atol=2e-3, rtol=2e-3)

    # training-sized batch (exercises the >=2-tile / resident-weight path)
    B2 = 300
    x2 = jax.random.normal(k_x2, (B2, N_STATES), jnp.float32)
    out2 = jax.block_until_ready(fwd(x2, prepared))
    ref2 = dqn_reference(x2, params)
    assert out2.shape == (B2, N_ACTIONS)
    assert jnp.allclose(out2, ref2, atol=2e-3, rtol=2e-3)

    print("KERNEL_OK")
</pallas_src>

<mosaic_0001>
module attributes {stable_mosaic.version = 11 : i64} {
  func.func @dqn_kernel(%arg0: i32, %arg1: memref<16x128xbf16, #tpu.memory_space<vmem>>, %arg2: memref<128x256xbf16, #tpu.memory_space<vmem>>, %arg3: memref<1x256xf32, #tpu.memory_space<vmem>>, %arg4: memref<10x256x256xbf16, #tpu.memory_space<vmem>>, %arg5: memref<10x1x256xf32, #tpu.memory_space<vmem>>, %arg6: memref<256x128xbf16, #tpu.memory_space<vmem>>, %arg7: memref<1x128xf32, #tpu.memory_space<vmem>>, %arg8: memref<16x128xf32, #tpu.memory_space<vmem>>) attributes {dimension_semantics = [#tpu.dimension_semantics<parallel>], iteration_bounds = array<i64: 1>, scalar_prefetch = 0 : i64, scratch_operands = 0 : i64, tpu.core_type = #tpu.core_type<tc>, window_params = [{transform_indices = @transform_0, window_bounds = array<i64: 16, 128>}, {pipeline_mode = #tpu.pipeline_mode<synchronous>, transform_indices = @transform_1, window_bounds = array<i64: 128, 256>}, {pipeline_mode = #tpu.pipeline_mode<synchronous>, transform_indices = @transform_2, window_bounds = array<i64: 1, 256>}, {pipeline_mode = #tpu.pipeline_mode<synchronous>, transform_indices = @transform_3, window_bounds = array<i64: 10, 256, 256>}, {pipeline_mode = #tpu.pipeline_mode<synchronous>, transform_indices = @transform_4, window_bounds = array<i64: 10, 1, 256>}, {pipeline_mode = #tpu.pipeline_mode<synchronous>, transform_indices = @transform_5, window_bounds = array<i64: 256, 128>}, {pipeline_mode = #tpu.pipeline_mode<synchronous>, transform_indices = @transform_6, window_bounds = array<i64: 1, 128>}, {transform_indices = @transform_7, window_bounds = array<i64: 16, 128>}]} {
    %c0 = arith.constant 0 : index
    %c0_0 = arith.constant 0 : index
    %0 = vector.load %arg1[%c0, %c0_0] : memref<16x128xbf16, #tpu.memory_space<vmem>>, vector<16x128xbf16>
    %c0_1 = arith.constant 0 : index
    %c0_2 = arith.constant 0 : index
    %1 = vector.load %arg2[%c0_1, %c0_2] : memref<128x256xbf16, #tpu.memory_space<vmem>>, vector<128x256xbf16>
    %cst = arith.constant dense<0.000000e+00> : vector<16x256xf32>
    %2 = tpu.matmul %0, %1, %cst {dimension_numbers = #tpu.dot_dimension_numbers<[1], [0], [0], [1], [0, 0, 1, 1], [], []>} : vector<16x128xbf16>, vector<128x256xbf16>, vector<16x256xf32> -> vector<16x256xf32>
    %c0_3 = arith.constant 0 : index
    %c0_4 = arith.constant 0 : index
    %3 = vector.load %arg3[%c0_3, %c0_4] : memref<1x256xf32, #tpu.memory_space<vmem>>, vector<1x256xf32>
    %4 = vector.broadcast %3 : vector<1x256xf32> to vector<16x256xf32>
    %5 = arith.addf %2, %4 : vector<16x256xf32>
    %cst_5 = arith.constant 0.000000e+00 : f32
    %6 = vector.broadcast %cst_5 : f32 to vector<16x256xf32>
    %7 = arith.maximumf %5, %6 : vector<16x256xf32>
    %8 = arith.truncf %7 : vector<16x256xf32> to vector<16x256xbf16>
    %c0_6 = arith.constant 0 : index
    %c0_7 = arith.constant 0 : index
    %c0_8 = arith.constant 0 : index
    %9 = vector.load %arg4[%c0_6, %c0_7, %c0_8] : memref<10x256x256xbf16, #tpu.memory_space<vmem>>, vector<1x256x256xbf16>
    %10 = vector.shape_cast %9 : vector<1x256x256xbf16> to vector<256x256xbf16>
    %cst_9 = arith.constant dense<0.000000e+00> : vector<16x256xf32>
    %11 = tpu.matmul %8, %10, %cst_9 {dimension_numbers = #tpu.dot_dimension_numbers<[1], [0], [0], [1], [0, 0, 1, 1], [], []>} : vector<16x256xbf16>, vector<256x256xbf16>, vector<16x256xf32> -> vector<16x256xf32>
    %c0_10 = arith.constant 0 : index
    %c0_11 = arith.constant 0 : index
    %c0_12 = arith.constant 0 : index
    %12 = vector.load %arg5[%c0_10, %c0_11, %c0_12] : memref<10x1x256xf32, #tpu.memory_space<vmem>>, vector<1x1x256xf32>
    %13 = vector.shape_cast %12 : vector<1x1x256xf32> to vector<1x256xf32>
    %14 = vector.broadcast %13 : vector<1x256xf32> to vector<16x256xf32>
    %15 = arith.addf %11, %14 : vector<16x256xf32>
    %cst_13 = arith.constant 0.000000e+00 : f32
    %16 = vector.broadcast %cst_13 : f32 to vector<16x256xf32>
    %17 = arith.maximumf %15, %16 : vector<16x256xf32>
    %18 = arith.truncf %17 : vector<16x256xf32> to vector<16x256xbf16>
    %c1 = arith.constant 1 : index
    %c0_14 = arith.constant 0 : index
    %c0_15 = arith.constant 0 : index
    %19 = vector.load %arg4[%c1, %c0_14, %c0_15] : memref<10x256x256xbf16, #tpu.memory_space<vmem>>, vector<1x256x256xbf16>
    %20 = vector.shape_cast %19 : vector<1x256x256xbf16> to vector<256x256xbf16>
    %cst_16 = arith.constant dense<0.000000e+00> : vector<16x256xf32>
    %21 = tpu.matmul %18, %20, %cst_16 {dimension_numbers = #tpu.dot_dimension_numbers<[1], [0], [0], [1], [0, 0, 1, 1], [], []>} : vector<16x256xbf16>, vector<256x256xbf16>, vector<16x256xf32> -> vector<16x256xf32>
    %c1_17 = arith.constant 1 : index
    %c0_18 = arith.constant 0 : index
    %c0_19 = arith.constant 0 : index
    %22 = vector.load %arg5[%c1_17, %c0_18, %c0_19] : memref<10x1x256xf32, #tpu.memory_space<vmem>>, vector<1x1x256xf32>
    %23 = vector.shape_cast %22 : vector<1x1x256xf32> to vector<1x256xf32>
    %24 = vector.broadcast %23 : vector<1x256xf32> to vector<16x256xf32>
    %25 = arith.addf %21, %24 : vector<16x256xf32>
    %cst_20 = arith.constant 0.000000e+00 : f32
    %26 = vector.broadcast %cst_20 : f32 to vector<16x256xf32>
    %27 = arith.maximumf %25, %26 : vector<16x256xf32>
    %28 = arith.truncf %27 : vector<16x256xf32> to vector<16x256xbf16>
    %c2 = arith.constant 2 : index
    %c0_21 = arith.constant 0 : index
    %c0_22 = arith.constant 0 : index
    %29 = vector.load %arg4[%c2, %c0_21, %c0_22] : memref<10x256x256xbf16, #tpu.memory_space<vmem>>, vector<1x256x256xbf16>
    %30 = vector.shape_cast %29 : vector<1x256x256xbf16> to vector<256x256xbf16>
    %cst_23 = arith.constant dense<0.000000e+00> : vector<16x256xf32>
    %31 = tpu.matmul %28, %30, %cst_23 {dimension_numbers = #tpu.dot_dimension_numbers<[1], [0], [0], [1], [0, 0, 1, 1], [], []>} : vector<16x256xbf16>, vector<256x256xbf16>, vector<16x256xf32> -> vector<16x256xf32>
    %c2_24 = arith.constant 2 : index
    %c0_25 = arith.constant 0 : index
    %c0_26 = arith.constant 0 : index
    %32 = vector.load %arg5[%c2_24, %c0_25, %c0_26] : memref<10x1x256xf32, #tpu.memory_space<vmem>>, vector<1x1x256xf32>
    %33 = vector.shape_cast %32 : vector<1x1x256xf32> to vector<1x256xf32>
    %34 = vector.broadcast %33 : vector<1x256xf32> to vector<16x256xf32>
    %35 = arith.addf %31, %34 : vector<16x256xf32>
    %cst_27 = arith.constant 0.000000e+00 : f32
    %36 = vector.broadcast %cst_27 : f32 to vector<16x256xf32>
    %37 = arith.maximumf %35, %36 : vector<16x256xf32>
    %38 = arith.truncf %37 : vector<16x256xf32> to vector<16x256xbf16>
    %c3 = arith.constant 3 : index
    %c0_28 = arith.constant 0 : index
    %c0_29 = arith.constant 0 : index
    %39 = vector.load %arg4[%c3, %c0_28, %c0_29] : memref<10x256x256xbf16, #tpu.memory_space<vmem>>, vector<1x256x256xbf16>
    %40 = vector.shape_cast %39 : vector<1x256x256xbf16> to vector<256x256xbf16>
    %cst_30 = arith.constant dense<0.000000e+00> : vector<16x256xf32>
    %41 = tpu.matmul %38, %40, %cst_30 {dimension_numbers = #tpu.dot_dimension_numbers<[1], [0], [0], [1], [0, 0, 1, 1], [], []>} : vector<16x256xbf16>, vector<256x256xbf16>, vector<16x256xf32> -> vector<16x256xf32>
    %c3_31 = arith.constant 3 : index
    %c0_32 = arith.constant 0 : index
    %c0_33 = arith.constant 0 : index
    %42 = vector.load %arg5[%c3_31, %c0_32, %c0_33] : memref<10x1x256xf32, #tpu.memory_space<vmem>>, vector<1x1x256xf32>
    %43 = vector.shape_cast %42 : vector<1x1x256xf32> to vector<1x256xf32>
    %44 = vector.broadcast %43 : vector<1x256xf32> to vector<16x256xf32>
    %45 = arith.addf %41, %44 : vector<16x256xf32>
    %cst_34 = arith.constant 0.000000e+00 : f32
    %46 = vector.broadcast %cst_34 : f32 to vector<16x256xf32>
    %47 = arith.maximumf %45, %46 : vector<16x256xf32>
    %48 = arith.truncf %47 : vector<16x256xf32> to vector<16x256xbf16>
    %c4 = arith.constant 4 : index
    %c0_35 = arith.constant 0 : index
    %c0_36 = arith.constant 0 : index
    %49 = vector.load %arg4[%c4, %c0_35, %c0_36] : memref<10x256x256xbf16, #tpu.memory_space<vmem>>, vector<1x256x256xbf16>
    %50 = vector.shape_cast %49 : vector<1x256x256xbf16> to vector<256x256xbf16>
    %cst_37 = arith.constant dense<0.000000e+00> : vector<16x256xf32>
    %51 = tpu.matmul %48, %50, %cst_37 {dimension_numbers = #tpu.dot_dimension_numbers<[1], [0], [0], [1], [0, 0, 1, 1], [], []>} : vector<16x256xbf16>, vector<256x256xbf16>, vector<16x256xf32> -> vector<16x256xf32>
    %c4_38 = arith.constant 4 : index
    %c0_39 = arith.constant 0 : index
    %c0_40 = arith.constant 0 : index
    %52 = vector.load %arg5[%c4_38, %c0_39, %c0_40] : memref<10x1x256xf32, #tpu.memory_space<vmem>>, vector<1x1x256xf32>
    %53 = vector.shape_cast %52 : vector<1x1x256xf32> to vector<1x256xf32>
    %54 = vector.broadcast %53 : vector<1x256xf32> to vector<16x256xf32>
    %55 = arith.addf %51, %54 : vector<16x256xf32>
    %cst_41 = arith.constant 0.000000e+00 : f32
    %56 = vector.broadcast %cst_41 : f32 to vector<16x256xf32>
    %57 = arith.maximumf %55, %56 : vector<16x256xf32>
    %58 = arith.truncf %57 : vector<16x256xf32> to vector<16x256xbf16>
    %c5 = arith.constant 5 : index
    %c0_42 = arith.constant 0 : index
    %c0_43 = arith.constant 0 : index
    %59 = vector.load %arg4[%c5, %c0_42, %c0_43] : memref<10x256x256xbf16, #tpu.memory_space<vmem>>, vector<1x256x256xbf16>
    %60 = vector.shape_cast %59 : vector<1x256x256xbf16> to vector<256x256xbf16>
    %cst_44 = arith.constant dense<0.000000e+00> : vector<16x256xf32>
    %61 = tpu.matmul %58, %60, %cst_44 {dimension_numbers = #tpu.dot_dimension_numbers<[1], [0], [0], [1], [0, 0, 1, 1], [], []>} : vector<16x256xbf16>, vector<256x256xbf16>, vector<16x256xf32> -> vector<16x256xf32>
    %c5_45 = arith.constant 5 : index
    %c0_46 = arith.constant 0 : index
    %c0_47 = arith.constant 0 : index
    %62 = vector.load %arg5[%c5_45, %c0_46, %c0_47] : memref<10x1x256xf32, #tpu.memory_space<vmem>>, vector<1x1x256xf32>
    %63 = vector.shape_cast %62 : vector<1x1x256xf32> to vector<1x256xf32>
    %64 = vector.broadcast %63 : vector<1x256xf32> to vector<16x256xf32>
    %65 = arith.addf %61, %64 : vector<16x256xf32>
    %cst_48 = arith.constant 0.000000e+00 : f32
    %66 = vector.broadcast %cst_48 : f32 to vector<16x256xf32>
    %67 = arith.maximumf %65, %66 : vector<16x256xf32>
    %68 = arith.truncf %67 : vector<16x256xf32> to vector<16x256xbf16>
    %c6 = arith.constant 6 : index
    %c0_49 = arith.constant 0 : index
    %c0_50 = arith.constant 0 : index
    %69 = vector.load %arg4[%c6, %c0_49, %c0_50] : memref<10x256x256xbf16, #tpu.memory_space<vmem>>, vector<1x256x256xbf16>
    %70 = vector.shape_cast %69 : vector<1x256x256xbf16> to vector<256x256xbf16>
    %cst_51 = arith.constant dense<0.000000e+00> : vector<16x256xf32>
    %71 = tpu.matmul %68, %70, %cst_51 {dimension_numbers = #tpu.dot_dimension_numbers<[1], [0], [0], [1], [0, 0, 1, 1], [], []>} : vector<16x256xbf16>, vector<256x256xbf16>, vector<16x256xf32> -> vector<16x256xf32>
    %c6_52 = arith.constant 6 : index
    %c0_53 = arith.constant 0 : index
    %c0_54 = arith.constant 0 : index
    %72 = vector.load %arg5[%c6_52, %c0_53, %c0_54] : memref<10x1x256xf32, #tpu.memory_space<vmem>>, vector<1x1x256xf32>
    %73 = vector.shape_cast %72 : vector<1x1x256xf32> to vector<1x256xf32>
    %74 = vector.broadcast %73 : vector<1x256xf32> to vector<16x256xf32>
    %75 = arith.addf %71, %74 : vector<16x256xf32>
    %cst_55 = arith.constant 0.000000e+00 : f32
    %76 = vector.broadcast %cst_55 : f32 to vector<16x256xf32>
    %77 = arith.maximumf %75, %76 : vector<16x256xf32>
    %78 = arith.truncf %77 : vector<16x256xf32> to vector<16x256xbf16>
    %c7 = arith.constant 7 : index
    %c0_56 = arith.constant 0 : index
    %c0_57 = arith.constant 0 : index
    %79 = vector.load %arg4[%c7, %c0_56, %c0_57] : memref<10x256x256xbf16, #tpu.memory_space<vmem>>, vector<1x256x256xbf16>
    %80 = vector.shape_cast %79 : vector<1x256x256xbf16> to vector<256x256xbf16>
    %cst_58 = arith.constant dense<0.000000e+00> : vector<16x256xf32>
    %81 = tpu.matmul %78, %80, %cst_58 {dimension_numbers = #tpu.dot_dimension_numbers<[1], [0], [0], [1], [0, 0, 1, 1], [], []>} : vector<16x256xbf16>, vector<256x256xbf16>, vector<16x256xf32> -> vector<16x256xf32>
    %c7_59 = arith.constant 7 : index
    %c0_60 = arith.constant 0 : index
    %c0_61 = arith.constant 0 : index
    %82 = vector.load %arg5[%c7_59, %c0_60, %c0_61] : memref<10x1x256xf32, #tpu.memory_space<vmem>>, vector<1x1x256xf32>
    %83 = vector.shape_cast %82 : vector<1x1x256xf32> to vector<1x256xf32>
    %84 = vector.broadcast %83 : vector<1x256xf32> to vector<16x256xf32>
    %85 = arith.addf %81, %84 : vector<16x256xf32>
    %cst_62 = arith.constant 0.000000e+00 : f32
    %86 = vector.broadcast %cst_62 : f32 to vector<16x256xf32>
    %87 = arith.maximumf %85, %86 : vector<16x256xf32>
    %88 = arith.truncf %87 : vector<16x256xf32> to vector<16x256xbf16>
    %c8 = arith.constant 8 : index
    %c0_63 = arith.constant 0 : index
    %c0_64 = arith.constant 0 : index
    %89 = vector.load %arg4[%c8, %c0_63, %c0_64] : memref<10x256x256xbf16, #tpu.memory_space<vmem>>, vector<1x256x256xbf16>
    %90 = vector.shape_cast %89 : vector<1x256x256xbf16> to vector<256x256xbf16>
    %cst_65 = arith.constant dense<0.000000e+00> : vector<16x256xf32>
    %91 = tpu.matmul %88, %90, %cst_65 {dimension_numbers = #tpu.dot_dimension_numbers<[1], [0], [0], [1], [0, 0, 1, 1], [], []>} : vector<16x256xbf16>, vector<256x256xbf16>, vector<16x256xf32> -> vector<16x256xf32>
    %c8_66 = arith.constant 8 : index
    %c0_67 = arith.constant 0 : index
    %c0_68 = arith.constant 0 : index
    %92 = vector.load %arg5[%c8_66, %c0_67, %c0_68] : memref<10x1x256xf32, #tpu.memory_space<vmem>>, vector<1x1x256xf32>
    %93 = vector.shape_cast %92 : vector<1x1x256xf32> to vector<1x256xf32>
    %94 = vector.broadcast %93 : vector<1x256xf32> to vector<16x256xf32>
    %95 = arith.addf %91, %94 : vector<16x256xf32>
    %cst_69 = arith.constant 0.000000e+00 : f32
    %96 = vector.broadcast %cst_69 : f32 to vector<16x256xf32>
    %97 = arith.maximumf %95, %96 : vector<16x256xf32>
    %98 = arith.truncf %97 : vector<16x256xf32> to vector<16x256xbf16>
    %c9 = arith.constant 9 : index
    %c0_70 = arith.constant 0 : index
    %c0_71 = arith.constant 0 : index
    %99 = vector.load %arg4[%c9, %c0_70, %c0_71] : memref<10x256x256xbf16, #tpu.memory_space<vmem>>, vector<1x256x256xbf16>
    %100 = vector.shape_cast %99 : vector<1x256x256xbf16> to vector<256x256xbf16>
    %cst_72 = arith.constant dense<0.000000e+00> : vector<16x256xf32>
    %101 = tpu.matmul %98, %100, %cst_72 {dimension_numbers = #tpu.dot_dimension_numbers<[1], [0], [0], [1], [0, 0, 1, 1], [], []>} : vector<16x256xbf16>, vector<256x256xbf16>, vector<16x256xf32> -> vector<16x256xf32>
    %c9_73 = arith.constant 9 : index
    %c0_74 = arith.constant 0 : index
    %c0_75 = arith.constant 0 : index
    %102 = vector.load %arg5[%c9_73, %c0_74, %c0_75] : memref<10x1x256xf32, #tpu.memory_space<vmem>>, vector<1x1x256xf32>
    %103 = vector.shape_cast %102 : vector<1x1x256xf32> to vector<1x256xf32>
    %104 = vector.broadcast %103 : vector<1x256xf32> to vector<16x256xf32>
    %105 = arith.addf %101, %104 : vector<16x256xf32>
    %cst_76 = arith.constant 0.000000e+00 : f32
    %106 = vector.broadcast %cst_76 : f32 to vector<16x256xf32>
    %107 = arith.maximumf %105, %106 : vector<16x256xf32>
    %108 = arith.truncf %107 : vector<16x256xf32> to vector<16x256xbf16>
    %c0_77 = arith.constant 0 : index
    %c0_78 = arith.constant 0 : index
    %109 = vector.load %arg6[%c0_77, %c0_78] : memref<256x128xbf16, #tpu.memory_space<vmem>>, vector<256x128xbf16>
    %cst_79 = arith.constant dense<0.000000e+00> : vector<16x128xf32>
    %110 = tpu.matmul %108, %109, %cst_79 {dimension_numbers = #tpu.dot_dimension_numbers<[1], [0], [0], [1], [0, 0, 1, 1], [], []>} : vector<16x256xbf16>, vector<256x128xbf16>, vector<16x128xf32> -> vector<16x128xf32>
    %c0_80 = arith.constant 0 : index
    %c0_81 = arith.constant 0 : index
    %111 = vector.load %arg7[%c0_80, %c0_81] : memref<1x128xf32, #tpu.memory_space<vmem>>, vector<1x128xf32>
    %112 = vector.broadcast %111 : vector<1x128xf32> to vector<16x128xf32>
    %113 = arith.addf %110, %112 : vector<16x128xf32>
    %c0_82 = arith.constant 0 : index
    %c0_83 = arith.constant 0 : index
    %114 = vector.load %arg8[%c0_82, %c0_83] : memref<16x128xf32, #tpu.memory_space<vmem>>, vector<16x128xf32>
    tpu.vector_store %arg8[%c0_82, %c0_83], %113 {strides = array<i32>} : memref<16x128xf32, #tpu.memory_space<vmem>>, vector<16x128xf32>,
    return
  }
  func.func @transform_0(%arg0: i32) -> (i32, i32) {
    %c0_i32 = arith.constant 0 : i32
    %c0_i32_0 = arith.constant 0 : i32
    return %arg0, %c0_i32 : i32, i32
  }
  func.func @transform_1(%arg0: i32) -> (i32, i32) {
    %c0_i32 = arith.constant 0 : i32
    %c0_i32_0 = arith.constant 0 : i32
    %c0_i32_1 = arith.constant 0 : i32
    return %c0_i32, %c0_i32_0 : i32, i32
  }
  func.func @transform_2(%arg0: i32) -> (i32, i32) {
    %c0_i32 = arith.constant 0 : i32
    %c0_i32_0 = arith.constant 0 : i32
    %c0_i32_1 = arith.constant 0 : i32
    return %c0_i32, %c0_i32_0 : i32, i32
  }
  func.func @transform_3(%arg0: i32) -> (i32, i32, i32) {
    %c0_i32 = arith.constant 0 : i32
    %c0_i32_0 = arith.constant 0 : i32
    %c0_i32_1 = arith.constant 0 : i32
    %c0_i32_2 = arith.constant 0 : i32
    return %c0_i32, %c0_i32_0, %c0_i32_1 : i32, i32, i32
  }
  func.func @transform_4(%arg0: i32) -> (i32, i32, i32) {
    %c0_i32 = arith.constant 0 : i32
    %c0_i32_0 = arith.constant 0 : i32
    %c0_i32_1 = arith.constant 0 : i32
    %c0_i32_2 = arith.constant 0 : i32
    return %c0_i32, %c0_i32_0, %c0_i32_1 : i32, i32, i32
  }
  func.func @transform_5(%arg0: i32) -> (i32, i32) {
    %c0_i32 = arith.constant 0 : i32
    %c0_i32_0 = arith.constant 0 : i32
    %c0_i32_1 = arith.constant 0 : i32
    return %c0_i32, %c0_i32_0 : i32, i32
  }
  func.func @transform_6(%arg0: i32) -> (i32, i32) {
    %c0_i32 = arith.constant 0 : i32
    %c0_i32_0 = arith.constant 0 : i32
    %c0_i32_1 = arith.constant 0 : i32
    return %c0_i32, %c0_i32_0 : i32, i32
  }
  func.func @transform_7(%arg0: i32) -> (i32, i32) {
    %c0_i32 = arith.constant 0 : i32
    %c0_i32_0 = arith.constant 0 : i32
    return %arg0, %c0_i32 : i32, i32
  }
}

</mosaic_0001>

<bundles_post_ra>
// kernel: dqn_forward.1
= control target key start
LH: loop header
LB: loop body
LE: loop exit
PB: predicated region body
PF: predicated region fallthrough
CT: control target
= control target key end

     0   :  { %12 = vsyncpa [#allocation3], 0  ;;  %s5057_s0 = inlined_call_operand.vmem [shape: bf16[16,128], index: 0, kind: input, shape index: {}]   ;;  %s5058_s1 = inlined_call_operand.hbm [shape: bf16[128,256], index: 1, kind: input, shape index: {}]   ;;  %s5059_s2 = inlined_call_operand.hbm [shape: f32[1,256], index: 2, kind: input, shape index: {}]   ;;  %s5060_s3 = inlined_call_operand.hbm [shape: bf16[10,256,256], index: 3, kind: input, shape index: {}]   ;;  %s5061_s4 = inlined_call_operand.hbm [shape: f32[10,1,256], index: 4, kind: input, shape index: {}]   ;;  %s5062_s5 = inlined_call_operand.hbm [shape: bf16[256,128], index: 5, kind: input, shape index: {}]   ;;  %s5063_s6 = inlined_call_operand.hbm [shape: f32[1,128], index: 6, kind: input, shape index: {}]   ;;  %s5064_s7 = inlined_call_operand.vmem [shape: f32[16,128], index: 7, kind: output, shape index: {}]  }
   0x1   :  { %13 = vsyncpa [#allocation5], 0 }
   0x2   :  { %14 = vsyncpa [#allocation8], 0  ;;  %s36_s26 = sshll.u32 %s5059_s2, 4  ;;  %s37_s26 = int_to_ptr.hbm [resolvable:$true] %s36_s26 }
   0x3   :  { %15 = vsyncpa [#allocation11], 0  ;;  %s4978_s27 = smov [#allocation4]   ;;  %s59_s8 = sshll.u32 %s5061_s4, 4  ;;  %s60_s8 = int_to_ptr.hbm [resolvable:$true] %s59_s8 }
   0x4   :  { %s38_s28 = sshll.u32 %s4978_s27, 4  ;;  %s4979_s9 = smov [#allocation7]   ;;  %s39_s28 = int_to_ptr.vmem [resolvable:$true] %s38_s28 }
   0x5   :  { %41 = dma.hbm_to_vmem [thread:$0]  %s37_s26, 32, %s39_s28, [#allocation5]  }
   0x6   :  { %s61_s10 = sshll.u32 %s4979_s9, 4  ;;  %s4980_s11 = smov 32   ;;  %s62_s10 = int_to_ptr.vmem [resolvable:$true] %s61_s10 }
   0x7   :  { %s4981_s12 = smov 2   ;;  %s22_s2 = sshll.u32 %s5058_s1, 4  ;;  %s23_s2 = int_to_ptr.hbm [resolvable:$true] %s22_s2 }
   0x8   :  { %67 = dma.hbm_to_vmem [thread:$0]  %s60_s8, 320, %s62_s10, [#allocation8], %s4980_s11, %s4980_s11, %s4981_s12  }
   0x9   :  { %s4982_s15 = smov [#allocation2]   ;;  %s46_s4 = sshll.u32 %s5060_s3, 4  ;;  %s47_s4 = int_to_ptr.hbm [resolvable:$true] %s46_s4 }
   0xa   :  { %s24_s16 = sshll.u32 %s4982_s15, 4  ;;  %s4983_s19 = smov 128   ;;  %s25_s16 = int_to_ptr.vmem [resolvable:$true] %s24_s16 }
   0xb   :  { %s4984_s20 = smov 8   ;;  %s4985_s21 = smov [#allocation6]  }
   0xc   :  { %30 = dma.hbm_to_vmem [thread:$0]  %s23_s2, 2048, %s25_s16, [#allocation3], %s4983_s19, %s4983_s19, %s4984_s20  }
   0xd   :  { %s48_s22 = sshll.u32 %s4985_s21, 4  ;;  %s72_s25 = sshll.u32 %s5062_s5, 4  ;;  %s49_s22 = int_to_ptr.vmem [resolvable:$true] %s48_s22  ;;  %s73_s25 = int_to_ptr.hbm [resolvable:$true] %s72_s25 }
   0xe   :  { %54 = dma.hbm_to_vmem [thread:$0]  %s47_s4, 40960, %s49_s22, [#allocation5], %s4983_s19, %s4983_s19, %s4984_s20  }
   0xf   :  { %s4986_s1 = smov [#allocation9]   ;;  %s86_s3 = sshll.u32 %s5063_s6, 4  ;;  %s87_s3 = int_to_ptr.hbm [resolvable:$true] %s86_s3 }
  0x10   :  { %s74_s26 = sshll.u32 %s4986_s1, 4  ;;  %s4987_s29 = smov 64   ;;  %s75_s26 = int_to_ptr.vmem [resolvable:$true] %s74_s26 }
  0x11   :  { %s4988_s30 = smov 4   ;;  %s4989_s8 = smov [#allocation10]  }
  0x12   :  { %80 = dma.hbm_to_vmem [thread:$0]  %s73_s25, 2048, %s75_s26, [#allocation8], %s4987_s29, %s4987_s29, %s4988_s30  }
  0x13   :  { %s88_s9 = sshll.u32 %s4989_s8, 4  ;;  %s89_s9 = int_to_ptr.vmem [resolvable:$true] %s88_s9 }
  0x14   :  { %91 = dma.hbm_to_vmem [thread:$0]  %s87_s3, 16, %s89_s9, [#allocation11]  }
  0x15   :  { %4970 = dma.done.wait [#allocation3], 2048  }
  0x16   :  { %4971 = vsyncadd [#allocation3], 4294965248 }
  0x17   :  { %4972 = dma.done.wait [#allocation5], 40992  }
  0x18   :  { %4973 = vsyncadd [#allocation5], 4294926304 }
  0x19   :  { %4974 = dma.done.wait [#allocation8], 2368  }
  0x1a   :  { %4975 = vsyncadd [#allocation8], 4294964928 }
  0x1b   :  { %4976 = dma.done.wait [#allocation11], 16  }
  0x1c   :  { %4977 = vsyncadd [#allocation11], 4294967280  ;;  %v3110_v0 = vld [vmem:[#allocation2 + $0x70] sm:$0xf]  ;;  %v4476_v1 = vld [vmem:[#allocation2 + $0x74] sm:$0xf0] }
  0x1d   :  { %v4475_v2 = vld [vmem:[#allocation2 + $0x74] sm:$0xf]  ;;  %v3111_v3 = vor.u32 %v4476_v1, %v3110_v0  ;;  %v3112_v4 = vld [vmem:[#allocation2 + $0x78] sm:$0xf0]  ;;  %v3102_v5 = vld [vmem:[#allocation2 + $0x60] sm:$0xf] }
  0x1e   :  { %v4474_v6 = vld [vmem:[#allocation2 + $0x64] sm:$0xf0]  ;;  %v3115_v7 = vor.u32 %v4475_v2, %v3112_v4  ;;  %v4473_v8 = vld [vmem:[#allocation2 + $0x64] sm:$0xf]  ;;  %v3104_v9 = vld [vmem:[#allocation2 + $0x68] sm:$0xf0] }
  0x1f   :  { %226 = vmatpush.bf16.msra.mxu0 %v3111_v3  ;;  %v3103_v10 = vor.u32 %v4474_v6, %v3102_v5  ;;  %v3107_v11 = vor.u32 %v4473_v8, %v3104_v9  ;;  %v3094_v12 = vld [vmem:[#allocation2 + $0x50] sm:$0xf]  ;;  %v4472_v13 = vld [vmem:[#allocation2 + $0x54] sm:$0xf0]  ;;  %v4471_v14 = vld [vmem:[#allocation2 + $0x54] sm:$0xf] }
  0x20   :  { %240 = vmatpush.bf16.msra.mxu1 %v3115_v7  ;;  %v3096_v15 = vld [vmem:[#allocation2 + $0x58] sm:$0xf0]  ;;  %v3095_v16 = vor.u32 %v4472_v13, %v3094_v12  ;;  %v3086_v18 = vld [vmem:[#allocation2 + $0x40] sm:$0xf]  ;;  %v4470_v19 = vld [vmem:[#allocation2 + $0x44] sm:$0xf0] }
  0x21   :  { %v3099_v17 = vor.u32 %v4471_v14, %v3096_v15  ;;  %v4469_v20 = vld [vmem:[#allocation2 + $0x44] sm:$0xf]  ;;  %v3088_v21 = vld [vmem:[#allocation2 + $0x48] sm:$0xf0]  ;;  %v3087_v22 = vor.u32 %v4470_v19, %v3086_v18  ;;  %v3174_v23 = vld [vmem:[#allocation6 + $0x70] sm:$0xf] }
  0x22   :  { %v4492_v24 = vld [vmem:[#allocation6 + $0x74] sm:$0xf0]  ;;  %v3238_v25 = vld [vmem:[#allocation6 + $0xf0] sm:$0xf]  ;;  %v3091_v26 = vor.u32 %v4469_v20, %v3088_v21  ;;  %v3166_v34 = vld [vmem:[#allocation6 + $0x60] sm:$0xf] }
  0x23   :  { %227 = vmatpush.bf16.msra.mxu0 %v3103_v10  ;;  %v3078_v27 = vld [vmem:[#allocation2 + $0x30] sm:$0xf]  ;;  %v4468_v28 = vld [vmem:[#allocation2 + $0x34] sm:$0xf0]  ;;  %v3175_v29 = vor.u32 %v4492_v24, %v3174_v23  ;;  %v4467_v31 = vld [vmem:[#allocation2 + $0x34] sm:$0xf] }
  0x24   :  { %241 = vmatpush.bf16.msra.mxu1 %v3107_v11  ;;  %v4508_v30 = vld [vmem:[#allocation6 + $0xf4] sm:$0xf0]  ;;  %v4490_v35 = vld [vmem:[#allocation6 + $0x64] sm:$0xf0]  ;;  %v3230_v36 = vld [vmem:[#allocation6 + $0xe0] sm:$0xf]  ;;  %v3079_v38 = vor.u32 %v4468_v28, %v3078_v27 }
  0x25   :  { %v3080_v32 = vld [vmem:[#allocation2 + $0x38] sm:$0xf0]  ;;  %v3239_v33 = vor.u32 %v4508_v30, %v3238_v25  ;;  %458 = vmatpush.bf16.msra.mxu2 %v3175_v29  ;;  %v4506_v37 = vld [vmem:[#allocation6 + $0xe4] sm:$0xf0]  ;;  %v3070_v39 = vld [vmem:[#allocation2 + $0x20] sm:$0xf]  ;;  %v3167_v41 = vor.u32 %v4490_v35, %v3166_v34 }
  0x26   :  { %v4466_v40 = vld [vmem:[#allocation2 + $0x24] sm:$0xf0]  ;;  %v3231_v42 = vor.u32 %v4506_v37, %v3230_v36  ;;  %v3083_v43 = vor.u32 %v4467_v31, %v3080_v32  ;;  %v4465_v44 = vld [vmem:[#allocation2 + $0x24] sm:$0xf]  ;;  %v3158_v45 = vld [vmem:[#allocation6 + $0x50] sm:$0xf] }
  0x27   :  { %228 = vmatpush.bf16.msra.mxu0 %v3095_v16  ;;  %472 = vmatpush.bf16.msra.mxu3 %v3239_v33  ;;  %v4488_v46 = vld [vmem:[#allocation6 + $0x54] sm:$0xf0]  ;;  %v3072_v47 = vld [vmem:[#allocation2 + $0x28] sm:$0xf0]  ;;  %v3222_v48 = vld [vmem:[#allocation6 + $0xd0] sm:$0xf]  ;;  %v3071_v51 = vor.u32 %v4466_v40, %v3070_v39 }
  0x28   :  { %242 = vmatpush.bf16.msra.mxu1 %v3099_v17  ;;  %v4504_v49 = vld [vmem:[#allocation6 + $0xd4] sm:$0xf0]  ;;  %v3159_v50 = vor.u32 %v4488_v46, %v3158_v45  ;;  %v3062_v52 = vld [vmem:[#allocation2 + $0x10] sm:$0xf]  ;;  %v3150_v54 = vld [vmem:[#allocation6 + $0x40] sm:$0xf]  ;;  %v3075_v56 = vor.u32 %v4465_v44, %v3072_v47 }
  0x29   :  { %459 = vmatpush.bf16.msra.mxu2 %v3167_v41  ;;  %v3223_v53 = vor.u32 %v4504_v49, %v3222_v48  ;;  %v4486_v55 = vld [vmem:[#allocation6 + $0x44] sm:$0xf0]  ;;  %v4464_v57 = vld [vmem:[#allocation2 + $0x14] sm:$0xf0]  ;;  %v3214_v58 = vld [vmem:[#allocation6 + $0xc0] sm:$0xf] }
  0x2a   :  { %v4502_v59 = vld [vmem:[#allocation6 + $0xc4] sm:$0xf0]  ;;  %v4463_v60 = vld [vmem:[#allocation2 + $0x14] sm:$0xf]  ;;  %v3064_v61 = vld [vmem:[#allocation2 + $0x18] sm:$0xf0]  ;;  %v3151_v62 = vor.u32 %v4486_v55, %v3150_v54  ;;  %v3063_v63 = vor.u32 %v4464_v57, %v3062_v52 }
  0x2b   :  { %229 = vmatpush.bf16.msra.mxu0 %v3087_v22  ;;  %473 = vmatpush.bf16.msra.mxu3 %v3231_v42  ;;  %v3215_v0 = vor.u32 %v4502_v59, %v3214_v58  ;;  %v3067_v1 = vor.u32 %v4463_v60, %v3064_v61  ;;  %v3054_v2 = vld [vmem:[#allocation2] sm:$0xf]  ;;  %v4462_v3 = vld [vmem:[#allocation2 + $0x4] sm:$0xf0]  ;;  %v4461_v4 = vld [vmem:[#allocation2 + $0x4] sm:$0xf] }
  0x2c   :  { %243 = vmatpush.bf16.msra.mxu1 %v3091_v26  ;;  %v3056_v5 = vld [vmem:[#allocation2 + $0x8] sm:$0xf0]  ;;  %v4491_v6 = vld [vmem:[#allocation6 + $0x74] sm:$0xf]  ;;  %v3176_v7 = vld [vmem:[#allocation6 + $0x78] sm:$0xf0]  ;;  %v3055_v10 = vor.u32 %v4462_v3, %v3054_v2 }
  0x2d   :  { %460 = vmatpush.bf16.msra.mxu2 %v3159_v50  ;;  %v4507_v8 = vld [vmem:[#allocation6 + $0xf4] sm:$0xf]  ;;  %v3240_v9 = vld [vmem:[#allocation6 + $0xf8] sm:$0xf0]  ;;  %v3059_v11 = vor.u32 %v4461_v4, %v3056_v5  ;;  %v3179_v12 = vor.u32 %v4491_v6, %v3176_v7  ;;  %v4489_v14 = vld [vmem:[#allocation6 + $0x64] sm:$0xf] }
  0x2e   :  { %v3243_v13 = vor.u32 %v4507_v8, %v3240_v9  ;;  %v3168_v15 = vld [vmem:[#allocation6 + $0x68] sm:$0xf0]  ;;  %v4460_v16 = vld [vmem:[%s5057_s0] sm:$0xff]  ;;  %v4487_v21 = vld [vmem:[#allocation6 + $0x54] sm:$0xf] }
  0x2f   :  { %230 = vmatpush.bf16.msra.mxu0 %v3079_v38  ;;  %474 = vmatpush.bf16.msra.mxu3 %v3223_v53  ;;  %v4505_v17 = vld [vmem:[#allocation6 + $0xe4] sm:$0xf]  ;;  %v3232_v18 = vld [vmem:[#allocation6 + $0xe8] sm:$0xf0]  ;;  %v3171_v19 = vor.u32 %v4489_v14, %v3168_v15  ;;  %v3160_v22 = vld [vmem:[#allocation6 + $0x58] sm:$0xf0] }
  0x30   :  { %244 = vmatpush.bf16.msra.mxu1 %v3083_v43  ;;  %v3235_v20 = vor.u32 %v4505_v17, %v3232_v18  ;;  %v4503_v23 = vld [vmem:[#allocation6 + $0xd4] sm:$0xf]  ;;  %v3224_v24 = vld [vmem:[#allocation6 + $0xd8] sm:$0xf0]  ;;  %v3163_v25 = vor.u32 %v4487_v21, %v3160_v22  ;;  %v4485_v27 = vld [vmem:[#allocation6 + $0x44] sm:$0xf] }
  0x31   :  { %461 = vmatpush.bf16.msra.mxu2 %v3151_v62  ;;  %v3227_v26 = vor.u32 %v4503_v23, %v3224_v24  ;;  %v3152_v28 = vld [vmem:[#allocation6 + $0x48] sm:$0xf0]  ;;  %v4501_v29 = vld [vmem:[#allocation6 + $0xc4] sm:$0xf]  ;;  %v3142_v33 = vld [vmem:[#allocation6 + $0x30] sm:$0xf] }
  0x32   :  { %v3216_v30 = vld [vmem:[#allocation6 + $0xc8] sm:$0xf0]  ;;  %v3155_v31 = vor.u32 %v4485_v27, %v3152_v28  ;;  %v4484_v34 = vld [vmem:[#allocation6 + $0x34] sm:$0xf0]  ;;  %v3206_v35 = vld [vmem:[#allocation6 + $0xb0] sm:$0xf] }
  0x33   :  { %231 = vmatpush.bf16.msra.mxu0 %v3071_v51  ;;  %475 = vmatpush.bf16.msra.mxu3 %v3215_v0  ;;  %v3219_v32 = vor.u32 %v4501_v29, %v3216_v30  ;;  %v3143_v36 = vor.u32 %v4484_v34, %v3142_v33  ;;  %v4500_v37 = vld [vmem:[#allocation6 + $0xb4] sm:$0xf0]  ;;  %v4483_v38 = vld [vmem:[#allocation6 + $0x34] sm:$0xf]  ;;  %v3144_v39 = vld [vmem:[#allocation6 + $0x38] sm:$0xf0] }
  0x34   :  { %245 = vmatpush.bf16.msra.mxu1 %v3075_v56  ;;  %v3207_v40 = vor.u32 %v4500_v37, %v3206_v35  ;;  %v3147_v41 = vor.u32 %v4483_v38, %v3144_v39  ;;  %v4499_v42 = vld [vmem:[#allocation6 + $0xb4] sm:$0xf]  ;;  %v3208_v43 = vld [vmem:[#allocation6 + $0xb8] sm:$0xf0]  ;;  %v3134_v45 = vld [vmem:[#allocation6 + $0x20] sm:$0xf] }
  0x35   :  { %462 = vmatpush.bf16.msra.mxu2 %v3143_v36  ;;  %v3211_v44 = vor.u32 %v4499_v42, %v3208_v43  ;;  %v4482_v46 = vld [vmem:[#allocation6 + $0x24] sm:$0xf0]  ;;  %v3198_v48 = vld [vmem:[#allocation6 + $0xa0] sm:$0xf]  ;;  %v4481_v50 = vld [vmem:[#allocation6 + $0x24] sm:$0xf] }
  0x36   :  { %v3135_v47 = vor.u32 %v4482_v46, %v3134_v45  ;;  %v4498_v49 = vld [vmem:[#allocation6 + $0xa4] sm:$0xf0]  ;;  %v3136_v52 = vld [vmem:[#allocation6 + $0x28] sm:$0xf0]  ;;  %v4497_v53 = vld [vmem:[#allocation6 + $0xa4] sm:$0xf] }
  0x37   :  { %232 = vmatpush.bf16.msra.mxu0 %v3063_v63  ;;  %476 = vmatpush.bf16.msra.mxu3 %v3207_v40  ;;  %v3199_v51 = vor.u32 %v4498_v49, %v3198_v48  ;;  %v3200_v54 = vld [vmem:[#allocation6 + $0xa8] sm:$0xf0]  ;;  %v3139_v55 = vor.u32 %v4481_v50, %v3136_v52  ;;  %v3126_v57 = vld [vmem:[#allocation6 + $0x10] sm:$0xf]  ;;  %v4480_v58 = vld [vmem:[#allocation6 + $0x14] sm:$0xf0] }
  0x38   :  { %246 = vmatpush.bf16.msra.mxu1 %v3067_v1  ;;  %v3203_v56 = vor.u32 %v4497_v53, %v3200_v54  ;;  %v3190_v59 = vld [vmem:[#allocation6 + $0x90] sm:$0xf]  ;;  %v3127_v60 = vor.u32 %v4480_v58, %v3126_v57  ;;  %v4496_v61 = vld [vmem:[#allocation6 + $0x94] sm:$0xf0]  ;;  %v4479_v62 = vld [vmem:[#allocation6 + $0x14] sm:$0xf] }
  0x39   :  { %463 = vmatpush.bf16.msra.mxu2 %v3135_v47  ;;  %v3128_v63 = vld [vmem:[#allocation6 + $0x18] sm:$0xf0]  ;;  %v3191_v0 = vor.u32 %v4496_v61, %v3190_v59  ;;  %v4495_v2 = vld [vmem:[#allocation6 + $0x94] sm:$0xf]  ;;  %v3118_v5 = vld [vmem:[#allocation6] sm:$0xf] }
  0x3a   :  { %v3131_v1 = vor.u32 %v4479_v62, %v3128_v63  ;;  %v3192_v3 = vld [vmem:[#allocation6 + $0x98] sm:$0xf0]  ;;  %v4478_v6 = vld [vmem:[#allocation6 + $0x4] sm:$0xf0]  ;;  %v3182_v7 = vld [vmem:[#allocation6 + $0x80] sm:$0xf] }
  0x3b   :  { %233 = vmatpush.bf16.msra.mxu0 %v3055_v10  ;;  %477 = vmatpush.bf16.msra.mxu3 %v3199_v51  ;;  %v3195_v4 = vor.u32 %v4495_v2, %v3192_v3  ;;  %v3119_v8 = vor.u32 %v4478_v6, %v3118_v5  ;;  %v4494_v9 = vld [vmem:[#allocation6 + $0x84] sm:$0xf0]  ;;  %v4477_v10 = vld [vmem:[#allocation6 + $0x4] sm:$0xf]  ;;  %v3184_v15 = vld [vmem:[#allocation6 + $0x88] sm:$0xf0] }
  0x3c   :  { %247 = vmatpush.bf16.msra.mxu1 %v3059_v11  ;;  %v3120_v11 = vld [vmem:[#allocation6 + $0x8] sm:$0xf0]  ;;  %v4493_v14 = vld [vmem:[#allocation6 + $0x84] sm:$0xf]  ;;  %v3366_v17 = vld [vmem:[#allocation6 + $0x1f0] sm:$0xf] }
  0x3d   :  { %464 = vmatpush.bf16.msra.mxu2 %v3127_v60  ;;  %v4540_v18 = vld [vmem:[#allocation6 + $0x1f4] sm:$0xf0]  ;;  %v3368_v21 = vld [vmem:[#allocation6 + $0x1f8] sm:$0xf0]  ;;  %v3358_v22 = vld [vmem:[#allocation6 + $0x1e0] sm:$0xf] }
  0x3e   :  { %234 = vmatmul.bf16.vlgmr.msra.gmra.mxu0 %v4460_v16  ;;  %v4538_v23 = vld [vmem:[#allocation6 + $0x1e4] sm:$0xf0]  ;;  %v3302_v27 = vld [vmem:[#allocation6 + $0x170] sm:$0xf]  ;;  %v4524_v29 = vld [vmem:[#allocation6 + $0x174] sm:$0xf0] }
  0x3f   :  { %486 = vmatpush.bf16.msrb.mxu0 %v3179_v12  ;;  %248 = vmatmul.bf16.vlgmr.msra.gmra.mxu1 %v4460_v16  ;;  %v3183_v12 = vor.u32 %v4494_v9, %v3182_v7  ;;  %v3187_v16 = vor.u32 %v4493_v14, %v3184_v15  ;;  %v3359_v28 = vor.u32 %v4538_v23, %v3358_v22  ;;  %v4523_v30 = vld [vmem:[#allocation6 + $0x174] sm:$0xf]  ;;  %v3350_v35 = vld [vmem:[#allocation6 + $0x1d0] sm:$0xf]  ;;  %v4536_v36 = vld [vmem:[#allocation6 + $0x1d4] sm:$0xf0] }
  0x40   :  { %500 = vmatpush.bf16.msrb.mxu1 %v3243_v13  ;;  %478 = vmatpush.bf16.msra.mxu3 %v3191_v0  ;;  %v3123_v13 = vor.u32 %v4477_v10, %v3120_v11  ;;  %v3303_v33 = vor.u32 %v4524_v29, %v3302_v27  ;;  %v4535_v37 = vld [vmem:[#allocation6 + $0x1d4] sm:$0xf]  ;;  %v3352_v38 = vld [vmem:[#allocation6 + $0x1d8] sm:$0xf0]  ;;  %v3294_v39 = vld [vmem:[#allocation6 + $0x160] sm:$0xf] }
  0x41   :  { %465 = vmatpush.bf16.msra.mxu2 %v3119_v8  ;;  %v4522_v40 = vld [vmem:[#allocation6 + $0x164] sm:$0xf0]  ;;  %v4521_v42 = vld [vmem:[#allocation6 + $0x164] sm:$0xf]  ;;  %v3296_v43 = vld [vmem:[#allocation6 + $0x168] sm:$0xf0]  ;;  %v3355_v46 = vor.u32 %v4535_v37, %v3352_v38 }
  0x42   :  { %v3299_v45 = vor.u32 %v4521_v42, %v3296_v43  ;;  %v3342_v47 = vld [vmem:[#allocation6 + $0x1c0] sm:$0xf]  ;;  %v4534_v48 = vld [vmem:[#allocation6 + $0x1c4] sm:$0xf0]  ;;  %v4533_v49 = vld [vmem:[#allocation6 + $0x1c4] sm:$0xf] }
  0x43   :  { %487 = vmatpush.bf16.msrb.mxu0 %v3171_v19  ;;  %v4539_v19 = vld [vmem:[#allocation6 + $0x1f4] sm:$0xf]  ;;  %v3344_v50 = vld [vmem:[#allocation6 + $0x1c8] sm:$0xf0]  ;;  %v3343_v51 = vor.u32 %v4534_v48, %v3342_v47  ;;  %v134_v53 = vld [vmem:[#allocation4] sm:$0x3] }
  0x44   :  { %501 = vmatpush.bf16.msrb.mxu1 %v3235_v20  ;;  %479 = vmatpush.bf16.msra.mxu3 %v3183_v12  ;;  %v3367_v20 = vor.u32 %v4540_v18, %v3366_v17  ;;  %v3371_v24 = vor.u32 %v4539_v19, %v3368_v21  ;;  %v3347_v52 = vor.u32 %v4533_v49, %v3344_v50  ;;  %v137_v57 = vperm.slane %v134_v53, 1  ;;  %v3286_v6 = vld [vmem:[#allocation6 + $0x150] sm:$0xf]  ;;  %v4520_v7 = vld [vmem:[#allocation6 + $0x154] sm:$0xf0] }
  0x45   :  { %720 = vmatpush.bf16.msrb.mxu2 %v3303_v33  ;;  %v4519_v8 = vld [vmem:[#allocation6 + $0x154] sm:$0xf]  ;;  %v3287_v9 = vor.u32 %v4520_v7, %v3286_v6  ;;  %v3288_v10 = vld [vmem:[#allocation6 + $0x158] sm:$0xf0]  ;;  %v3334_v12 = vld [vmem:[#allocation6 + $0x1b0] sm:$0xf] }
  0x46   :  { %v3291_v11 = vor.u32 %v4519_v8, %v3288_v10  ;;  %v4531_v14 = vld [vmem:[#allocation6 + $0x1b4] sm:$0xf]  ;;  %v3278_v18 = vld [vmem:[#allocation6 + $0x140] sm:$0xf]  ;;  %v4518_v19 = vld [vmem:[#allocation6 + $0x144] sm:$0xf0] }
  0x47   :  { %488 = vmatpush.bf16.msrb.mxu0 %v3163_v25  ;;  %v4537_v25 = vld [vmem:[#allocation6 + $0x1e4] sm:$0xf]  ;;  %v3279_v21 = vor.u32 %v4518_v19, %v3278_v18  ;;  %v3280_v22 = vld [vmem:[#allocation6 + $0x148] sm:$0xf0]  ;;  %v4528_v37 = vld [vmem:[#allocation6 + $0x194] sm:$0xf0] }
  0x48   :  { %502 = vmatpush.bf16.msrb.mxu1 %v3227_v26  ;;  %v3360_v26 = vld [vmem:[#allocation6 + $0x1e8] sm:$0xf0]  ;;  %734 = vmatpush.bf16.msrb.mxu3 %v3367_v20  ;;  %v4517_v20 = vld [vmem:[#allocation6 + $0x144] sm:$0xf]  ;;  %v4527_v38 = vld [vmem:[#allocation6 + $0x194] sm:$0xf] }
  0x49   :  { %v3283_v23 = vor.u32 %v4517_v20, %v3280_v22  ;;  %v3262_v42 = vld [vmem:[#allocation6 + $0x120] sm:$0xf]  ;;  %v4514_v43 = vld [vmem:[#allocation6 + $0x124] sm:$0xf0]  ;;  %v4525_v50 = vld [vmem:[#allocation6 + $0x184] sm:$0xf] }
  0x4a   :  { %v3310_v48 = vld [vmem:[#allocation6 + $0x180] sm:$0xf]  ;;  %v4526_v49 = vld [vmem:[#allocation6 + $0x184] sm:$0xf0]  ;;  %v3496_v6 = vld [vmem:[#allocation6 + $0x2f8] sm:$0xf0] }
  0x4b   :  { %489 = vmatpush.bf16.msrb.mxu0 %v3155_v31  ;;  %v3304_v31 = vld [vmem:[#allocation6 + $0x178] sm:$0xf0]  ;;  %v3486_v7 = vld [vmem:[#allocation6 + $0x2e0] sm:$0xf]  ;;  %v4570_v8 = vld [vmem:[#allocation6 + $0x2e4] sm:$0xf0] }
  0x4c   :  { %503 = vmatpush.bf16.msrb.mxu1 %v3219_v32  ;;  %v3363_v32 = vor.u32 %v4537_v25, %v3360_v26  ;;  %v3307_v34 = vor.u32 %v4523_v30, %v3304_v31  ;;  %735 = vmatpush.bf16.msrb.mxu3 %v3359_v28  ;;  %v4530_v25 = vld [vmem:[#allocation6 + $0x1a4] sm:$0xf0]  ;;  %v4529_v26 = vld [vmem:[#allocation6 + $0x1a4] sm:$0xf]  ;;  %v3328_v28 = vld [vmem:[#allocation6 + $0x1a8] sm:$0xf0] }
  0x4d   :  { %v3331_v29 = vor.u32 %v4529_v26, %v3328_v28  ;;  %v3270_v30 = vld [vmem:[#allocation6 + $0x130] sm:$0xf]  ;;  %v4516_v31 = vld [vmem:[#allocation6 + $0x134] sm:$0xf0]  ;;  %v4569_v10 = vld [vmem:[#allocation6 + $0x2e4] sm:$0xf] }
  0x4e   :  { %v3271_v33 = vor.u32 %v4516_v31, %v3270_v30  ;;  %v292_v20 = vld [vmem:[#allocation7] sm:$0x3] }
  0x4f   :  { %490 = vmatpush.bf16.msrb.mxu0 %v3147_v41  ;;  %v3295_v41 = vor.u32 %v4522_v40, %v3294_v39  ;;  %v3320_v40 = vld [vmem:[#allocation6 + $0x198] sm:$0xf0]  ;;  %v295_v22 = vperm.slane %v292_v20, 1  ;;  %v294_v26 = vperm.slane %v292_v20, 0 }
  0x50   :  { %504 = vmatpush.bf16.msrb.mxu1 %v3211_v44  ;;  %v3351_v44 = vor.u32 %v4536_v36, %v3350_v35  ;;  %v3318_v36 = vld [vmem:[#allocation6 + $0x190] sm:$0xf] }
  0x51   :  { %721 = vmatpush.bf16.msrb.mxu2 %v3295_v41  ;;  %v3319_v39 = vor.u32 %v4528_v37, %v3318_v36  ;;  %v3323_v41 = vor.u32 %v4527_v38, %v3320_v40 }
  0x52   :  { %736 = vmatpush.bf16.msrb.mxu3 %v3351_v44  ;;  %v4513_v44 = vld [vmem:[#allocation6 + $0x124] sm:$0xf] }
  0x53   :  { %491 = vmatpush.bf16.msrb.mxu0 %v3139_v55 }
  0x54   :  { %505 = vmatpush.bf16.msrb.mxu1 %v3203_v56  ;;  %v136_v56 = vperm.slane %v134_v53, 0 }
  0x55   :  { %722 = vmatpush.bf16.msrb.mxu2 %v3287_v9 }
  0x56   :  { %737 = vmatpush.bf16.msrb.mxu3 %v3343_v51  ;;  %v3311_v51 = vor.u32 %v4526_v49, %v3310_v48  ;;  %v3480_v49 = vld [vmem:[#allocation6 + $0x2d8] sm:$0xf0] }
  0x57   :  { %492 = vmatpush.bf16.msrb.mxu0 %v3131_v1 }
  0x58   :  { %506 = vmatpush.bf16.msrb.mxu1 %v3195_v4 }
  0x59   :  { %723 = vmatpush.bf16.msrb.mxu2 %v3279_v21 }
  0x5b   :  { %493 = vmatpush.bf16.msrb.mxu0 %v3123_v13  ;;  %v4532_v13 = vld [vmem:[#allocation6 + $0x1b4] sm:$0xf0] }
  0x5c   :  { %507 = vmatpush.bf16.msrb.mxu1 %v3187_v16  ;;  %v3335_v15 = vor.u32 %v4532_v13, %v3334_v12  ;;  %v3336_v16 = vld [vmem:[#allocation6 + $0x1b8] sm:$0xf0]  ;;  %v3430_v12 = vld [vmem:[#allocation6 + $0x270] sm:$0xf]  ;;  %v3487_v13 = vor.u32 %v4570_v8, %v3486_v7  ;;  %v4563_v8 = vld [vmem:[#allocation6 + $0x2b4] sm:$0xf] }
  0x5d   :  { %v3339_v17 = vor.u32 %v4531_v14, %v3336_v16  ;;  %724 = vmatpush.bf16.msrb.mxu2 %v3271_v33  ;;  %v4556_v14 = vld [vmem:[#allocation6 + $0x274] sm:$0xf0]  ;;  %v3432_v16 = vld [vmem:[#allocation6 + $0x278] sm:$0xf0] }
  0x5e   :  { %738 = vmatpush.bf16.msrb.mxu3 %v3335_v15  ;;  %v4555_v15 = vld [vmem:[#allocation6 + $0x274] sm:$0xf]  ;;  %v3431_v18 = vor.u32 %v4556_v14, %v3430_v12  ;;  %v4550_v12 = vld [vmem:[#allocation6 + $0x244] sm:$0xf0] }
  0x5f   :  { %748 = vmatpush.bf16.msra.mxu0 %v3307_v34  ;;  %v3272_v34 = vld [vmem:[#allocation6 + $0x138] sm:$0xf0]  ;;  %v3435_v19 = vor.u32 %v4555_v15, %v3432_v16  ;;  %v3408_v15 = vld [vmem:[#allocation6 + $0x248] sm:$0xf0] }
  0x60   :  { %762 = vmatpush.bf16.msra.mxu1 %v3371_v24  ;;  %v3326_v24 = vld [vmem:[#allocation6 + $0x1a0] sm:$0xf] }
  0x61   :  { %v3327_v27 = vor.u32 %v4530_v25, %v3326_v24 }
  0x63   :  { %749 = vmatpush.bf16.msra.mxu0 %v3299_v45  ;;  %739 = vmatpush.bf16.msrb.mxu3 %v3327_v27  ;;  %v3263_v45 = vor.u32 %v4514_v43, %v3262_v42 }
  0x64   :  { %763 = vmatpush.bf16.msra.mxu1 %v3363_v32  ;;  %v4515_v32 = vld [vmem:[#allocation6 + $0x134] sm:$0xf] }
  0x65   :  { %v3275_v35 = vor.u32 %v4515_v32, %v3272_v34  ;;  %725 = vmatpush.bf16.msrb.mxu2 %v3263_v45  ;;  %v3478_v45 = vld [vmem:[#allocation6 + $0x2d0] sm:$0xf] }
  0x67   :  { %750 = vmatpush.bf16.msra.mxu0 %v3291_v11  ;;  %740 = vmatpush.bf16.msrb.mxu3 %v3319_v39  ;;  %v3488_v11 = vld [vmem:[#allocation6 + $0x2e8] sm:$0xf0] }
  0x68   :  { %764 = vmatpush.bf16.msra.mxu1 %v3355_v46  ;;  %v3264_v46 = vld [vmem:[#allocation6 + $0x128] sm:$0xf0] }
  0x69   :  { %v3267_v47 = vor.u32 %v4513_v44, %v3264_v46  ;;  %v4568_v46 = vld [vmem:[#allocation6 + $0x2d4] sm:$0xf0] }
  0x6a   :  { %v3479_v48 = vor.u32 %v4568_v46, %v3478_v45  ;;  %v3440_v45 = vld [vmem:[#allocation6 + $0x288] sm:$0xf0] }
  0x6b   :  { %751 = vmatpush.bf16.msra.mxu0 %v3283_v23  ;;  %741 = vmatpush.bf16.msrb.mxu3 %v3311_v51  ;;  %v3422_v51 = vld [vmem:[#allocation6 + $0x260] sm:$0xf] }
  0x6c   :  { %765 = vmatpush.bf16.msra.mxu1 %v3347_v52  ;;  %v3312_v52 = vld [vmem:[#allocation6 + $0x188] sm:$0xf0] }
  0x6d   :  { %v3315_v53 = vor.u32 %v4525_v50, %v3312_v52  ;;  %v4554_v52 = vld [vmem:[#allocation6 + $0x264] sm:$0xf0] }
  0x6f   :  { %752 = vmatpush.bf16.msra.mxu0 %v3275_v35 }
  0x70   :  { %766 = vmatpush.bf16.msra.mxu1 %v3339_v17  ;;  %v3491_v17 = vor.u32 %v4569_v10, %v3488_v11  ;;  %v3406_v11 = vld [vmem:[#allocation6 + $0x240] sm:$0xf] }
  0x71   :  { %v3407_v14 = vor.u32 %v4550_v12, %v3406_v11 }
  0x73   :  { %753 = vmatpush.bf16.msra.mxu0 %v3267_v47  ;;  %v4567_v47 = vld [vmem:[#allocation6 + $0x2d4] sm:$0xf] }
  0x74   :  { %767 = vmatpush.bf16.msra.mxu1 %v3331_v29  ;;  %v3483_v50 = vor.u32 %v4567_v47, %v3480_v49  ;;  %v3382_v47 = vld [vmem:[#allocation6 + $0x210] sm:$0xf]  ;;  %v4543_v49 = vld [vmem:[#allocation6 + $0x214] sm:$0xf] }
  0x78   :  { %768 = vmatpush.bf16.msra.mxu1 %v3323_v41 }
  0x7c   :  { %769 = vmatpush.bf16.msra.mxu1 %v3315_v53  ;;  %v4553_v53 = vld [vmem:[#allocation6 + $0x264] sm:$0xf] }
  0xbb   :  { %v235_v54 = vpop.f32.mrf.mxu0 }
  0xbc   :  { %v249_v55 = vpop.f32.mrf.mxu1  ;;  %v236_v58 = vadd.f32 %v235_v54, %v136_v56  ;;  %v3254_v54 = vld [vmem:[#allocation6 + $0x110] sm:$0xf] }
  0xbd   :  { %v250_v59 = vadd.f32 %v249_v55, %v137_v57  ;;  %v4512_v55 = vld [vmem:[#allocation6 + $0x114] sm:$0xf0] }
  0xbe   :  { %v254_v0 = vmax.f32 %v236_v58, 0.0  ;;  %v3256_v58 = vld [vmem:[#allocation6 + $0x118] sm:$0xf0] }
  0xbf   :  { %v255_v2 = vmax.f32 %v250_v59, 0.0 }
  0xc3   :  { %v237_v60 = vpop.f32.mrf.mxu0 }
  0xc4   :  { %v238_v61 = vadd.f32 %v237_v60, %v136_v56  ;;  %v251_v62 = vpop.f32.mrf.mxu1  ;;  %v4511_v56 = vld [vmem:[#allocation6 + $0x114] sm:$0xf]  ;;  %v3246_v60 = vld [vmem:[#allocation6 + $0x100] sm:$0xf] }
  0xc5   :  { %v252_v63 = vadd.f32 %v251_v62, %v137_v57  ;;  %v3255_v57 = vor.u32 %v4512_v55, %v3254_v54  ;;  %v3259_v59 = vor.u32 %v4511_v56, %v3256_v58  ;;  %v4509_v62 = vld [vmem:[#allocation6 + $0x104] sm:$0xf]  ;;  %v3423_v54 = vor.u32 %v4554_v52, %v3422_v51  ;;  %v3424_v55 = vld [vmem:[#allocation6 + $0x268] sm:$0xf0]  ;;  %v3470_v56 = vld [vmem:[#allocation6 + $0x2c0] sm:$0xf] }
  0xc6   :  { %v256_v1 = vmax.f32 %v238_v61, 0.0  ;;  %v4510_v61 = vld [vmem:[#allocation6 + $0x104] sm:$0xf0]  ;;  %v3427_v58 = vor.u32 %v4553_v53, %v3424_v55  ;;  %v3384_v51 = vld [vmem:[#allocation6 + $0x218] sm:$0xf0] }
  0xc7   :  { %v257_v3 = vmax.f32 %v252_v63, 0.0  ;;  %726 = vmatpush.bf16.msrb.mxu2 %v3255_v57  ;;  %754 = vmatpush.bf16.msra.mxu0 %v3259_v59  ;;  %v3247_v63 = vor.u32 %v4510_v61, %v3246_v60  ;;  %v4566_v57 = vld [vmem:[#allocation6 + $0x2c4] sm:$0xf0]  ;;  %v4565_v60 = vld [vmem:[#allocation6 + $0x2c4] sm:$0xf]  ;;  %v3387_v52 = vor.u32 %v4543_v49, %v3384_v51 }
  0xc8   :  { %v258_v4 = vpack.c.bf16 %v256_v1, %v254_v0  ;;  %v3248_v0 = vld [vmem:[#allocation6 + $0x108] sm:$0xf0]  ;;  %v3471_v59 = vor.u32 %v4566_v57, %v3470_v56  ;;  %v3374_v53 = vld [vmem:[#allocation6 + $0x200] sm:$0xf]  ;;  %v4541_v55 = vld [vmem:[#allocation6 + $0x204] sm:$0xf] }
  0xc9   :  { %v259_v5 = vpack.c.bf16 %v257_v3, %v255_v2  ;;  %v3251_v1 = vor.u32 %v4509_v62, %v3248_v0  ;;  %v3494_v2 = vld [vmem:[#allocation6 + $0x2f0] sm:$0xf]  ;;  %v4572_v3 = vld [vmem:[#allocation6 + $0x2f4] sm:$0xf0]  ;;  %v3472_v61 = vld [vmem:[#allocation6 + $0x2c8] sm:$0xf0] }
  0xca   :  { %466 = vmatmul.bf16.vlgmr.msra.gmra.mxu2 %v258_v4  ;;  %494 = vmatmul.bf16.vlgmr.msrb.gmra.mxu0 %v258_v4  ;;  %v4571_v4 = vld [vmem:[#allocation6 + $0x2f4] sm:$0xf]  ;;  %v3475_v62 = vor.u32 %v4565_v60, %v3472_v61  ;;  %v4552_v0 = vld [vmem:[#allocation6 + $0x254] sm:$0xf0]  ;;  %v3376_v57 = vld [vmem:[#allocation6 + $0x208] sm:$0xf0] }
  0xcb   :  { %480 = vmatmul.bf16.vlgmr.msra.gmra.mxu3 %v259_v5  ;;  %508 = vmatmul.bf16.vlgmr.msrb.gmra.mxu1 %v259_v5  ;;  %v3495_v5 = vor.u32 %v4572_v3, %v3494_v2  ;;  %v3499_v9 = vor.u32 %v4571_v4, %v3496_v6  ;;  %v3416_v3 = vld [vmem:[#allocation6 + $0x258] sm:$0xf0]  ;;  %v4564_v6 = vld [vmem:[#allocation6 + $0x2b4] sm:$0xf0]  ;;  %v4603_v61 = vld [vmem:[#allocation6 + $0x3f4] sm:$0xf] }
  0xcc   :  { %727 = vmatpush.bf16.msrb.mxu2 %v3247_v63  ;;  %755 = vmatpush.bf16.msra.mxu0 %v3251_v1  ;;  %v3414_v63 = vld [vmem:[#allocation6 + $0x250] sm:$0xf]  ;;  %v4551_v1 = vld [vmem:[#allocation6 + $0x254] sm:$0xf]  ;;  %v4604_v60 = vld [vmem:[#allocation6 + $0x3f4] sm:$0xf0] }
  0xcd   :  { %996 = vmatpush.bf16.msra.mxu3 %v3495_v5  ;;  %1024 = vmatpush.bf16.msrb.mxu1 %v3499_v9  ;;  %v3415_v2 = vor.u32 %v4552_v0, %v3414_v63  ;;  %v3419_v4 = vor.u32 %v4551_v1, %v3416_v3  ;;  %v3462_v5 = vld [vmem:[#allocation6 + $0x2b0] sm:$0xf]  ;;  %v3464_v9 = vld [vmem:[#allocation6 + $0x2b8] sm:$0xf0]  ;;  %v3614_v0 = vld [vmem:[#allocation6 + $0x3e0] sm:$0xf] }
  0xce   :  { %v3463_v7 = vor.u32 %v4564_v6, %v3462_v5  ;;  %v3467_v10 = vor.u32 %v4563_v8, %v3464_v9  ;;  %v3624_v63 = vld [vmem:[#allocation6 + $0x3f8] sm:$0xf0]  ;;  %v4602_v1 = vld [vmem:[#allocation6 + $0x3e4] sm:$0xf0]  ;;  %v4601_v3 = vld [vmem:[#allocation6 + $0x3e4] sm:$0xf] }
  0xcf   :  { %v3558_v5 = vld [vmem:[#allocation6 + $0x370] sm:$0xf]  ;;  %v3615_v6 = vor.u32 %v4602_v1, %v3614_v0  ;;  %v4587_v8 = vld [vmem:[#allocation6 + $0x374] sm:$0xf]  ;;  %v3560_v9 = vld [vmem:[#allocation6 + $0x378] sm:$0xf0] }
  0xd0   :  { %982 = vmatpush.bf16.msra.mxu2 %v3431_v18  ;;  %1010 = vmatpush.bf16.msrb.mxu0 %v3435_v19  ;;  %v4562_v18 = vld [vmem:[#allocation6 + $0x2a4] sm:$0xf0]  ;;  %v4561_v19 = vld [vmem:[#allocation6 + $0x2a4] sm:$0xf]  ;;  %v3563_v12 = vor.u32 %v4587_v8, %v3560_v9  ;;  %v3598_v49 = vld [vmem:[#allocation6 + $0x3c0] sm:$0xf] }
  0xd1   :  { %997 = vmatpush.bf16.msra.mxu3 %v3487_v13  ;;  %1025 = vmatpush.bf16.msrb.mxu1 %v3491_v17  ;;  %v4549_v13 = vld [vmem:[#allocation6 + $0x244] sm:$0xf]  ;;  %v3454_v17 = vld [vmem:[#allocation6 + $0x2a0] sm:$0xf]  ;;  %v4595_v1 = vld [vmem:[#allocation6 + $0x3b4] sm:$0xf] }
  0xd2   :  { %v3411_v16 = vor.u32 %v4549_v13, %v3408_v15  ;;  %v3455_v20 = vor.u32 %v4562_v18, %v3454_v17  ;;  %v554_v13 = vld [vmem:[#allocation7 + $0x2] sm:$0x3]  ;;  %v3536_v8 = vld [vmem:[#allocation6 + $0x348] sm:$0xf0] }
  0xd4   :  { %983 = vmatpush.bf16.msra.mxu2 %v3423_v54  ;;  %1011 = vmatpush.bf16.msrb.mxu0 %v3427_v58  ;;  %v4542_v54 = vld [vmem:[#allocation6 + $0x204] sm:$0xf0]  ;;  %v3379_v58 = vor.u32 %v4541_v55, %v3376_v57  ;;  %v4584_v57 = vld [vmem:[#allocation6 + $0x354] sm:$0xf0] }
  0xd5   :  { %998 = vmatpush.bf16.msra.mxu3 %v3479_v48  ;;  %1026 = vmatpush.bf16.msrb.mxu1 %v3483_v50  ;;  %v4544_v48 = vld [vmem:[#allocation6 + $0x214] sm:$0xf0]  ;;  %v3375_v56 = vor.u32 %v4542_v54, %v3374_v53  ;;  %v4597_v53 = vld [vmem:[#allocation6 + $0x3c4] sm:$0xf]  ;;  %v3600_v54 = vld [vmem:[#allocation6 + $0x3c8] sm:$0xf0] }
  0xd6   :  { %v3383_v50 = vor.u32 %v4544_v48, %v3382_v47  ;;  %v3552_v48 = vld [vmem:[#allocation6 + $0x368] sm:$0xf0]  ;;  %v3603_v55 = vor.u32 %v4597_v53, %v3600_v54  ;;  %v4636_v53 = vld [vmem:[#allocation6 + $0x4f4] sm:$0xf0]  ;;  %v4635_v54 = vld [vmem:[#allocation6 + $0x4f4] sm:$0xf] }
  0xd8   :  { %984 = vmatpush.bf16.msra.mxu2 %v3415_v2  ;;  %1012 = vmatpush.bf16.msrb.mxu0 %v3419_v4  ;;  %v3627_v2 = vor.u32 %v4603_v61, %v3624_v63  ;;  %v3616_v4 = vld [vmem:[#allocation6 + $0x3e8] sm:$0xf0]  ;;  %v4596_v63 = vld [vmem:[#allocation6 + $0x3b4] sm:$0xf0] }
  0xd9   :  { %999 = vmatpush.bf16.msra.mxu3 %v3471_v59  ;;  %1027 = vmatpush.bf16.msrb.mxu1 %v3475_v62  ;;  %v3622_v59 = vld [vmem:[#allocation6 + $0x3f0] sm:$0xf] }
  0xda   :  { %v3623_v62 = vor.u32 %v4604_v60, %v3622_v59  ;;  %v3544_v60 = vld [vmem:[#allocation6 + $0x358] sm:$0xf0] }
  0xdc   :  { %985 = vmatpush.bf16.msra.mxu2 %v3407_v14  ;;  %1013 = vmatpush.bf16.msrb.mxu0 %v3411_v16  ;;  %v557_v16 = vperm.slane %v554_v13, 1 }
  0xdd   :  { %1000 = vmatpush.bf16.msra.mxu3 %v3463_v7  ;;  %1028 = vmatpush.bf16.msrb.mxu1 %v3467_v10  ;;  %v4588_v7 = vld [vmem:[#allocation6 + $0x374] sm:$0xf0]  ;;  %v3619_v10 = vor.u32 %v4601_v3, %v3616_v4  ;;  %v3534_v4 = vld [vmem:[#allocation6 + $0x340] sm:$0xf] }
  0xde   :  { %v3559_v11 = vor.u32 %v4588_v7, %v3558_v5  ;;  %v4582_v5 = vld [vmem:[#allocation6 + $0x344] sm:$0xf0] }
  0xdf   :  { %v3535_v7 = vor.u32 %v4582_v5, %v3534_v4 }
  0xe1   :  { %1001 = vmatpush.bf16.msra.mxu3 %v3455_v20  ;;  %v556_v20 = vperm.slane %v554_v13, 0 }
 0x147   :  { %v495_v21 = vpop.f32.mrf.mxu0 }
 0x148   :  { %v509_v23 = vpop.f32.mrf.mxu1  ;;  %v496_v24 = vadd.f32 %v495_v21, %v295_v22  ;;  %v3456_v21 = vld [vmem:[#allocation6 + $0x2a8] sm:$0xf0] }
 0x14a   :  { %v510_v29 = vadd.f32 %v509_v23, %v496_v24  ;;  %v3398_v23 = vld [vmem:[#allocation6 + $0x230] sm:$0xf]  ;;  %v4548_v24 = vld [vmem:[#allocation6 + $0x234] sm:$0xf0] }
 0x14c   :  { %v515_v34 = vmax.f32 %v510_v29, 0.0  ;;  %v3446_v29 = vld [vmem:[#allocation6 + $0x290] sm:$0xf] }
 0x14d   :  { %v467_v25 = vpop.f32.mrf.mxu2 }
 0x14e   :  { %v481_v27 = vpop.f32.mrf.mxu3  ;;  %v468_v32 = vadd.f32 %v467_v25, %v294_v26  ;;  %v4547_v25 = vld [vmem:[#allocation6 + $0x234] sm:$0xf] }
 0x14f   :  { %v497_v28 = vpop.f32.mrf.mxu0 }
 0x150   :  { %v498_v30 = vadd.f32 %v497_v28, %v295_v22  ;;  %v511_v31 = vpop.f32.mrf.mxu1  ;;  %v482_v37 = vadd.f32 %v481_v27, %v468_v32  ;;  %v3459_v22 = vor.u32 %v4561_v19, %v3456_v21  ;;  %v3400_v27 = vld [vmem:[#allocation6 + $0x238] sm:$0xf0] }
 0x151   :  { %v3403_v28 = vor.u32 %v4547_v25, %v3400_v27 }
 0x152   :  { %v512_v33 = vadd.f32 %v511_v31, %v498_v30  ;;  %v514_v42 = vmax.f32 %v482_v37, 0.0  ;;  %1029 = vmatpush.bf16.msrb.mxu1 %v3459_v22  ;;  %v4560_v30 = vld [vmem:[#allocation6 + $0x294] sm:$0xf0]  ;;  %v4559_v31 = vld [vmem:[#allocation6 + $0x294] sm:$0xf] }
 0x153   :  { %v3447_v32 = vor.u32 %v4560_v30, %v3446_v29  ;;  %1014 = vmatpush.bf16.msrb.mxu0 %v3403_v28  ;;  %v4545_v37 = vld [vmem:[#allocation6 + $0x224] sm:$0xf] }
 0x154   :  { %v517_v35 = vmax.f32 %v512_v33, 0.0  ;;  %v3448_v33 = vld [vmem:[#allocation6 + $0x298] sm:$0xf0] }
 0x155   :  { %v469_v36 = vpop.f32.mrf.mxu2  ;;  %1002 = vmatpush.bf16.msra.mxu3 %v3447_v32 }
 0x156   :  { %v519_v38 = vpack.c.bf16 %v517_v35, %v515_v34  ;;  %v470_v39 = vadd.f32 %v469_v36, %v294_v26  ;;  %v483_v40 = vpop.f32.mrf.mxu3  ;;  %v3399_v26 = vor.u32 %v4548_v24, %v3398_v23  ;;  %v3451_v34 = vor.u32 %v4559_v31, %v3448_v33  ;;  %v3390_v35 = vld [vmem:[#allocation6 + $0x220] sm:$0xf]  ;;  %v4546_v36 = vld [vmem:[#allocation6 + $0x224] sm:$0xf0] }
 0x158   :  { %v484_v41 = vadd.f32 %v483_v40, %v470_v39  ;;  %742 = vmatmul.bf16.vlgmr.msrb.gmra.mxu3 %v519_v38  ;;  %770 = vmatmul.bf16.vlgmr.msra.gmra.mxu1 %v519_v38  ;;  %v3391_v38 = vor.u32 %v4546_v36, %v3390_v35  ;;  %v3392_v39 = vld [vmem:[#allocation6 + $0x228] sm:$0xf0] }
 0x159   :  { %986 = vmatpush.bf16.msra.mxu2 %v3399_v26  ;;  %1030 = vmatpush.bf16.msrb.mxu1 %v3451_v34  ;;  %v3395_v40 = vor.u32 %v4545_v37, %v3392_v39  ;;  %v4600_v39 = vld [vmem:[#allocation6 + $0x3d4] sm:$0xf0] }
 0x15a   :  { %v516_v43 = vmax.f32 %v484_v41, 0.0  ;;  %v3438_v41 = vld [vmem:[#allocation6 + $0x280] sm:$0xf] }
 0x15b   :  { %1015 = vmatpush.bf16.msrb.mxu0 %v3395_v40  ;;  %v4599_v40 = vld [vmem:[#allocation6 + $0x3d4] sm:$0xf] }
 0x15c   :  { %v518_v44 = vpack.c.bf16 %v516_v43, %v514_v42  ;;  %v4558_v42 = vld [vmem:[#allocation6 + $0x284] sm:$0xf0]  ;;  %v4557_v43 = vld [vmem:[#allocation6 + $0x284] sm:$0xf] }
 0x15d   :  { %987 = vmatpush.bf16.msra.mxu2 %v3391_v38  ;;  %v3443_v46 = vor.u32 %v4557_v43, %v3440_v45  ;;  %v3606_v38 = vld [vmem:[#allocation6 + $0x3d0] sm:$0xf]  ;;  %v4586_v45 = vld [vmem:[#allocation6 + $0x364] sm:$0xf0] }
 0x15e   :  { %728 = vmatmul.bf16.vlgmr.msrb.gmra.mxu2 %v518_v44  ;;  %756 = vmatmul.bf16.vlgmr.msra.gmra.mxu0 %v518_v44  ;;  %v3439_v44 = vor.u32 %v4558_v42, %v3438_v41  ;;  %v3607_v41 = vor.u32 %v4600_v39, %v3606_v38  ;;  %v3608_v42 = vld [vmem:[#allocation6 + $0x3d8] sm:$0xf0]  ;;  %v3568_v38 = vld [vmem:[#allocation6 + $0x388] sm:$0xf0] }
 0x15f   :  { %1031 = vmatpush.bf16.msrb.mxu1 %v3443_v46  ;;  %1016 = vmatpush.bf16.msrb.mxu0 %v3387_v52  ;;  %v3611_v43 = vor.u32 %v4599_v40, %v3608_v42  ;;  %v4585_v46 = vld [vmem:[#allocation6 + $0x364] sm:$0xf]  ;;  %v3510_v40 = vld [vmem:[#allocation6 + $0x310] sm:$0xf]  ;;  %v4575_v42 = vld [vmem:[#allocation6 + $0x314] sm:$0xf] }
 0x160   :  { %1003 = vmatpush.bf16.msra.mxu3 %v3439_v44  ;;  %v3550_v44 = vld [vmem:[#allocation6 + $0x360] sm:$0xf]  ;;  %v3555_v51 = vor.u32 %v4585_v46, %v3552_v48  ;;  %v4573_v48 = vld [vmem:[#allocation6 + $0x304] sm:$0xf] }
 0x161   :  { %988 = vmatpush.bf16.msra.mxu2 %v3383_v50  ;;  %v3551_v47 = vor.u32 %v4586_v45, %v3550_v44  ;;  %v4598_v50 = vld [vmem:[#allocation6 + $0x3c4] sm:$0xf0]  ;;  %v3512_v44 = vld [vmem:[#allocation6 + $0x318] sm:$0xf0]  ;;  %v3502_v46 = vld [vmem:[#allocation6 + $0x300] sm:$0xf] }
 0x162   :  { %v3599_v52 = vor.u32 %v4598_v50, %v3598_v49  ;;  %v3515_v45 = vor.u32 %v4575_v42, %v3512_v44  ;;  %v3504_v50 = vld [vmem:[#allocation6 + $0x308] sm:$0xf0]  ;;  %v3726_v42 = vld [vmem:[#allocation6 + $0x4c0] sm:$0xf] }
 0x163   :  { %1017 = vmatpush.bf16.msrb.mxu0 %v3379_v58  ;;  %1286 = vmatpush.bf16.msra.mxu1 %v3627_v2  ;;  %v4583_v58 = vld [vmem:[#allocation6 + $0x354] sm:$0xf]  ;;  %v3592_v2 = vld [vmem:[#allocation6 + $0x3b8] sm:$0xf0] }
 0x164   :  { %1258 = vmatpush.bf16.msrb.mxu3 %v3623_v62  ;;  %v3547_v61 = vor.u32 %v4583_v58, %v3544_v60  ;;  %v3590_v62 = vld [vmem:[#allocation6 + $0x3b0] sm:$0xf]  ;;  %v3595_v3 = vor.u32 %v4595_v1, %v3592_v2  ;;  %v4634_v58 = vld [vmem:[#allocation6 + $0x4e4] sm:$0xf0]  ;;  %v4633_v60 = vld [vmem:[#allocation6 + $0x4e4] sm:$0xf] }
 0x165   :  { %989 = vmatpush.bf16.msra.mxu2 %v3375_v56  ;;  %v3542_v56 = vld [vmem:[#allocation6 + $0x350] sm:$0xf]  ;;  %v3591_v0 = vor.u32 %v4596_v63, %v3590_v62  ;;  %v4619_v1 = vld [vmem:[#allocation6 + $0x474] sm:$0xf]  ;;  %v3688_v2 = vld [vmem:[#allocation6 + $0x478] sm:$0xf0] }
 0x166   :  { %v3543_v59 = vor.u32 %v4584_v57, %v3542_v56  ;;  %v3752_v56 = vld [vmem:[#allocation6 + $0x4f8] sm:$0xf0]  ;;  %v3742_v57 = vld [vmem:[#allocation6 + $0x4e0] sm:$0xf]  ;;  %v3686_v62 = vld [vmem:[#allocation6 + $0x470] sm:$0xf]  ;;  %v3691_v5 = vor.u32 %v4619_v1, %v3688_v2 }
 0x167   :  { %1272 = vmatpush.bf16.msra.mxu0 %v3563_v12  ;;  %1287 = vmatpush.bf16.msra.mxu1 %v3619_v10  ;;  %v3582_v10 = vld [vmem:[#allocation6 + $0x3a0] sm:$0xf]  ;;  %v4593_v12 = vld [vmem:[#allocation6 + $0x3a4] sm:$0xf]  ;;  %v3743_v63 = vor.u32 %v4634_v58, %v3742_v57  ;;  %v4627_v58 = vld [vmem:[#allocation6 + $0x4b4] sm:$0xf] }
 0x168   :  { %1259 = vmatpush.bf16.msrb.mxu3 %v3615_v6  ;;  %v4581_v6 = vld [vmem:[#allocation6 + $0x344] sm:$0xf]  ;;  %v3664_v1 = vld [vmem:[#allocation6 + $0x448] sm:$0xf0] }
 0x169   :  { %1244 = vmatpush.bf16.msrb.mxu2 %v3559_v11  ;;  %v3539_v9 = vor.u32 %v4581_v6, %v3536_v8  ;;  %v4594_v11 = vld [vmem:[#allocation6 + $0x3a4] sm:$0xf0]  ;;  %v816_v6 = vld [vmem:[#allocation7 + $0x4] sm:$0x3] }
 0x16a   :  { %v3583_v13 = vor.u32 %v4594_v11, %v3582_v10 }
 0x16b   :  { %1288 = vmatpush.bf16.msra.mxu1 %v3611_v43  ;;  %1273 = vmatpush.bf16.msra.mxu0 %v3555_v51  ;;  %v3507_v51 = vor.u32 %v4573_v48, %v3504_v50  ;;  %v4616_v50 = vld [vmem:[#allocation6 + $0x454] sm:$0xf0] }
 0x16c   :  { %1260 = vmatpush.bf16.msrb.mxu3 %v3607_v41  ;;  %v4576_v41 = vld [vmem:[#allocation6 + $0x314] sm:$0xf0] }
 0x16d   :  { %1245 = vmatpush.bf16.msrb.mxu2 %v3551_v47  ;;  %v3511_v43 = vor.u32 %v4576_v41, %v3510_v40  ;;  %v4574_v47 = vld [vmem:[#allocation6 + $0x304] sm:$0xf0]  ;;  %v3680_v41 = vld [vmem:[#allocation6 + $0x468] sm:$0xf0] }
 0x16e   :  { %v3503_v49 = vor.u32 %v4574_v47, %v3502_v46  ;;  %v4629_v46 = vld [vmem:[#allocation6 + $0x4c4] sm:$0xf]  ;;  %v3728_v47 = vld [vmem:[#allocation6 + $0x4c8] sm:$0xf0] }
 0x16f   :  { %1289 = vmatpush.bf16.msra.mxu1 %v3603_v55  ;;  %1274 = vmatpush.bf16.msra.mxu0 %v3547_v61  ;;  %v3744_v61 = vld [vmem:[#allocation6 + $0x4e8] sm:$0xf0]  ;;  %v3731_v48 = vor.u32 %v4629_v46, %v3728_v47  ;;  %v4668_v46 = vld [vmem:[#allocation6 + $0x5f4] sm:$0xf0]  ;;  %v4667_v47 = vld [vmem:[#allocation6 + $0x5f4] sm:$0xf] }
 0x170   :  { %1261 = vmatpush.bf16.msrb.mxu3 %v3599_v52  ;;  %v3750_v52 = vld [vmem:[#allocation6 + $0x4f0] sm:$0xf] }
 0x171   :  { %1246 = vmatpush.bf16.msrb.mxu2 %v3543_v59  ;;  %v3751_v55 = vor.u32 %v4636_v53, %v3750_v52  ;;  %v3755_v59 = vor.u32 %v4635_v54, %v3752_v56  ;;  %v3672_v53 = vld [vmem:[#allocation6 + $0x458] sm:$0xf0]  ;;  %v4628_v56 = vld [vmem:[#allocation6 + $0x4b4] sm:$0xf0] }
 0x173   :  { %1290 = vmatpush.bf16.msra.mxu1 %v3595_v3  ;;  %1275 = vmatpush.bf16.msra.mxu0 %v3539_v9  ;;  %v3747_v3 = vor.u32 %v4633_v60, %v3744_v61  ;;  %v819_v9 = vperm.slane %v816_v6, 1  ;;  %v3662_v61 = vld [vmem:[#allocation6 + $0x440] sm:$0xf] }
 0x174   :  { %1262 = vmatpush.bf16.msrb.mxu3 %v3591_v0  ;;  %v4620_v0 = vld [vmem:[#allocation6 + $0x474] sm:$0xf0] }
 0x175   :  { %1247 = vmatpush.bf16.msrb.mxu2 %v3535_v7  ;;  %v3687_v4 = vor.u32 %v4620_v0, %v3686_v62  ;;  %v4614_v62 = vld [vmem:[#allocation6 + $0x444] sm:$0xf0] }
 0x176   :  { %v3663_v0 = vor.u32 %v4614_v62, %v3662_v61 }
 0x178   :  { %1263 = vmatpush.bf16.msrb.mxu3 %v3583_v13  ;;  %v818_v13 = vperm.slane %v816_v6, 0 }
 0x1d5   :  { %v771_v14 = vpop.f32.mrf.mxu1 }
 0x1db   :  { %v757_v15 = vpop.f32.mrf.mxu0  ;;  %v743_v18 = vpop.f32.mrf.mxu3 }
 0x1dc   :  { %v758_v17 = vadd.f32 %v757_v15, %v557_v16 }
 0x1dd   :  { %v773_v24 = vpop.f32.mrf.mxu1 }
 0x1de   :  { %v772_v22 = vadd.f32 %v771_v14, %v758_v17  ;;  %v3584_v14 = vld [vmem:[#allocation6 + $0x3a8] sm:$0xf0]  ;;  %v4580_v17 = vld [vmem:[#allocation6 + $0x334] sm:$0xf0] }
 0x1df   :  { %v3587_v15 = vor.u32 %v4593_v12, %v3584_v14 }
 0x1e0   :  { %v777_v27 = vmax.f32 %v772_v22, 0.0  ;;  %v3574_v22 = vld [vmem:[#allocation6 + $0x390] sm:$0xf] }
 0x1e1   :  { %v729_v19 = vpop.f32.mrf.mxu2  ;;  %1291 = vmatpush.bf16.msra.mxu1 %v3587_v15 }
 0x1e2   :  { %v730_v25 = vadd.f32 %v729_v19, %v556_v20 }
 0x1e3   :  { %v759_v21 = vpop.f32.mrf.mxu0  ;;  %v745_v33 = vpop.f32.mrf.mxu3 }
 0x1e4   :  { %v760_v23 = vadd.f32 %v759_v21, %v557_v16  ;;  %v744_v30 = vadd.f32 %v743_v18, %v730_v25  ;;  %v3526_v16 = vld [vmem:[#allocation6 + $0x330] sm:$0xf]  ;;  %v4579_v18 = vld [vmem:[#allocation6 + $0x334] sm:$0xf] }
 0x1e5   :  { %v3527_v19 = vor.u32 %v4580_v17, %v3526_v16 }
 0x1e6   :  { %v774_v26 = vadd.f32 %v773_v24, %v760_v23  ;;  %v776_v35 = vmax.f32 %v744_v30, 0.0  ;;  %v4592_v23 = vld [vmem:[#allocation6 + $0x394] sm:$0xf0]  ;;  %v4591_v24 = vld [vmem:[#allocation6 + $0x394] sm:$0xf] }
 0x1e7   :  { %1248 = vmatpush.bf16.msrb.mxu2 %v3527_v19  ;;  %v3575_v25 = vor.u32 %v4592_v23, %v3574_v22  ;;  %v4577_v30 = vld [vmem:[#allocation6 + $0x324] sm:$0xf] }
 0x1e8   :  { %v779_v28 = vmax.f32 %v774_v26, 0.0  ;;  %v3576_v26 = vld [vmem:[#allocation6 + $0x398] sm:$0xf0] }
 0x1e9   :  { %v731_v29 = vpop.f32.mrf.mxu2  ;;  %1264 = vmatpush.bf16.msrb.mxu3 %v3575_v25 }
 0x1ea   :  { %v781_v31 = vpack.c.bf16 %v779_v28, %v777_v27  ;;  %v732_v32 = vadd.f32 %v731_v29, %v556_v20  ;;  %v3528_v20 = vld [vmem:[#allocation6 + $0x338] sm:$0xf0]  ;;  %v3579_v27 = vor.u32 %v4591_v24, %v3576_v26  ;;  %v3518_v28 = vld [vmem:[#allocation6 + $0x320] sm:$0xf]  ;;  %v4578_v29 = vld [vmem:[#allocation6 + $0x324] sm:$0xf0] }
 0x1eb   :  { %v3531_v21 = vor.u32 %v4579_v18, %v3528_v20 }
 0x1ec   :  { %v746_v34 = vadd.f32 %v745_v33, %v732_v32  ;;  %1004 = vmatmul.bf16.vlgmr.msra.gmra.mxu3 %v781_v31  ;;  %1032 = vmatmul.bf16.vlgmr.msrb.gmra.mxu1 %v781_v31  ;;  %v3519_v31 = vor.u32 %v4578_v29, %v3518_v28  ;;  %v3520_v32 = vld [vmem:[#allocation6 + $0x328] sm:$0xf0] }
 0x1ed   :  { %1276 = vmatpush.bf16.msra.mxu0 %v3531_v21  ;;  %1292 = vmatpush.bf16.msra.mxu1 %v3579_v27  ;;  %v3523_v33 = vor.u32 %v4577_v30, %v3520_v32  ;;  %v4632_v32 = vld [vmem:[#allocation6 + $0x4d4] sm:$0xf0] }
 0x1ee   :  { %v778_v36 = vmax.f32 %v746_v34, 0.0  ;;  %v3566_v34 = vld [vmem:[#allocation6 + $0x380] sm:$0xf]  ;;  %1249 = vmatpush.bf16.msrb.mxu2 %v3519_v31  ;;  %v3734_v31 = vld [vmem:[#allocation6 + $0x4d0] sm:$0xf] }
 0x1f0   :  { %v780_v37 = vpack.c.bf16 %v778_v36, %v776_v35  ;;  %v4590_v35 = vld [vmem:[#allocation6 + $0x384] sm:$0xf0]  ;;  %v4589_v36 = vld [vmem:[#allocation6 + $0x384] sm:$0xf] }
 0x1f1   :  { %1277 = vmatpush.bf16.msra.mxu0 %v3523_v33  ;;  %v3571_v39 = vor.u32 %v4589_v36, %v3568_v38  ;;  %v4631_v33 = vld [vmem:[#allocation6 + $0x4d4] sm:$0xf]  ;;  %v4618_v38 = vld [vmem:[#allocation6 + $0x464] sm:$0xf0] }
 0x1f2   :  { %990 = vmatmul.bf16.vlgmr.msra.gmra.mxu2 %v780_v37  ;;  %1018 = vmatmul.bf16.vlgmr.msrb.gmra.mxu0 %v780_v37  ;;  %v3567_v37 = vor.u32 %v4590_v35, %v3566_v34  ;;  %v3735_v34 = vor.u32 %v4632_v32, %v3734_v31  ;;  %v3736_v35 = vld [vmem:[#allocation6 + $0x4d8] sm:$0xf0]  ;;  %v3696_v31 = vld [vmem:[#allocation6 + $0x488] sm:$0xf0] }
 0x1f3   :  { %1293 = vmatpush.bf16.msra.mxu1 %v3571_v39  ;;  %1250 = vmatpush.bf16.msrb.mxu2 %v3511_v43  ;;  %v3739_v36 = vor.u32 %v4631_v33, %v3736_v35  ;;  %v4617_v39 = vld [vmem:[#allocation6 + $0x464] sm:$0xf]  ;;  %v4630_v43 = vld [vmem:[#allocation6 + $0x4c4] sm:$0xf0]  ;;  %v3638_v33 = vld [vmem:[#allocation6 + $0x410] sm:$0xf] }
 0x1f4   :  { %1265 = vmatpush.bf16.msrb.mxu3 %v3567_v37  ;;  %v3678_v37 = vld [vmem:[#allocation6 + $0x460] sm:$0xf]  ;;  %v3683_v44 = vor.u32 %v4617_v39, %v3680_v41  ;;  %v4607_v35 = vld [vmem:[#allocation6 + $0x414] sm:$0xf]  ;;  %v4605_v41 = vld [vmem:[#allocation6 + $0x404] sm:$0xf] }
 0x1f5   :  { %1278 = vmatpush.bf16.msra.mxu0 %v3515_v45  ;;  %v3679_v40 = vor.u32 %v4618_v38, %v3678_v37  ;;  %v3727_v45 = vor.u32 %v4630_v43, %v3726_v42  ;;  %v3640_v37 = vld [vmem:[#allocation6 + $0x418] sm:$0xf0]  ;;  %v3630_v39 = vld [vmem:[#allocation6 + $0x400] sm:$0xf]  ;;  %v3632_v43 = vld [vmem:[#allocation6 + $0x408] sm:$0xf0] }
 0x1f6   :  { %v3643_v38 = vor.u32 %v4607_v35, %v3640_v37  ;;  %v3854_v35 = vld [vmem:[#allocation6 + $0x5c0] sm:$0xf] }
 0x1f7   :  { %1251 = vmatpush.bf16.msrb.mxu2 %v3503_v49  ;;  %1548 = vmatpush.bf16.msrb.mxu1 %v3755_v59  ;;  %v3670_v49 = vld [vmem:[#allocation6 + $0x450] sm:$0xf]  ;;  %v3720_v59 = vld [vmem:[#allocation6 + $0x4b8] sm:$0xf0] }
 0x1f8   :  { %1520 = vmatpush.bf16.msra.mxu3 %v3751_v55  ;;  %v3671_v52 = vor.u32 %v4616_v50, %v3670_v49  ;;  %v3718_v55 = vld [vmem:[#allocation6 + $0x4b0] sm:$0xf]  ;;  %v3723_v60 = vor.u32 %v4627_v58, %v3720_v59  ;;  %v3880_v49 = vld [vmem:[#allocation6 + $0x5f8] sm:$0xf0]  ;;  %v3870_v50 = vld [vmem:[#allocation6 + $0x5e0] sm:$0xf] }
 0x1f9   :  { %1279 = vmatpush.bf16.msra.mxu0 %v3507_v51  ;;  %v4615_v51 = vld [vmem:[#allocation6 + $0x454] sm:$0xf]  ;;  %v3719_v57 = vor.u32 %v4628_v56, %v3718_v55  ;;  %v3814_v55 = vld [vmem:[#allocation6 + $0x570] sm:$0xf]  ;;  %v3816_v59 = vld [vmem:[#allocation6 + $0x578] sm:$0xf0] }
 0x1fa   :  { %v3675_v54 = vor.u32 %v4615_v51, %v3672_v53  ;;  %v4666_v51 = vld [vmem:[#allocation6 + $0x5e4] sm:$0xf0]  ;;  %v4665_v53 = vld [vmem:[#allocation6 + $0x5e4] sm:$0xf]  ;;  %v4651_v58 = vld [vmem:[#allocation6 + $0x574] sm:$0xf] }
 0x1fb   :  { %1506 = vmatpush.bf16.msra.mxu2 %v3687_v4  ;;  %1549 = vmatpush.bf16.msrb.mxu1 %v3747_v3  ;;  %v3710_v3 = vld [vmem:[#allocation6 + $0x4a0] sm:$0xf]  ;;  %v4626_v4 = vld [vmem:[#allocation6 + $0x4a4] sm:$0xf0]  ;;  %v3871_v56 = vor.u32 %v4666_v51, %v3870_v50  ;;  %v3819_v62 = vor.u32 %v4651_v58, %v3816_v59  ;;  %v4659_v51 = vld [vmem:[#allocation6 + $0x5b4] sm:$0xf] }
 0x1fc   :  { %1521 = vmatpush.bf16.msra.mxu3 %v3743_v63  ;;  %v4613_v63 = vld [vmem:[#allocation6 + $0x444] sm:$0xf]  ;;  %v3711_v6 = vor.u32 %v4626_v4, %v3710_v3  ;;  %v3792_v58 = vld [vmem:[#allocation6 + $0x548] sm:$0xf0] }
 0x1fd   :  { %1534 = vmatpush.bf16.msrb.mxu0 %v3691_v5  ;;  %v3667_v2 = vor.u32 %v4613_v63, %v3664_v1  ;;  %v4625_v5 = vld [vmem:[#allocation6 + $0x4a4] sm:$0xf] }
 0x1fe   :  { %v1078_v63 = vld [vmem:[#allocation7 + $0x6] sm:$0x3] }
 0x1ff   :  { %1550 = vmatpush.bf16.msrb.mxu1 %v3739_v36  ;;  %1507 = vmatpush.bf16.msra.mxu2 %v3679_v40  ;;  %v4606_v40 = vld [vmem:[#allocation6 + $0x404] sm:$0xf0] }
 0x200   :  { %1522 = vmatpush.bf16.msra.mxu3 %v3735_v34  ;;  %v4608_v34 = vld [vmem:[#allocation6 + $0x414] sm:$0xf0]  ;;  %v3631_v42 = vor.u32 %v4606_v40, %v3630_v39  ;;  %v4661_v39 = vld [vmem:[#allocation6 + $0x5c4] sm:$0xf]  ;;  %v3856_v40 = vld [vmem:[#allocation6 + $0x5c8] sm:$0xf0] }
 0x201   :  { %1535 = vmatpush.bf16.msrb.mxu0 %v3683_v44  ;;  %v3639_v36 = vor.u32 %v4608_v34, %v3638_v33  ;;  %v3635_v44 = vor.u32 %v4605_v41, %v3632_v43  ;;  %v3808_v34 = vld [vmem:[#allocation6 + $0x568] sm:$0xf0]  ;;  %v3859_v41 = vor.u32 %v4661_v39, %v3856_v40  ;;  %v4648_v43 = vld [vmem:[#allocation6 + $0x554] sm:$0xf0]  ;;  %v4699_v40 = vld [vmem:[#allocation6 + $0x6f4] sm:$0xf] }
 0x202   :  { %v4700_v39 = vld [vmem:[#allocation6 + $0x6f4] sm:$0xf0] }
 0x203   :  { %1551 = vmatpush.bf16.msrb.mxu1 %v3731_v48  ;;  %1508 = vmatpush.bf16.msra.mxu2 %v3671_v52  ;;  %v3883_v52 = vor.u32 %v4667_v47, %v3880_v49  ;;  %v4660_v49 = vld [vmem:[#allocation6 + $0x5b4] sm:$0xf0] }
 0x204   :  { %1523 = vmatpush.bf16.msra.mxu3 %v3727_v45  ;;  %v3878_v45 = vld [vmem:[#allocation6 + $0x5f0] sm:$0xf] }
 0x205   :  { %1536 = vmatpush.bf16.msrb.mxu0 %v3675_v54  ;;  %v3879_v48 = vor.u32 %v4668_v46, %v3878_v45  ;;  %v3872_v54 = vld [vmem:[#allocation6 + $0x5e8] sm:$0xf0]  ;;  %v3800_v46 = vld [vmem:[#allocation6 + $0x558] sm:$0xf0] }
 0x207   :  { %1552 = vmatpush.bf16.msrb.mxu1 %v3723_v60  ;;  %1509 = vmatpush.bf16.msra.mxu2 %v3663_v0  ;;  %v3875_v60 = vor.u32 %v4665_v53, %v3872_v54  ;;  %v3790_v54 = vld [vmem:[#allocation6 + $0x540] sm:$0xf] }
 0x208   :  { %1524 = vmatpush.bf16.msra.mxu3 %v3719_v57  ;;  %v4652_v57 = vld [vmem:[#allocation6 + $0x574] sm:$0xf0] }
 0x209   :  { %1537 = vmatpush.bf16.msrb.mxu0 %v3667_v2  ;;  %v3815_v61 = vor.u32 %v4652_v57, %v3814_v55  ;;  %v1081_v2 = vperm.slane %v1078_v63, 1  ;;  %v4646_v55 = vld [vmem:[#allocation6 + $0x544] sm:$0xf0] }
 0x20a   :  { %v3791_v57 = vor.u32 %v4646_v55, %v3790_v54 }
 0x20c   :  { %1525 = vmatpush.bf16.msra.mxu3 %v3711_v6  ;;  %v1080_v6 = vperm.slane %v1078_v63, 0 }
 0x269   :  { %v1033_v7 = vpop.f32.mrf.mxu1 }
 0x26f   :  { %v1019_v8 = vpop.f32.mrf.mxu0  ;;  %v1005_v11 = vpop.f32.mrf.mxu3 }
 0x270   :  { %v1020_v10 = vadd.f32 %v1019_v8, %v819_v9 }
 0x271   :  { %v1035_v17 = vpop.f32.mrf.mxu1 }
 0x272   :  { %v1034_v15 = vadd.f32 %v1033_v7, %v1020_v10  ;;  %v3712_v7 = vld [vmem:[#allocation6 + $0x4a8] sm:$0xf0]  ;;  %v4612_v10 = vld [vmem:[#allocation6 + $0x434] sm:$0xf0] }
 0x273   :  { %v3715_v8 = vor.u32 %v4625_v5, %v3712_v7 }
 0x274   :  { %v1039_v20 = vmax.f32 %v1034_v15, 0.0  ;;  %v3702_v15 = vld [vmem:[#allocation6 + $0x490] sm:$0xf] }
 0x275   :  { %v991_v12 = vpop.f32.mrf.mxu2  ;;  %1553 = vmatpush.bf16.msrb.mxu1 %v3715_v8 }
 0x276   :  { %v992_v18 = vadd.f32 %v991_v12, %v818_v13 }
 0x277   :  { %v1021_v14 = vpop.f32.mrf.mxu0  ;;  %v1007_v26 = vpop.f32.mrf.mxu3 }
 0x278   :  { %v1022_v16 = vadd.f32 %v1021_v14, %v819_v9  ;;  %v1006_v23 = vadd.f32 %v1005_v11, %v992_v18  ;;  %v3654_v9 = vld [vmem:[#allocation6 + $0x430] sm:$0xf]  ;;  %v4611_v11 = vld [vmem:[#allocation6 + $0x434] sm:$0xf] }
 0x279   :  { %v3655_v12 = vor.u32 %v4612_v10, %v3654_v9 }
 0x27a   :  { %v1036_v19 = vadd.f32 %v1035_v17, %v1022_v16  ;;  %v1038_v28 = vmax.f32 %v1006_v23, 0.0  ;;  %v4624_v16 = vld [vmem:[#allocation6 + $0x494] sm:$0xf0]  ;;  %v4623_v17 = vld [vmem:[#allocation6 + $0x494] sm:$0xf] }
 0x27b   :  { %1510 = vmatpush.bf16.msra.mxu2 %v3655_v12  ;;  %v3703_v18 = vor.u32 %v4624_v16, %v3702_v15  ;;  %v4609_v23 = vld [vmem:[#allocation6 + $0x424] sm:$0xf] }
 0x27c   :  { %v1041_v21 = vmax.f32 %v1036_v19, 0.0  ;;  %v3704_v19 = vld [vmem:[#allocation6 + $0x498] sm:$0xf0] }
 0x27d   :  { %v993_v22 = vpop.f32.mrf.mxu2  ;;  %1526 = vmatpush.bf16.msra.mxu3 %v3703_v18 }
 0x27e   :  { %v1043_v24 = vpack.c.bf16 %v1041_v21, %v1039_v20  ;;  %v994_v25 = vadd.f32 %v993_v22, %v818_v13  ;;  %v3656_v13 = vld [vmem:[#allocation6 + $0x438] sm:$0xf0]  ;;  %v3707_v20 = vor.u32 %v4623_v17, %v3704_v19  ;;  %v3646_v21 = vld [vmem:[#allocation6 + $0x420] sm:$0xf]  ;;  %v4610_v22 = vld [vmem:[#allocation6 + $0x424] sm:$0xf0] }
 0x27f   :  { %v3659_v14 = vor.u32 %v4611_v11, %v3656_v13 }
 0x280   :  { %v1008_v27 = vadd.f32 %v1007_v26, %v994_v25  ;;  %1266 = vmatmul.bf16.vlgmr.msrb.gmra.mxu3 %v1043_v24  ;;  %1294 = vmatmul.bf16.vlgmr.msra.gmra.mxu1 %v1043_v24  ;;  %v3647_v24 = vor.u32 %v4610_v22, %v3646_v21  ;;  %v3648_v25 = vld [vmem:[#allocation6 + $0x428] sm:$0xf0] }
 0x281   :  { %1538 = vmatpush.bf16.msrb.mxu0 %v3659_v14  ;;  %1554 = vmatpush.bf16.msrb.mxu1 %v3707_v20  ;;  %v3651_v26 = vor.u32 %v4609_v23, %v3648_v25  ;;  %v4664_v25 = vld [vmem:[#allocation6 + $0x5d4] sm:$0xf0] }
 0x282   :  { %v1040_v29 = vmax.f32 %v1008_v27, 0.0  ;;  %v3694_v27 = vld [vmem:[#allocation6 + $0x480] sm:$0xf]  ;;  %1511 = vmatpush.bf16.msra.mxu2 %v3647_v24  ;;  %v3862_v24 = vld [vmem:[#allocation6 + $0x5d0] sm:$0xf] }
 0x284   :  { %v1042_v30 = vpack.c.bf16 %v1040_v29, %v1038_v28  ;;  %v4622_v28 = vld [vmem:[#allocation6 + $0x484] sm:$0xf0]  ;;  %v4621_v29 = vld [vmem:[#allocation6 + $0x484] sm:$0xf] }
 0x285   :  { %1539 = vmatpush.bf16.msrb.mxu0 %v3651_v26  ;;  %v3699_v32 = vor.u32 %v4621_v29, %v3696_v31  ;;  %v4663_v26 = vld [vmem:[#allocation6 + $0x5d4] sm:$0xf]  ;;  %v4650_v31 = vld [vmem:[#allocation6 + $0x564] sm:$0xf0] }
 0x286   :  { %1252 = vmatmul.bf16.vlgmr.msrb.gmra.mxu2 %v1042_v30  ;;  %1280 = vmatmul.bf16.vlgmr.msra.gmra.mxu0 %v1042_v30  ;;  %v3695_v30 = vor.u32 %v4622_v28, %v3694_v27  ;;  %v3863_v27 = vor.u32 %v4664_v25, %v3862_v24  ;;  %v3864_v28 = vld [vmem:[#allocation6 + $0x5d8] sm:$0xf0]  ;;  %v3824_v24 = vld [vmem:[#allocation6 + $0x588] sm:$0xf0] }
 0x287   :  { %1555 = vmatpush.bf16.msrb.mxu1 %v3699_v32  ;;  %1512 = vmatpush.bf16.msra.mxu2 %v3639_v36  ;;  %v3867_v29 = vor.u32 %v4663_v26, %v3864_v28  ;;  %v4649_v32 = vld [vmem:[#allocation6 + $0x564] sm:$0xf]  ;;  %v4662_v36 = vld [vmem:[#allocation6 + $0x5c4] sm:$0xf0]  ;;  %v3766_v26 = vld [vmem:[#allocation6 + $0x510] sm:$0xf] }
 0x288   :  { %1527 = vmatpush.bf16.msra.mxu3 %v3695_v30  ;;  %v3806_v30 = vld [vmem:[#allocation6 + $0x560] sm:$0xf]  ;;  %v3811_v37 = vor.u32 %v4649_v32, %v3808_v34  ;;  %v4639_v28 = vld [vmem:[#allocation6 + $0x514] sm:$0xf]  ;;  %v4637_v34 = vld [vmem:[#allocation6 + $0x504] sm:$0xf] }
 0x289   :  { %1540 = vmatpush.bf16.msrb.mxu0 %v3643_v38  ;;  %v3807_v33 = vor.u32 %v4650_v31, %v3806_v30  ;;  %v3855_v38 = vor.u32 %v4662_v36, %v3854_v35  ;;  %v3768_v30 = vld [vmem:[#allocation6 + $0x518] sm:$0xf0]  ;;  %v3758_v32 = vld [vmem:[#allocation6 + $0x500] sm:$0xf]  ;;  %v3760_v36 = vld [vmem:[#allocation6 + $0x508] sm:$0xf0] }
 0x28a   :  { %v3771_v31 = vor.u32 %v4639_v28, %v3768_v30  ;;  %v3982_v28 = vld [vmem:[#allocation6 + $0x6c0] sm:$0xf] }
 0x28b   :  { %1513 = vmatpush.bf16.msra.mxu2 %v3631_v42  ;;  %1810 = vmatpush.bf16.msra.mxu1 %v3883_v52  ;;  %v3798_v42 = vld [vmem:[#allocation6 + $0x550] sm:$0xf]  ;;  %v3848_v52 = vld [vmem:[#allocation6 + $0x5b8] sm:$0xf0] }
 0x28c   :  { %1782 = vmatpush.bf16.msrb.mxu3 %v3879_v48  ;;  %v3799_v45 = vor.u32 %v4648_v43, %v3798_v42  ;;  %v3846_v48 = vld [vmem:[#allocation6 + $0x5b0] sm:$0xf]  ;;  %v3851_v53 = vor.u32 %v4659_v51, %v3848_v52  ;;  %v4008_v42 = vld [vmem:[#allocation6 + $0x6f8] sm:$0xf0]  ;;  %v3998_v43 = vld [vmem:[#allocation6 + $0x6e0] sm:$0xf] }
 0x28d   :  { %1541 = vmatpush.bf16.msrb.mxu0 %v3635_v44  ;;  %v4647_v44 = vld [vmem:[#allocation6 + $0x554] sm:$0xf]  ;;  %v3847_v50 = vor.u32 %v4660_v49, %v3846_v48  ;;  %v3942_v48 = vld [vmem:[#allocation6 + $0x670] sm:$0xf]  ;;  %v3944_v52 = vld [vmem:[#allocation6 + $0x678] sm:$0xf0] }
 0x28e   :  { %v3803_v47 = vor.u32 %v4647_v44, %v3800_v46  ;;  %v4698_v44 = vld [vmem:[#allocation6 + $0x6e4] sm:$0xf0]  ;;  %v4697_v46 = vld [vmem:[#allocation6 + $0x6e4] sm:$0xf]  ;;  %v4683_v51 = vld [vmem:[#allocation6 + $0x674] sm:$0xf] }
 0x28f   :  { %1768 = vmatpush.bf16.msrb.mxu2 %v3815_v61  ;;  %1811 = vmatpush.bf16.msra.mxu1 %v3875_v60  ;;  %v3838_v60 = vld [vmem:[#allocation6 + $0x5a0] sm:$0xf]  ;;  %v4658_v61 = vld [vmem:[#allocation6 + $0x5a4] sm:$0xf0]  ;;  %v3999_v49 = vor.u32 %v4698_v44, %v3998_v43  ;;  %v3947_v55 = vor.u32 %v4683_v51, %v3944_v52  ;;  %v4691_v44 = vld [vmem:[#allocation6 + $0x6b4] sm:$0xf] }
 0x290   :  { %1783 = vmatpush.bf16.msrb.mxu3 %v3871_v56  ;;  %v4645_v56 = vld [vmem:[#allocation6 + $0x544] sm:$0xf]  ;;  %v3839_v63 = vor.u32 %v4658_v61, %v3838_v60  ;;  %v3920_v51 = vld [vmem:[#allocation6 + $0x648] sm:$0xf0] }
 0x291   :  { %1796 = vmatpush.bf16.msra.mxu0 %v3819_v62  ;;  %v3795_v59 = vor.u32 %v4645_v56, %v3792_v58  ;;  %v4657_v62 = vld [vmem:[#allocation6 + $0x5a4] sm:$0xf]  ;;  %v1340_v56 = vld [vmem:[#allocation7 + $0x8] sm:$0x3] }
 0x293   :  { %1812 = vmatpush.bf16.msra.mxu1 %v3867_v29  ;;  %1769 = vmatpush.bf16.msrb.mxu2 %v3807_v33  ;;  %v4638_v33 = vld [vmem:[#allocation6 + $0x504] sm:$0xf0] }
 0x294   :  { %1784 = vmatpush.bf16.msrb.mxu3 %v3863_v27  ;;  %v4640_v27 = vld [vmem:[#allocation6 + $0x514] sm:$0xf0]  ;;  %v3759_v35 = vor.u32 %v4638_v33, %v3758_v32  ;;  %v4693_v32 = vld [vmem:[#allocation6 + $0x6c4] sm:$0xf]  ;;  %v3984_v33 = vld [vmem:[#allocation6 + $0x6c8] sm:$0xf0] }
 0x295   :  { %1797 = vmatpush.bf16.msra.mxu0 %v3811_v37  ;;  %v3767_v29 = vor.u32 %v4640_v27, %v3766_v26  ;;  %v3763_v37 = vor.u32 %v4637_v34, %v3760_v36  ;;  %v3936_v27 = vld [vmem:[#allocation6 + $0x668] sm:$0xf0]  ;;  %v3987_v34 = vor.u32 %v4693_v32, %v3984_v33  ;;  %v4680_v36 = vld [vmem:[#allocation6 + $0x654] sm:$0xf0]  ;;  %v4731_v33 = vld [vmem:[#allocation6 + $0x7f4] sm:$0xf] }
 0x296   :  { %v4732_v32 = vld [vmem:[#allocation6 + $0x7f4] sm:$0xf0] }
 0x297   :  { %1813 = vmatpush.bf16.msra.mxu1 %v3859_v41  ;;  %1770 = vmatpush.bf16.msrb.mxu2 %v3799_v45  ;;  %v4011_v45 = vor.u32 %v4699_v40, %v4008_v42  ;;  %v4692_v42 = vld [vmem:[#allocation6 + $0x6b4] sm:$0xf0] }
 0x298   :  { %1785 = vmatpush.bf16.msrb.mxu3 %v3855_v38  ;;  %v4006_v38 = vld [vmem:[#allocation6 + $0x6f0] sm:$0xf] }
 0x299   :  { %1798 = vmatpush.bf16.msra.mxu0 %v3803_v47  ;;  %v4007_v41 = vor.u32 %v4700_v39, %v4006_v38  ;;  %v4000_v47 = vld [vmem:[#allocation6 + $0x6e8] sm:$0xf0]  ;;  %v3928_v39 = vld [vmem:[#allocation6 + $0x658] sm:$0xf0] }
 0x29b   :  { %1814 = vmatpush.bf16.msra.mxu1 %v3851_v53  ;;  %1771 = vmatpush.bf16.msrb.mxu2 %v3791_v57  ;;  %v4003_v53 = vor.u32 %v4697_v46, %v4000_v47  ;;  %v3918_v47 = vld [vmem:[#allocation6 + $0x640] sm:$0xf] }
 0x29c   :  { %1786 = vmatpush.bf16.msrb.mxu3 %v3847_v50  ;;  %v4684_v50 = vld [vmem:[#allocation6 + $0x674] sm:$0xf0] }
 0x29d   :  { %1799 = vmatpush.bf16.msra.mxu0 %v3795_v59  ;;  %v3943_v54 = vor.u32 %v4684_v50, %v3942_v48  ;;  %v1343_v59 = vperm.slane %v1340_v56, 1  ;;  %v4678_v48 = vld [vmem:[#allocation6 + $0x644] sm:$0xf0] }
 0x29e   :  { %v3919_v50 = vor.u32 %v4678_v48, %v3918_v47 }
 0x2a0   :  { %1787 = vmatpush.bf16.msrb.mxu3 %v3839_v63  ;;  %v1342_v63 = vperm.slane %v1340_v56, 0 }
 0x2fd   :  { %v1295_v0 = vpop.f32.mrf.mxu1 }
 0x303   :  { %v1281_v1 = vpop.f32.mrf.mxu0  ;;  %v1267_v4 = vpop.f32.mrf.mxu3 }
 0x304   :  { %v1282_v3 = vadd.f32 %v1281_v1, %v1081_v2 }
 0x305   :  { %v1297_v10 = vpop.f32.mrf.mxu1 }
 0x306   :  { %v1296_v8 = vadd.f32 %v1295_v0, %v1282_v3  ;;  %v3840_v0 = vld [vmem:[#allocation6 + $0x5a8] sm:$0xf0]  ;;  %v4644_v3 = vld [vmem:[#allocation6 + $0x534] sm:$0xf0] }
 0x307   :  { %v3843_v1 = vor.u32 %v4657_v62, %v3840_v0 }
 0x308   :  { %v1301_v13 = vmax.f32 %v1296_v8, 0.0  ;;  %v3830_v8 = vld [vmem:[#allocation6 + $0x590] sm:$0xf] }
 0x309   :  { %v1253_v5 = vpop.f32.mrf.mxu2  ;;  %1815 = vmatpush.bf16.msra.mxu1 %v3843_v1 }
 0x30a   :  { %v1254_v11 = vadd.f32 %v1253_v5, %v1080_v6 }
 0x30b   :  { %v1283_v7 = vpop.f32.mrf.mxu0  ;;  %v1269_v19 = vpop.f32.mrf.mxu3 }
 0x30c   :  { %v1284_v9 = vadd.f32 %v1283_v7, %v1081_v2  ;;  %v1268_v16 = vadd.f32 %v1267_v4, %v1254_v11  ;;  %v3782_v2 = vld [vmem:[#allocation6 + $0x530] sm:$0xf]  ;;  %v4643_v4 = vld [vmem:[#allocation6 + $0x534] sm:$0xf] }
 0x30d   :  { %v3783_v5 = vor.u32 %v4644_v3, %v3782_v2 }
 0x30e   :  { %v1298_v12 = vadd.f32 %v1297_v10, %v1284_v9  ;;  %v1300_v21 = vmax.f32 %v1268_v16, 0.0  ;;  %v4656_v9 = vld [vmem:[#allocation6 + $0x594] sm:$0xf0]  ;;  %v4655_v10 = vld [vmem:[#allocation6 + $0x594] sm:$0xf] }
 0x30f   :  { %1772 = vmatpush.bf16.msrb.mxu2 %v3783_v5  ;;  %v3831_v11 = vor.u32 %v4656_v9, %v3830_v8  ;;  %v4641_v16 = vld [vmem:[#allocation6 + $0x524] sm:$0xf] }
 0x310   :  { %v1303_v14 = vmax.f32 %v1298_v12, 0.0  ;;  %v3832_v12 = vld [vmem:[#allocation6 + $0x598] sm:$0xf0] }
 0x311   :  { %v1255_v15 = vpop.f32.mrf.mxu2  ;;  %1788 = vmatpush.bf16.msrb.mxu3 %v3831_v11 }
 0x312   :  { %v1305_v17 = vpack.c.bf16 %v1303_v14, %v1301_v13  ;;  %v1256_v18 = vadd.f32 %v1255_v15, %v1080_v6  ;;  %v3784_v6 = vld [vmem:[#allocation6 + $0x538] sm:$0xf0]  ;;  %v3835_v13 = vor.u32 %v4655_v10, %v3832_v12  ;;  %v3774_v14 = vld [vmem:[#allocation6 + $0x520] sm:$0xf]  ;;  %v4642_v15 = vld [vmem:[#allocation6 + $0x524] sm:$0xf0] }
 0x313   :  { %v3787_v7 = vor.u32 %v4643_v4, %v3784_v6 }
 0x314   :  { %v1270_v20 = vadd.f32 %v1269_v19, %v1256_v18  ;;  %1528 = vmatmul.bf16.vlgmr.msra.gmra.mxu3 %v1305_v17  ;;  %1556 = vmatmul.bf16.vlgmr.msrb.gmra.mxu1 %v1305_v17  ;;  %v3775_v17 = vor.u32 %v4642_v15, %v3774_v14  ;;  %v3776_v18 = vld [vmem:[#allocation6 + $0x528] sm:$0xf0] }
 0x315   :  { %1800 = vmatpush.bf16.msra.mxu0 %v3787_v7  ;;  %1816 = vmatpush.bf16.msra.mxu1 %v3835_v13  ;;  %v3779_v19 = vor.u32 %v4641_v16, %v3776_v18  ;;  %v4696_v18 = vld [vmem:[#allocation6 + $0x6d4] sm:$0xf0] }
 0x316   :  { %v1302_v22 = vmax.f32 %v1270_v20, 0.0  ;;  %v3822_v20 = vld [vmem:[#allocation6 + $0x580] sm:$0xf]  ;;  %1773 = vmatpush.bf16.msrb.mxu2 %v3775_v17  ;;  %v3990_v17 = vld [vmem:[#allocation6 + $0x6d0] sm:$0xf] }
 0x318   :  { %v1304_v23 = vpack.c.bf16 %v1302_v22, %v1300_v21  ;;  %v4654_v21 = vld [vmem:[#allocation6 + $0x584] sm:$0xf0]  ;;  %v4653_v22 = vld [vmem:[#allocation6 + $0x584] sm:$0xf] }
 0x319   :  { %1801 = vmatpush.bf16.msra.mxu0 %v3779_v19  ;;  %v3827_v25 = vor.u32 %v4653_v22, %v3824_v24  ;;  %v4695_v19 = vld [vmem:[#allocation6 + $0x6d4] sm:$0xf]  ;;  %v4682_v24 = vld [vmem:[#allocation6 + $0x664] sm:$0xf0] }
 0x31a   :  { %1514 = vmatmul.bf16.vlgmr.msra.gmra.mxu2 %v1304_v23  ;;  %1542 = vmatmul.bf16.vlgmr.msrb.gmra.mxu0 %v1304_v23  ;;  %v3823_v23 = vor.u32 %v4654_v21, %v3822_v20  ;;  %v3991_v20 = vor.u32 %v4696_v18, %v3990_v17  ;;  %v3992_v21 = vld [vmem:[#allocation6 + $0x6d8] sm:$0xf0]  ;;  %v3952_v17 = vld [vmem:[#allocation6 + $0x688] sm:$0xf0] }
 0x31b   :  { %1817 = vmatpush.bf16.msra.mxu1 %v3827_v25  ;;  %1774 = vmatpush.bf16.msrb.mxu2 %v3767_v29  ;;  %v3995_v22 = vor.u32 %v4695_v19, %v3992_v21  ;;  %v4681_v25 = vld [vmem:[#allocation6 + $0x664] sm:$0xf]  ;;  %v4694_v29 = vld [vmem:[#allocation6 + $0x6c4] sm:$0xf0]  ;;  %v3894_v19 = vld [vmem:[#allocation6 + $0x610] sm:$0xf] }
 0x31c   :  { %1789 = vmatpush.bf16.msrb.mxu3 %v3823_v23  ;;  %v3934_v23 = vld [vmem:[#allocation6 + $0x660] sm:$0xf]  ;;  %v3939_v30 = vor.u32 %v4681_v25, %v3936_v27  ;;  %v4671_v21 = vld [vmem:[#allocation6 + $0x614] sm:$0xf]  ;;  %v4669_v27 = vld [vmem:[#allocation6 + $0x604] sm:$0xf] }
 0x31d   :  { %1802 = vmatpush.bf16.msra.mxu0 %v3771_v31  ;;  %v3935_v26 = vor.u32 %v4682_v24, %v3934_v23  ;;  %v3983_v31 = vor.u32 %v4694_v29, %v3982_v28  ;;  %v3896_v23 = vld [vmem:[#allocation6 + $0x618] sm:$0xf0]  ;;  %v3886_v25 = vld [vmem:[#allocation6 + $0x600] sm:$0xf]  ;;  %v3888_v29 = vld [vmem:[#allocation6 + $0x608] sm:$0xf0] }
 0x31e   :  { %v3899_v24 = vor.u32 %v4671_v21, %v3896_v23  ;;  %v4110_v21 = vld [vmem:[#allocation6 + $0x7c0] sm:$0xf] }
 0x31f   :  { %1775 = vmatpush.bf16.msrb.mxu2 %v3759_v35  ;;  %2072 = vmatpush.bf16.msrb.mxu1 %v4011_v45  ;;  %v3926_v35 = vld [vmem:[#allocation6 + $0x650] sm:$0xf]  ;;  %v3976_v45 = vld [vmem:[#allocation6 + $0x6b8] sm:$0xf0] }
 0x320   :  { %2044 = vmatpush.bf16.msra.mxu3 %v4007_v41  ;;  %v3927_v38 = vor.u32 %v4680_v36, %v3926_v35  ;;  %v3974_v41 = vld [vmem:[#allocation6 + $0x6b0] sm:$0xf]  ;;  %v3979_v46 = vor.u32 %v4691_v44, %v3976_v45  ;;  %v4136_v35 = vld [vmem:[#allocation6 + $0x7f8] sm:$0xf0]  ;;  %v4126_v36 = vld [vmem:[#allocation6 + $0x7e0] sm:$0xf] }
 0x321   :  { %1803 = vmatpush.bf16.msra.mxu0 %v3763_v37  ;;  %v4679_v37 = vld [vmem:[#allocation6 + $0x654] sm:$0xf]  ;;  %v3975_v43 = vor.u32 %v4692_v42, %v3974_v41  ;;  %v4070_v41 = vld [vmem:[#allocation6 + $0x770] sm:$0xf]  ;;  %v4072_v45 = vld [vmem:[#allocation6 + $0x778] sm:$0xf0] }
 0x322   :  { %v3931_v40 = vor.u32 %v4679_v37, %v3928_v39  ;;  %v4730_v37 = vld [vmem:[#allocation6 + $0x7e4] sm:$0xf0]  ;;  %v4729_v39 = vld [vmem:[#allocation6 + $0x7e4] sm:$0xf]  ;;  %v4715_v44 = vld [vmem:[#allocation6 + $0x774] sm:$0xf] }
 0x323   :  { %2030 = vmatpush.bf16.msra.mxu2 %v3943_v54  ;;  %2073 = vmatpush.bf16.msrb.mxu1 %v4003_v53  ;;  %v3966_v53 = vld [vmem:[#allocation6 + $0x6a0] sm:$0xf]  ;;  %v4690_v54 = vld [vmem:[#allocation6 + $0x6a4] sm:$0xf0]  ;;  %v4127_v42 = vor.u32 %v4730_v37, %v4126_v36  ;;  %v4075_v48 = vor.u32 %v4715_v44, %v4072_v45  ;;  %v4723_v37 = vld [vmem:[#allocation6 + $0x7b4] sm:$0xf] }
 0x324   :  { %2045 = vmatpush.bf16.msra.mxu3 %v3999_v49  ;;  %v4677_v49 = vld [vmem:[#allocation6 + $0x644] sm:$0xf]  ;;  %v3967_v56 = vor.u32 %v4690_v54, %v3966_v53  ;;  %v4048_v44 = vld [vmem:[#allocation6 + $0x748] sm:$0xf0] }
 0x325   :  { %2058 = vmatpush.bf16.msrb.mxu0 %v3947_v55  ;;  %v3923_v52 = vor.u32 %v4677_v49, %v3920_v51  ;;  %v4689_v55 = vld [vmem:[#allocation6 + $0x6a4] sm:$0xf]  ;;  %v1602_v49 = vld [vmem:[#allocation7 + $0xa] sm:$0x3] }
 0x327   :  { %2074 = vmatpush.bf16.msrb.mxu1 %v3995_v22  ;;  %2031 = vmatpush.bf16.msra.mxu2 %v3935_v26  ;;  %v4670_v26 = vld [vmem:[#allocation6 + $0x604] sm:$0xf0] }
 0x328   :  { %2046 = vmatpush.bf16.msra.mxu3 %v3991_v20  ;;  %v4672_v20 = vld [vmem:[#allocation6 + $0x614] sm:$0xf0]  ;;  %v3887_v28 = vor.u32 %v4670_v26, %v3886_v25  ;;  %v4725_v25 = vld [vmem:[#allocation6 + $0x7c4] sm:$0xf]  ;;  %v4112_v26 = vld [vmem:[#allocation6 + $0x7c8] sm:$0xf0] }
 0x329   :  { %2059 = vmatpush.bf16.msrb.mxu0 %v3939_v30  ;;  %v3895_v22 = vor.u32 %v4672_v20, %v3894_v19  ;;  %v3891_v30 = vor.u32 %v4669_v27, %v3888_v29  ;;  %v4064_v20 = vld [vmem:[#allocation6 + $0x768] sm:$0xf0]  ;;  %v4115_v27 = vor.u32 %v4725_v25, %v4112_v26  ;;  %v4712_v29 = vld [vmem:[#allocation6 + $0x754] sm:$0xf0]  ;;  %v4763_v26 = vld [vmem:[#allocation6 + $0x8f4] sm:$0xf] }
 0x32a   :  { %v4764_v25 = vld [vmem:[#allocation6 + $0x8f4] sm:$0xf0] }
 0x32b   :  { %2075 = vmatpush.bf16.msrb.mxu1 %v3987_v34  ;;  %2032 = vmatpush.bf16.msra.mxu2 %v3927_v38  ;;  %v4139_v38 = vor.u32 %v4731_v33, %v4136_v35  ;;  %v4724_v35 = vld [vmem:[#allocation6 + $0x7b4] sm:$0xf0] }
 0x32c   :  { %2047 = vmatpush.bf16.msra.mxu3 %v3983_v31  ;;  %v4134_v31 = vld [vmem:[#allocation6 + $0x7f0] sm:$0xf] }
 0x32d   :  { %2060 = vmatpush.bf16.msrb.mxu0 %v3931_v40  ;;  %v4135_v34 = vor.u32 %v4732_v32, %v4134_v31  ;;  %v4128_v40 = vld [vmem:[#allocation6 + $0x7e8] sm:$0xf0]  ;;  %v4056_v32 = vld [vmem:[#allocation6 + $0x758] sm:$0xf0] }
 0x32f   :  { %2076 = vmatpush.bf16.msrb.mxu1 %v3979_v46  ;;  %2033 = vmatpush.bf16.msra.mxu2 %v3919_v50  ;;  %v4131_v46 = vor.u32 %v4729_v39, %v4128_v40  ;;  %v4046_v40 = vld [vmem:[#allocation6 + $0x740] sm:$0xf] }
 0x330   :  { %2048 = vmatpush.bf16.msra.mxu3 %v3975_v43  ;;  %v4716_v43 = vld [vmem:[#allocation6 + $0x774] sm:$0xf0] }
 0x331   :  { %2061 = vmatpush.bf16.msrb.mxu0 %v3923_v52  ;;  %v4071_v47 = vor.u32 %v4716_v43, %v4070_v41  ;;  %v1605_v52 = vperm.slane %v1602_v49, 1  ;;  %v4710_v41 = vld [vmem:[#allocation6 + $0x744] sm:$0xf0] }
 0x332   :  { %v4047_v43 = vor.u32 %v4710_v41, %v4046_v40 }
 0x334   :  { %2049 = vmatpush.bf16.msra.mxu3 %v3967_v56  ;;  %v1604_v56 = vperm.slane %v1602_v49, 0 }
 0x391   :  { %v1557_v57 = vpop.f32.mrf.mxu1 }
 0x397   :  { %v1543_v58 = vpop.f32.mrf.mxu0  ;;  %v1529_v61 = vpop.f32.mrf.mxu3 }
 0x398   :  { %v1544_v60 = vadd.f32 %v1543_v58, %v1343_v59 }
 0x399   :  { %v1559_v3 = vpop.f32.mrf.mxu1 }
 0x39a   :  { %v1558_v1 = vadd.f32 %v1557_v57, %v1544_v60  ;;  %v3968_v57 = vld [vmem:[#allocation6 + $0x6a8] sm:$0xf0]  ;;  %v4676_v60 = vld [vmem:[#allocation6 + $0x634] sm:$0xf0] }
 0x39b   :  { %v3971_v58 = vor.u32 %v4689_v55, %v3968_v57 }
 0x39c   :  { %v1563_v6 = vmax.f32 %v1558_v1, 0.0  ;;  %v3958_v1 = vld [vmem:[#allocation6 + $0x690] sm:$0xf] }
 0x39d   :  { %v1515_v62 = vpop.f32.mrf.mxu2  ;;  %2077 = vmatpush.bf16.msrb.mxu1 %v3971_v58 }
 0x39e   :  { %v1516_v4 = vadd.f32 %v1515_v62, %v1342_v63 }
 0x39f   :  { %v1545_v0 = vpop.f32.mrf.mxu0  ;;  %v1531_v12 = vpop.f32.mrf.mxu3 }
 0x3a0   :  { %v1546_v2 = vadd.f32 %v1545_v0, %v1343_v59  ;;  %v1530_v9 = vadd.f32 %v1529_v61, %v1516_v4  ;;  %v3910_v59 = vld [vmem:[#allocation6 + $0x630] sm:$0xf]  ;;  %v4675_v61 = vld [vmem:[#allocation6 + $0x634] sm:$0xf] }
 0x3a1   :  { %v3911_v62 = vor.u32 %v4676_v60, %v3910_v59 }
 0x3a2   :  { %v1560_v5 = vadd.f32 %v1559_v3, %v1546_v2  ;;  %v1562_v14 = vmax.f32 %v1530_v9, 0.0  ;;  %v4688_v2 = vld [vmem:[#allocation6 + $0x694] sm:$0xf0]  ;;  %v4687_v3 = vld [vmem:[#allocation6 + $0x694] sm:$0xf] }
 0x3a3   :  { %2034 = vmatpush.bf16.msra.mxu2 %v3911_v62  ;;  %v3959_v4 = vor.u32 %v4688_v2, %v3958_v1  ;;  %v4673_v9 = vld [vmem:[#allocation6 + $0x624] sm:$0xf] }
 0x3a4   :  { %v1565_v7 = vmax.f32 %v1560_v5, 0.0  ;;  %v3960_v5 = vld [vmem:[#allocation6 + $0x698] sm:$0xf0] }
 0x3a5   :  { %v1517_v8 = vpop.f32.mrf.mxu2  ;;  %2050 = vmatpush.bf16.msra.mxu3 %v3959_v4 }
 0x3a6   :  { %v1567_v10 = vpack.c.bf16 %v1565_v7, %v1563_v6  ;;  %v1518_v11 = vadd.f32 %v1517_v8, %v1342_v63  ;;  %v3912_v63 = vld [vmem:[#allocation6 + $0x638] sm:$0xf0]  ;;  %v3963_v6 = vor.u32 %v4687_v3, %v3960_v5  ;;  %v3902_v7 = vld [vmem:[#allocation6 + $0x620] sm:$0xf]  ;;  %v4674_v8 = vld [vmem:[#allocation6 + $0x624] sm:$0xf0] }
 0x3a7   :  { %v3915_v0 = vor.u32 %v4675_v61, %v3912_v63 }
 0x3a8   :  { %v1532_v13 = vadd.f32 %v1531_v12, %v1518_v11  ;;  %1790 = vmatmul.bf16.vlgmr.msrb.gmra.mxu3 %v1567_v10  ;;  %1818 = vmatmul.bf16.vlgmr.msra.gmra.mxu1 %v1567_v10  ;;  %v3903_v10 = vor.u32 %v4674_v8, %v3902_v7  ;;  %v3904_v11 = vld [vmem:[#allocation6 + $0x628] sm:$0xf0] }
 0x3a9   :  { %2062 = vmatpush.bf16.msrb.mxu0 %v3915_v0  ;;  %2078 = vmatpush.bf16.msrb.mxu1 %v3963_v6  ;;  %v3907_v12 = vor.u32 %v4673_v9, %v3904_v11  ;;  %v4728_v11 = vld [vmem:[#allocation6 + $0x7d4] sm:$0xf0] }
 0x3aa   :  { %v1564_v15 = vmax.f32 %v1532_v13, 0.0  ;;  %v3950_v13 = vld [vmem:[#allocation6 + $0x680] sm:$0xf]  ;;  %2035 = vmatpush.bf16.msra.mxu2 %v3903_v10  ;;  %v4118_v10 = vld [vmem:[#allocation6 + $0x7d0] sm:$0xf] }
 0x3ac   :  { %v1566_v16 = vpack.c.bf16 %v1564_v15, %v1562_v14  ;;  %v4686_v14 = vld [vmem:[#allocation6 + $0x684] sm:$0xf0]  ;;  %v4685_v15 = vld [vmem:[#allocation6 + $0x684] sm:$0xf] }
 0x3ad   :  { %2063 = vmatpush.bf16.msrb.mxu0 %v3907_v12  ;;  %v3955_v18 = vor.u32 %v4685_v15, %v3952_v17  ;;  %v4727_v12 = vld [vmem:[#allocation6 + $0x7d4] sm:$0xf]  ;;  %v4714_v17 = vld [vmem:[#allocation6 + $0x764] sm:$0xf0] }
 0x3ae   :  { %1776 = vmatmul.bf16.vlgmr.msrb.gmra.mxu2 %v1566_v16  ;;  %1804 = vmatmul.bf16.vlgmr.msra.gmra.mxu0 %v1566_v16  ;;  %v3951_v16 = vor.u32 %v4686_v14, %v3950_v13  ;;  %v4119_v13 = vor.u32 %v4728_v11, %v4118_v10  ;;  %v4120_v14 = vld [vmem:[#allocation6 + $0x7d8] sm:$0xf0]  ;;  %v4080_v10 = vld [vmem:[#allocation6 + $0x788] sm:$0xf0] }
 0x3af   :  { %2079 = vmatpush.bf16.msrb.mxu1 %v3955_v18  ;;  %2036 = vmatpush.bf16.msra.mxu2 %v3895_v22  ;;  %v4123_v15 = vor.u32 %v4727_v12, %v4120_v14  ;;  %v4713_v18 = vld [vmem:[#allocation6 + $0x764] sm:$0xf]  ;;  %v4726_v22 = vld [vmem:[#allocation6 + $0x7c4] sm:$0xf0]  ;;  %v4022_v12 = vld [vmem:[#allocation6 + $0x710] sm:$0xf] }
 0x3b0   :  { %2051 = vmatpush.bf16.msra.mxu3 %v3951_v16  ;;  %v4062_v16 = vld [vmem:[#allocation6 + $0x760] sm:$0xf]  ;;  %v4067_v23 = vor.u32 %v4713_v18, %v4064_v20  ;;  %v4703_v14 = vld [vmem:[#allocation6 + $0x714] sm:$0xf]  ;;  %v4701_v20 = vld [vmem:[#allocation6 + $0x704] sm:$0xf] }
 0x3b1   :  { %2064 = vmatpush.bf16.msrb.mxu0 %v3899_v24  ;;  %v4063_v19 = vor.u32 %v4714_v17, %v4062_v16  ;;  %v4111_v24 = vor.u32 %v4726_v22, %v4110_v21  ;;  %v4024_v16 = vld [vmem:[#allocation6 + $0x718] sm:$0xf0]  ;;  %v4014_v18 = vld [vmem:[#allocation6 + $0x700] sm:$0xf]  ;;  %v4016_v22 = vld [vmem:[#allocation6 + $0x708] sm:$0xf0] }
 0x3b2   :  { %v4027_v17 = vor.u32 %v4703_v14, %v4024_v16  ;;  %v4238_v14 = vld [vmem:[#allocation6 + $0x8c0] sm:$0xf] }
 0x3b3   :  { %2037 = vmatpush.bf16.msra.mxu2 %v3887_v28  ;;  %2334 = vmatpush.bf16.msra.mxu1 %v4139_v38  ;;  %v4054_v28 = vld [vmem:[#allocation6 + $0x750] sm:$0xf]  ;;  %v4104_v38 = vld [vmem:[#allocation6 + $0x7b8] sm:$0xf0] }
 0x3b4   :  { %2306 = vmatpush.bf16.msrb.mxu3 %v4135_v34  ;;  %v4055_v31 = vor.u32 %v4712_v29, %v4054_v28  ;;  %v4102_v34 = vld [vmem:[#allocation6 + $0x7b0] sm:$0xf]  ;;  %v4107_v39 = vor.u32 %v4723_v37, %v4104_v38  ;;  %v4264_v28 = vld [vmem:[#allocation6 + $0x8f8] sm:$0xf0]  ;;  %v4254_v29 = vld [vmem:[#allocation6 + $0x8e0] sm:$0xf] }
 0x3b5   :  { %2065 = vmatpush.bf16.msrb.mxu0 %v3891_v30  ;;  %v4711_v30 = vld [vmem:[#allocation6 + $0x754] sm:$0xf]  ;;  %v4103_v36 = vor.u32 %v4724_v35, %v4102_v34  ;;  %v4198_v34 = vld [vmem:[#allocation6 + $0x870] sm:$0xf]  ;;  %v4200_v38 = vld [vmem:[#allocation6 + $0x878] sm:$0xf0] }
 0x3b6   :  { %v4059_v33 = vor.u32 %v4711_v30, %v4056_v32  ;;  %v4762_v30 = vld [vmem:[#allocation6 + $0x8e4] sm:$0xf0]  ;;  %v4761_v32 = vld [vmem:[#allocation6 + $0x8e4] sm:$0xf]  ;;  %v4747_v37 = vld [vmem:[#allocation6 + $0x874] sm:$0xf] }
 0x3b7   :  { %2292 = vmatpush.bf16.msrb.mxu2 %v4071_v47  ;;  %2335 = vmatpush.bf16.msra.mxu1 %v4131_v46  ;;  %v4094_v46 = vld [vmem:[#allocation6 + $0x7a0] sm:$0xf]  ;;  %v4722_v47 = vld [vmem:[#allocation6 + $0x7a4] sm:$0xf0]  ;;  %v4255_v35 = vor.u32 %v4762_v30, %v4254_v29  ;;  %v4203_v41 = vor.u32 %v4747_v37, %v4200_v38  ;;  %v4755_v30 = vld [vmem:[#allocation6 + $0x8b4] sm:$0xf] }
 0x3b8   :  { %2307 = vmatpush.bf16.msrb.mxu3 %v4127_v42  ;;  %v4709_v42 = vld [vmem:[#allocation6 + $0x744] sm:$0xf]  ;;  %v4095_v49 = vor.u32 %v4722_v47, %v4094_v46  ;;  %v4176_v37 = vld [vmem:[#allocation6 + $0x848] sm:$0xf0] }
 0x3b9   :  { %2320 = vmatpush.bf16.msra.mxu0 %v4075_v48  ;;  %v4051_v45 = vor.u32 %v4709_v42, %v4048_v44  ;;  %v4721_v48 = vld [vmem:[#allocation6 + $0x7a4] sm:$0xf]  ;;  %v1864_v42 = vld [vmem:[#allocation7 + $0xc] sm:$0x3] }
 0x3bb   :  { %2336 = vmatpush.bf16.msra.mxu1 %v4123_v15  ;;  %2293 = vmatpush.bf16.msrb.mxu2 %v4063_v19  ;;  %v4702_v19 = vld [vmem:[#allocation6 + $0x704] sm:$0xf0] }
 0x3bc   :  { %2308 = vmatpush.bf16.msrb.mxu3 %v4119_v13  ;;  %v4704_v13 = vld [vmem:[#allocation6 + $0x714] sm:$0xf0]  ;;  %v4015_v21 = vor.u32 %v4702_v19, %v4014_v18  ;;  %v4757_v18 = vld [vmem:[#allocation6 + $0x8c4] sm:$0xf]  ;;  %v4240_v19 = vld [vmem:[#allocation6 + $0x8c8] sm:$0xf0] }
 0x3bd   :  { %2321 = vmatpush.bf16.msra.mxu0 %v4067_v23  ;;  %v4023_v15 = vor.u32 %v4704_v13, %v4022_v12  ;;  %v4019_v23 = vor.u32 %v4701_v20, %v4016_v22  ;;  %v4192_v13 = vld [vmem:[#allocation6 + $0x868] sm:$0xf0]  ;;  %v4243_v20 = vor.u32 %v4757_v18, %v4240_v19  ;;  %v4744_v22 = vld [vmem:[#allocation6 + $0x854] sm:$0xf0]  ;;  %v4795_v19 = vld [vmem:[#allocation6 + $0x9f4] sm:$0xf] }
 0x3be   :  { %v4796_v18 = vld [vmem:[#allocation6 + $0x9f4] sm:$0xf0] }
 0x3bf   :  { %2337 = vmatpush.bf16.msra.mxu1 %v4115_v27  ;;  %2294 = vmatpush.bf16.msrb.mxu2 %v4055_v31  ;;  %v4267_v31 = vor.u32 %v4763_v26, %v4264_v28  ;;  %v4756_v28 = vld [vmem:[#allocation6 + $0x8b4] sm:$0xf0] }
 0x3c0   :  { %2309 = vmatpush.bf16.msrb.mxu3 %v4111_v24  ;;  %v4262_v24 = vld [vmem:[#allocation6 + $0x8f0] sm:$0xf] }
 0x3c1   :  { %2322 = vmatpush.bf16.msra.mxu0 %v4059_v33  ;;  %v4263_v27 = vor.u32 %v4764_v25, %v4262_v24  ;;  %v4256_v33 = vld [vmem:[#allocation6 + $0x8e8] sm:$0xf0]  ;;  %v4184_v25 = vld [vmem:[#allocation6 + $0x858] sm:$0xf0] }
 0x3c3   :  { %2338 = vmatpush.bf16.msra.mxu1 %v4107_v39  ;;  %2295 = vmatpush.bf16.msrb.mxu2 %v4047_v43  ;;  %v4259_v39 = vor.u32 %v4761_v32, %v4256_v33  ;;  %v4174_v33 = vld [vmem:[#allocation6 + $0x840] sm:$0xf] }
 0x3c4   :  { %2310 = vmatpush.bf16.msrb.mxu3 %v4103_v36  ;;  %v4748_v36 = vld [vmem:[#allocation6 + $0x874] sm:$0xf0] }
 0x3c5   :  { %2323 = vmatpush.bf16.msra.mxu0 %v4051_v45  ;;  %v4199_v40 = vor.u32 %v4748_v36, %v4198_v34  ;;  %v1867_v45 = vperm.slane %v1864_v42, 1  ;;  %v4742_v34 = vld [vmem:[#allocation6 + $0x844] sm:$0xf0] }
 0x3c6   :  { %v4175_v36 = vor.u32 %v4742_v34, %v4174_v33 }
 0x3c8   :  { %2311 = vmatpush.bf16.msrb.mxu3 %v4095_v49  ;;  %v1866_v49 = vperm.slane %v1864_v42, 0 }
 0x425   :  { %v1819_v50 = vpop.f32.mrf.mxu1 }
 0x42b   :  { %v1805_v51 = vpop.f32.mrf.mxu0  ;;  %v1791_v54 = vpop.f32.mrf.mxu3 }
 0x42c   :  { %v1806_v53 = vadd.f32 %v1805_v51, %v1605_v52 }
 0x42d   :  { %v1821_v60 = vpop.f32.mrf.mxu1 }
 0x42e   :  { %v1820_v58 = vadd.f32 %v1819_v50, %v1806_v53  ;;  %v4096_v50 = vld [vmem:[#allocation6 + $0x7a8] sm:$0xf0]  ;;  %v4708_v53 = vld [vmem:[#allocation6 + $0x734] sm:$0xf0] }
 0x42f   :  { %v4099_v51 = vor.u32 %v4721_v48, %v4096_v50 }
 0x430   :  { %v1825_v63 = vmax.f32 %v1820_v58, 0.0  ;;  %v4086_v58 = vld [vmem:[#allocation6 + $0x790] sm:$0xf] }
 0x431   :  { %v1777_v55 = vpop.f32.mrf.mxu2  ;;  %2339 = vmatpush.bf16.msra.mxu1 %v4099_v51 }
 0x432   :  { %v1778_v61 = vadd.f32 %v1777_v55, %v1604_v56 }
 0x433   :  { %v1807_v57 = vpop.f32.mrf.mxu0  ;;  %v1793_v5 = vpop.f32.mrf.mxu3 }
 0x434   :  { %v1808_v59 = vadd.f32 %v1807_v57, %v1605_v52  ;;  %v1792_v2 = vadd.f32 %v1791_v54, %v1778_v61  ;;  %v4038_v52 = vld [vmem:[#allocation6 + $0x730] sm:$0xf]  ;;  %v4707_v54 = vld [vmem:[#allocation6 + $0x734] sm:$0xf] }
 0x435   :  { %v4039_v55 = vor.u32 %v4708_v53, %v4038_v52 }
 0x436   :  { %v1822_v62 = vadd.f32 %v1821_v60, %v1808_v59  ;;  %v1824_v7 = vmax.f32 %v1792_v2, 0.0  ;;  %v4720_v59 = vld [vmem:[#allocation6 + $0x794] sm:$0xf0]  ;;  %v4719_v60 = vld [vmem:[#allocation6 + $0x794] sm:$0xf] }
 0x437   :  { %2296 = vmatpush.bf16.msrb.mxu2 %v4039_v55  ;;  %v4087_v61 = vor.u32 %v4720_v59, %v4086_v58  ;;  %v4705_v2 = vld [vmem:[#allocation6 + $0x724] sm:$0xf] }
 0x438   :  { %v1827_v0 = vmax.f32 %v1822_v62, 0.0  ;;  %v4088_v62 = vld [vmem:[#allocation6 + $0x798] sm:$0xf0] }
 0x439   :  { %v1779_v1 = vpop.f32.mrf.mxu2  ;;  %2312 = vmatpush.bf16.msrb.mxu3 %v4087_v61 }
 0x43a   :  { %v1829_v3 = vpack.c.bf16 %v1827_v0, %v1825_v63  ;;  %v1780_v4 = vadd.f32 %v1779_v1, %v1604_v56  ;;  %v4040_v56 = vld [vmem:[#allocation6 + $0x738] sm:$0xf0]  ;;  %v4091_v63 = vor.u32 %v4719_v60, %v4088_v62  ;;  %v4030_v0 = vld [vmem:[#allocation6 + $0x720] sm:$0xf]  ;;  %v4706_v1 = vld [vmem:[#allocation6 + $0x724] sm:$0xf0] }
 0x43b   :  { %v4043_v57 = vor.u32 %v4707_v54, %v4040_v56 }
 0x43c   :  { %v1794_v6 = vadd.f32 %v1793_v5, %v1780_v4  ;;  %2052 = vmatmul.bf16.vlgmr.msra.gmra.mxu3 %v1829_v3  ;;  %2080 = vmatmul.bf16.vlgmr.msrb.gmra.mxu1 %v1829_v3  ;;  %v4031_v3 = vor.u32 %v4706_v1, %v4030_v0  ;;  %v4032_v4 = vld [vmem:[#allocation6 + $0x728] sm:$0xf0] }
 0x43d   :  { %2324 = vmatpush.bf16.msra.mxu0 %v4043_v57  ;;  %2340 = vmatpush.bf16.msra.mxu1 %v4091_v63  ;;  %v4035_v5 = vor.u32 %v4705_v2, %v4032_v4  ;;  %v4760_v4 = vld [vmem:[#allocation6 + $0x8d4] sm:$0xf0] }
 0x43e   :  { %v1826_v8 = vmax.f32 %v1794_v6, 0.0  ;;  %v4078_v6 = vld [vmem:[#allocation6 + $0x780] sm:$0xf]  ;;  %2297 = vmatpush.bf16.msrb.mxu2 %v4031_v3  ;;  %v4246_v3 = vld [vmem:[#allocation6 + $0x8d0] sm:$0xf] }
 0x440   :  { %v1828_v9 = vpack.c.bf16 %v1826_v8, %v1824_v7  ;;  %v4718_v7 = vld [vmem:[#allocation6 + $0x784] sm:$0xf0]  ;;  %v4717_v8 = vld [vmem:[#allocation6 + $0x784] sm:$0xf] }
 0x441   :  { %2325 = vmatpush.bf16.msra.mxu0 %v4035_v5  ;;  %v4083_v11 = vor.u32 %v4717_v8, %v4080_v10  ;;  %v4759_v5 = vld [vmem:[#allocation6 + $0x8d4] sm:$0xf]  ;;  %v4746_v10 = vld [vmem:[#allocation6 + $0x864] sm:$0xf0] }
 0x442   :  { %2038 = vmatmul.bf16.vlgmr.msra.gmra.mxu2 %v1828_v9  ;;  %2066 = vmatmul.bf16.vlgmr.msrb.gmra.mxu0 %v1828_v9  ;;  %v4079_v9 = vor.u32 %v4718_v7, %v4078_v6  ;;  %v4247_v6 = vor.u32 %v4760_v4, %v4246_v3  ;;  %v4248_v7 = vld [vmem:[#allocation6 + $0x8d8] sm:$0xf0]  ;;  %v4208_v3 = vld [vmem:[#allocation6 + $0x888] sm:$0xf0] }
 0x443   :  { %2341 = vmatpush.bf16.msra.mxu1 %v4083_v11  ;;  %2298 = vmatpush.bf16.msrb.mxu2 %v4023_v15  ;;  %v4251_v8 = vor.u32 %v4759_v5, %v4248_v7  ;;  %v4745_v11 = vld [vmem:[#allocation6 + $0x864] sm:$0xf]  ;;  %v4758_v15 = vld [vmem:[#allocation6 + $0x8c4] sm:$0xf0]  ;;  %v4150_v5 = vld [vmem:[#allocation6 + $0x810] sm:$0xf] }
 0x444   :  { %2313 = vmatpush.bf16.msrb.mxu3 %v4079_v9  ;;  %v4190_v9 = vld [vmem:[#allocation6 + $0x860] sm:$0xf]  ;;  %v4195_v16 = vor.u32 %v4745_v11, %v4192_v13  ;;  %v4735_v7 = vld [vmem:[#allocation6 + $0x814] sm:$0xf]  ;;  %v4733_v13 = vld [vmem:[#allocation6 + $0x804] sm:$0xf] }
 0x445   :  { %2326 = vmatpush.bf16.msra.mxu0 %v4027_v17  ;;  %v4191_v12 = vor.u32 %v4746_v10, %v4190_v9  ;;  %v4239_v17 = vor.u32 %v4758_v15, %v4238_v14  ;;  %v4152_v9 = vld [vmem:[#allocation6 + $0x818] sm:$0xf0]  ;;  %v4142_v11 = vld [vmem:[#allocation6 + $0x800] sm:$0xf]  ;;  %v4144_v15 = vld [vmem:[#allocation6 + $0x808] sm:$0xf0] }
 0x446   :  { %v4155_v10 = vor.u32 %v4735_v7, %v4152_v9  ;;  %v4366_v7 = vld [vmem:[#allocation6 + $0x9c0] sm:$0xf] }
 0x447   :  { %2299 = vmatpush.bf16.msrb.mxu2 %v4015_v21  ;;  %2596 = vmatpush.bf16.msrb.mxu1 %v4267_v31  ;;  %v4182_v21 = vld [vmem:[#allocation6 + $0x850] sm:$0xf]  ;;  %v4232_v31 = vld [vmem:[#allocation6 + $0x8b8] sm:$0xf0] }
 0x448   :  { %2568 = vmatpush.bf16.msra.mxu3 %v4263_v27  ;;  %v4183_v24 = vor.u32 %v4744_v22, %v4182_v21  ;;  %v4230_v27 = vld [vmem:[#allocation6 + $0x8b0] sm:$0xf]  ;;  %v4235_v32 = vor.u32 %v4755_v30, %v4232_v31  ;;  %v4392_v21 = vld [vmem:[#allocation6 + $0x9f8] sm:$0xf0]  ;;  %v4382_v22 = vld [vmem:[#allocation6 + $0x9e0] sm:$0xf] }
 0x449   :  { %2327 = vmatpush.bf16.msra.mxu0 %v4019_v23  ;;  %v4743_v23 = vld [vmem:[#allocation6 + $0x854] sm:$0xf]  ;;  %v4231_v29 = vor.u32 %v4756_v28, %v4230_v27  ;;  %v4326_v27 = vld [vmem:[#allocation6 + $0x970] sm:$0xf]  ;;  %v4328_v31 = vld [vmem:[#allocation6 + $0x978] sm:$0xf0] }
 0x44a   :  { %v4187_v26 = vor.u32 %v4743_v23, %v4184_v25  ;;  %v4794_v23 = vld [vmem:[#allocation6 + $0x9e4] sm:$0xf0]  ;;  %v4793_v25 = vld [vmem:[#allocation6 + $0x9e4] sm:$0xf]  ;;  %v4779_v30 = vld [vmem:[#allocation6 + $0x974] sm:$0xf] }
 0x44b   :  { %2554 = vmatpush.bf16.msra.mxu2 %v4199_v40  ;;  %2597 = vmatpush.bf16.msrb.mxu1 %v4259_v39  ;;  %v4222_v39 = vld [vmem:[#allocation6 + $0x8a0] sm:$0xf]  ;;  %v4754_v40 = vld [vmem:[#allocation6 + $0x8a4] sm:$0xf0]  ;;  %v4383_v28 = vor.u32 %v4794_v23, %v4382_v22  ;;  %v4331_v34 = vor.u32 %v4779_v30, %v4328_v31  ;;  %v4787_v23 = vld [vmem:[#allocation6 + $0x9b4] sm:$0xf] }
 0x44c   :  { %2569 = vmatpush.bf16.msra.mxu3 %v4255_v35  ;;  %v4741_v35 = vld [vmem:[#allocation6 + $0x844] sm:$0xf]  ;;  %v4223_v42 = vor.u32 %v4754_v40, %v4222_v39  ;;  %v4304_v30 = vld [vmem:[#allocation6 + $0x948] sm:$0xf0] }
 0x44d   :  { %2582 = vmatpush.bf16.msrb.mxu0 %v4203_v41  ;;  %v4179_v38 = vor.u32 %v4741_v35, %v4176_v37  ;;  %v4753_v41 = vld [vmem:[#allocation6 + $0x8a4] sm:$0xf]  ;;  %v2126_v35 = vld [vmem:[#allocation7 + $0xe] sm:$0x3] }
 0x44f   :  { %2598 = vmatpush.bf16.msrb.mxu1 %v4251_v8  ;;  %2555 = vmatpush.bf16.msra.mxu2 %v4191_v12  ;;  %v4734_v12 = vld [vmem:[#allocation6 + $0x804] sm:$0xf0] }
 0x450   :  { %2570 = vmatpush.bf16.msra.mxu3 %v4247_v6  ;;  %v4736_v6 = vld [vmem:[#allocation6 + $0x814] sm:$0xf0]  ;;  %v4143_v14 = vor.u32 %v4734_v12, %v4142_v11  ;;  %v4789_v11 = vld [vmem:[#allocation6 + $0x9c4] sm:$0xf]  ;;  %v4368_v12 = vld [vmem:[#allocation6 + $0x9c8] sm:$0xf0] }
 0x451   :  { %2583 = vmatpush.bf16.msrb.mxu0 %v4195_v16  ;;  %v4151_v8 = vor.u32 %v4736_v6, %v4150_v5  ;;  %v4147_v16 = vor.u32 %v4733_v13, %v4144_v15  ;;  %v4320_v6 = vld [vmem:[#allocation6 + $0x968] sm:$0xf0]  ;;  %v4371_v13 = vor.u32 %v4789_v11, %v4368_v12  ;;  %v4776_v15 = vld [vmem:[#allocation6 + $0x954] sm:$0xf0]  ;;  %v4811_v12 = vld [vmem:[#allocation9 + $0x70] sm:$0xff] }
 0x452   :  { %v4804_v11 = vld [vmem:[#allocation9 + $0x38] sm:$0xff] }
 0x453   :  { %2599 = vmatpush.bf16.msrb.mxu1 %v4243_v20  ;;  %2556 = vmatpush.bf16.msra.mxu2 %v4183_v24  ;;  %v4395_v24 = vor.u32 %v4795_v19, %v4392_v21  ;;  %v4788_v21 = vld [vmem:[#allocation6 + $0x9b4] sm:$0xf0] }
 0x454   :  { %2571 = vmatpush.bf16.msra.mxu3 %v4239_v17  ;;  %v4390_v17 = vld [vmem:[#allocation6 + $0x9f0] sm:$0xf] }
 0x455   :  { %2584 = vmatpush.bf16.msrb.mxu0 %v4187_v26  ;;  %v4391_v20 = vor.u32 %v4796_v18, %v4390_v17  ;;  %v4384_v26 = vld [vmem:[#allocation6 + $0x9e8] sm:$0xf0]  ;;  %v4312_v18 = vld [vmem:[#allocation6 + $0x958] sm:$0xf0] }
 0x457   :  { %2600 = vmatpush.bf16.msrb.mxu1 %v4235_v32  ;;  %2557 = vmatpush.bf16.msra.mxu2 %v4175_v36  ;;  %v4387_v32 = vor.u32 %v4793_v25, %v4384_v26  ;;  %v4302_v26 = vld [vmem:[#allocation6 + $0x940] sm:$0xf] }
 0x458   :  { %2572 = vmatpush.bf16.msra.mxu3 %v4231_v29  ;;  %v4780_v29 = vld [vmem:[#allocation6 + $0x974] sm:$0xf0] }
 0x459   :  { %2585 = vmatpush.bf16.msrb.mxu0 %v4179_v38  ;;  %v4327_v33 = vor.u32 %v4780_v29, %v4326_v27  ;;  %v2129_v38 = vperm.slane %v2126_v35, 1  ;;  %v4774_v27 = vld [vmem:[#allocation6 + $0x944] sm:$0xf0] }
 0x45a   :  { %v4303_v29 = vor.u32 %v4774_v27, %v4302_v26 }
 0x45c   :  { %2573 = vmatpush.bf16.msra.mxu3 %v4223_v42  ;;  %v2128_v42 = vperm.slane %v2126_v35, 0 }
 0x4b9   :  { %v2081_v43 = vpop.f32.mrf.mxu1 }
 0x4bf   :  { %v2067_v44 = vpop.f32.mrf.mxu0  ;;  %v2053_v47 = vpop.f32.mrf.mxu3 }
 0x4c0   :  { %v2068_v46 = vadd.f32 %v2067_v44, %v1867_v45 }
 0x4c1   :  { %v2083_v53 = vpop.f32.mrf.mxu1 }
 0x4c2   :  { %v2082_v51 = vadd.f32 %v2081_v43, %v2068_v46  ;;  %v4224_v43 = vld [vmem:[#allocation6 + $0x8a8] sm:$0xf0]  ;;  %v4740_v46 = vld [vmem:[#allocation6 + $0x834] sm:$0xf0] }
 0x4c3   :  { %v4227_v44 = vor.u32 %v4753_v41, %v4224_v43 }
 0x4c4   :  { %v2087_v56 = vmax.f32 %v2082_v51, 0.0  ;;  %v4214_v51 = vld [vmem:[#allocation6 + $0x890] sm:$0xf] }
 0x4c5   :  { %v2039_v48 = vpop.f32.mrf.mxu2  ;;  %2601 = vmatpush.bf16.msrb.mxu1 %v4227_v44 }
 0x4c6   :  { %v2040_v54 = vadd.f32 %v2039_v48, %v1866_v49 }
 0x4c7   :  { %v2069_v50 = vpop.f32.mrf.mxu0  ;;  %v2055_v62 = vpop.f32.mrf.mxu3 }
 0x4c8   :  { %v2070_v52 = vadd.f32 %v2069_v50, %v1867_v45  ;;  %v2054_v59 = vadd.f32 %v2053_v47, %v2040_v54  ;;  %v4166_v45 = vld [vmem:[#allocation6 + $0x830] sm:$0xf]  ;;  %v4739_v47 = vld [vmem:[#allocation6 + $0x834] sm:$0xf] }
 0x4c9   :  { %v4167_v48 = vor.u32 %v4740_v46, %v4166_v45 }
 0x4ca   :  { %v2084_v55 = vadd.f32 %v2083_v53, %v2070_v52  ;;  %v2086_v0 = vmax.f32 %v2054_v59, 0.0  ;;  %v4752_v52 = vld [vmem:[#allocation6 + $0x894] sm:$0xf0]  ;;  %v4751_v53 = vld [vmem:[#allocation6 + $0x894] sm:$0xf] }
 0x4cb   :  { %2558 = vmatpush.bf16.msra.mxu2 %v4167_v48  ;;  %v4215_v54 = vor.u32 %v4752_v52, %v4214_v51  ;;  %v4737_v59 = vld [vmem:[#allocation6 + $0x824] sm:$0xf] }
 0x4cc   :  { %v2089_v57 = vmax.f32 %v2084_v55, 0.0  ;;  %v4216_v55 = vld [vmem:[#allocation6 + $0x898] sm:$0xf0] }
 0x4cd   :  { %v2041_v58 = vpop.f32.mrf.mxu2  ;;  %2574 = vmatpush.bf16.msra.mxu3 %v4215_v54 }
 0x4ce   :  { %v2091_v60 = vpack.c.bf16 %v2089_v57, %v2087_v56  ;;  %v2042_v61 = vadd.f32 %v2041_v58, %v1866_v49  ;;  %v4168_v49 = vld [vmem:[#allocation6 + $0x838] sm:$0xf0]  ;;  %v4219_v56 = vor.u32 %v4751_v53, %v4216_v55  ;;  %v4158_v57 = vld [vmem:[#allocation6 + $0x820] sm:$0xf]  ;;  %v4738_v58 = vld [vmem:[#allocation6 + $0x824] sm:$0xf0] }
 0x4cf   :  { %v4171_v50 = vor.u32 %v4739_v47, %v4168_v49 }
 0x4d0   :  { %v2056_v63 = vadd.f32 %v2055_v62, %v2042_v61  ;;  %2314 = vmatmul.bf16.vlgmr.msrb.gmra.mxu3 %v2091_v60  ;;  %2342 = vmatmul.bf16.vlgmr.msra.gmra.mxu1 %v2091_v60  ;;  %v4159_v60 = vor.u32 %v4738_v58, %v4158_v57  ;;  %v4160_v61 = vld [vmem:[#allocation6 + $0x828] sm:$0xf0] }
 0x4d1   :  { %2586 = vmatpush.bf16.msrb.mxu0 %v4171_v50  ;;  %2602 = vmatpush.bf16.msrb.mxu1 %v4219_v56  ;;  %v4163_v62 = vor.u32 %v4737_v59, %v4160_v61  ;;  %v4792_v61 = vld [vmem:[#allocation6 + $0x9d4] sm:$0xf0] }
 0x4d2   :  { %v2088_v1 = vmax.f32 %v2056_v63, 0.0  ;;  %v4206_v63 = vld [vmem:[#allocation6 + $0x880] sm:$0xf]  ;;  %2559 = vmatpush.bf16.msra.mxu2 %v4159_v60  ;;  %v4374_v60 = vld [vmem:[#allocation6 + $0x9d0] sm:$0xf] }
 0x4d4   :  { %v2090_v2 = vpack.c.bf16 %v2088_v1, %v2086_v0  ;;  %v4750_v0 = vld [vmem:[#allocation6 + $0x884] sm:$0xf0]  ;;  %v4749_v1 = vld [vmem:[#allocation6 + $0x884] sm:$0xf] }
 0x4d5   :  { %2587 = vmatpush.bf16.msrb.mxu0 %v4163_v62  ;;  %v4211_v4 = vor.u32 %v4749_v1, %v4208_v3  ;;  %v4791_v62 = vld [vmem:[#allocation6 + $0x9d4] sm:$0xf]  ;;  %v4778_v3 = vld [vmem:[#allocation6 + $0x964] sm:$0xf0] }
 0x4d6   :  { %2300 = vmatmul.bf16.vlgmr.msrb.gmra.mxu2 %v2090_v2  ;;  %2328 = vmatmul.bf16.vlgmr.msra.gmra.mxu0 %v2090_v2  ;;  %v4207_v2 = vor.u32 %v4750_v0, %v4206_v63  ;;  %v4375_v63 = vor.u32 %v4792_v61, %v4374_v60  ;;  %v4376_v0 = vld [vmem:[#allocation6 + $0x9d8] sm:$0xf0]  ;;  %v4336_v60 = vld [vmem:[#allocation6 + $0x988] sm:$0xf0] }
 0x4d7   :  { %2603 = vmatpush.bf16.msrb.mxu1 %v4211_v4  ;;  %2560 = vmatpush.bf16.msra.mxu2 %v4151_v8  ;;  %v4379_v1 = vor.u32 %v4791_v62, %v4376_v0  ;;  %v4777_v4 = vld [vmem:[#allocation6 + $0x964] sm:$0xf]  ;;  %v4790_v8 = vld [vmem:[#allocation6 + $0x9c4] sm:$0xf0]  ;;  %v4278_v62 = vld [vmem:[#allocation6 + $0x910] sm:$0xf] }
 0x4d8   :  { %2575 = vmatpush.bf16.msra.mxu3 %v4207_v2  ;;  %v4318_v2 = vld [vmem:[#allocation6 + $0x960] sm:$0xf]  ;;  %v4323_v9 = vor.u32 %v4777_v4, %v4320_v6  ;;  %v4767_v0 = vld [vmem:[#allocation6 + $0x914] sm:$0xf]  ;;  %v4765_v6 = vld [vmem:[#allocation6 + $0x904] sm:$0xf] }
 0x4d9   :  { %2588 = vmatpush.bf16.msrb.mxu0 %v4155_v10  ;;  %v4319_v5 = vor.u32 %v4778_v3, %v4318_v2  ;;  %v4367_v10 = vor.u32 %v4790_v8, %v4366_v7  ;;  %v4280_v2 = vld [vmem:[#allocation6 + $0x918] sm:$0xf0]  ;;  %v4270_v4 = vld [vmem:[#allocation6 + $0x900] sm:$0xf]  ;;  %v4272_v8 = vld [vmem:[#allocation6 + $0x908] sm:$0xf0] }
 0x4da   :  { %v4283_v3 = vor.u32 %v4767_v0, %v4280_v2 }
 0x4db   :  { %2561 = vmatpush.bf16.msra.mxu2 %v4143_v14  ;;  %2858 = vmatpush.bf16.msra.mxu1 %v4395_v24  ;;  %v4310_v14 = vld [vmem:[#allocation6 + $0x950] sm:$0xf]  ;;  %v4360_v24 = vld [vmem:[#allocation6 + $0x9b8] sm:$0xf0] }
 0x4dc   :  { %2830 = vmatpush.bf16.msrb.mxu3 %v4391_v20  ;;  %v4311_v17 = vor.u32 %v4776_v15, %v4310_v14  ;;  %v4358_v20 = vld [vmem:[#allocation6 + $0x9b0] sm:$0xf]  ;;  %v4363_v25 = vor.u32 %v4787_v23, %v4360_v24 }
 0x4dd   :  { %2589 = vmatpush.bf16.msrb.mxu0 %v4147_v16  ;;  %v4775_v16 = vld [vmem:[#allocation6 + $0x954] sm:$0xf]  ;;  %v4359_v22 = vor.u32 %v4788_v21, %v4358_v20 }
 0x4de   :  { %v4315_v19 = vor.u32 %v4775_v16, %v4312_v18 }
 0x4df   :  { %2816 = vmatpush.bf16.msrb.mxu2 %v4327_v33  ;;  %2859 = vmatpush.bf16.msra.mxu1 %v4387_v32  ;;  %v4350_v32 = vld [vmem:[#allocation6 + $0x9a0] sm:$0xf]  ;;  %v4786_v33 = vld [vmem:[#allocation6 + $0x9a4] sm:$0xf0] }
 0x4e0   :  { %2831 = vmatpush.bf16.msrb.mxu3 %v4383_v28  ;;  %v4773_v28 = vld [vmem:[#allocation6 + $0x944] sm:$0xf]  ;;  %v4351_v35 = vor.u32 %v4786_v33, %v4350_v32 }
 0x4e1   :  { %2844 = vmatpush.bf16.msra.mxu0 %v4331_v34  ;;  %v4307_v31 = vor.u32 %v4773_v28, %v4304_v30  ;;  %v4785_v34 = vld [vmem:[#allocation6 + $0x9a4] sm:$0xf] }
 0x4e3   :  { %2860 = vmatpush.bf16.msra.mxu1 %v4379_v1  ;;  %2817 = vmatpush.bf16.msrb.mxu2 %v4319_v5  ;;  %v4766_v5 = vld [vmem:[#allocation6 + $0x904] sm:$0xf0] }
 0x4e4   :  { %2832 = vmatpush.bf16.msrb.mxu3 %v4375_v63  ;;  %v4768_v63 = vld [vmem:[#allocation6 + $0x914] sm:$0xf0]  ;;  %v4271_v7 = vor.u32 %v4766_v5, %v4270_v4 }
 0x4e5   :  { %2845 = vmatpush.bf16.msra.mxu0 %v4323_v9  ;;  %v4279_v1 = vor.u32 %v4768_v63, %v4278_v62  ;;  %v4275_v9 = vor.u32 %v4765_v6, %v4272_v8 }
 0x4e7   :  { %2861 = vmatpush.bf16.msra.mxu1 %v4371_v13  ;;  %2818 = vmatpush.bf16.msrb.mxu2 %v4311_v17  ;;  %v2388_v13 = vld [vmem:[#allocation7 + $0x10] sm:$0x3] }
 0x4e8   :  { %2833 = vmatpush.bf16.msrb.mxu3 %v4367_v10  ;;  %v4812_v10 = vld [vmem:[#allocation9 + $0x78] sm:$0xff]  ;;  %v2391_v16 = vperm.slane %v2388_v13, 1  ;;  %v2390_v20 = vperm.slane %v2388_v13, 0 }
 0x4e9   :  { %2846 = vmatpush.bf16.msra.mxu0 %v4315_v19 }
 0x4eb   :  { %2862 = vmatpush.bf16.msra.mxu1 %v4363_v25  ;;  %2819 = vmatpush.bf16.msrb.mxu2 %v4303_v29 }
 0x4ec   :  { %2834 = vmatpush.bf16.msrb.mxu3 %v4359_v22 }
 0x4ed   :  { %2847 = vmatpush.bf16.msra.mxu0 %v4307_v31 }
 0x4f0   :  { %2835 = vmatpush.bf16.msrb.mxu3 %v4351_v35 }
 0x54d   :  { %v2343_v36 = vpop.f32.mrf.mxu1 }
 0x553   :  { %v2329_v37 = vpop.f32.mrf.mxu0  ;;  %v2315_v40 = vpop.f32.mrf.mxu3 }
 0x554   :  { %v2330_v39 = vadd.f32 %v2329_v37, %v2129_v38 }
 0x555   :  { %v2345_v46 = vpop.f32.mrf.mxu1 }
 0x556   :  { %v2344_v44 = vadd.f32 %v2343_v36, %v2330_v39  ;;  %v4352_v36 = vld [vmem:[#allocation6 + $0x9a8] sm:$0xf0]  ;;  %v4772_v39 = vld [vmem:[#allocation6 + $0x934] sm:$0xf0] }
 0x557   :  { %v4355_v37 = vor.u32 %v4785_v34, %v4352_v36 }
 0x558   :  { %v2349_v49 = vmax.f32 %v2344_v44, 0.0  ;;  %v4342_v44 = vld [vmem:[#allocation6 + $0x990] sm:$0xf] }
 0x559   :  { %v2301_v41 = vpop.f32.mrf.mxu2  ;;  %2863 = vmatpush.bf16.msra.mxu1 %v4355_v37 }
 0x55a   :  { %v2302_v47 = vadd.f32 %v2301_v41, %v2128_v42 }
 0x55b   :  { %v2331_v43 = vpop.f32.mrf.mxu0  ;;  %v2317_v55 = vpop.f32.mrf.mxu3 }
 0x55c   :  { %v2332_v45 = vadd.f32 %v2331_v43, %v2129_v38  ;;  %v2316_v52 = vadd.f32 %v2315_v40, %v2302_v47  ;;  %v4294_v38 = vld [vmem:[#allocation6 + $0x930] sm:$0xf]  ;;  %v4771_v40 = vld [vmem:[#allocation6 + $0x934] sm:$0xf] }
 0x55d   :  { %v4295_v41 = vor.u32 %v4772_v39, %v4294_v38  ;;  %v4810_v38 = vld [vmem:[#allocation9 + $0x68] sm:$0xff]  ;;  %v4803_v39 = vld [vmem:[#allocation9 + $0x30] sm:$0xff] }
 0x55e   :  { %v2346_v48 = vadd.f32 %v2345_v46, %v2332_v45  ;;  %v2348_v57 = vmax.f32 %v2316_v52, 0.0  ;;  %v4784_v45 = vld [vmem:[#allocation6 + $0x994] sm:$0xf0]  ;;  %v4783_v46 = vld [vmem:[#allocation6 + $0x994] sm:$0xf] }
 0x55f   :  { %2820 = vmatpush.bf16.msrb.mxu2 %v4295_v41  ;;  %v4343_v47 = vor.u32 %v4784_v45, %v4342_v44  ;;  %v4769_v52 = vld [vmem:[#allocation6 + $0x924] sm:$0xf]  ;;  %v4802_v41 = vld [vmem:[#allocation9 + $0x28] sm:$0xff]  ;;  %v4800_v45 = vld [vmem:[#allocation9 + $0x18] sm:$0xff] }
 0x560   :  { %v2351_v50 = vmax.f32 %v2346_v48, 0.0  ;;  %v4344_v48 = vld [vmem:[#allocation6 + $0x998] sm:$0xf0]  ;;  %v4807_v44 = vld [vmem:[#allocation9 + $0x50] sm:$0xff] }
 0x561   :  { %v2303_v51 = vpop.f32.mrf.mxu2  ;;  %2836 = vmatpush.bf16.msrb.mxu3 %v4343_v47  ;;  %v4799_v47 = vld [vmem:[#allocation9 + $0x10] sm:$0xff] }
 0x562   :  { %v2353_v53 = vpack.c.bf16 %v2351_v50, %v2349_v49  ;;  %v2304_v54 = vadd.f32 %v2303_v51, %v2128_v42  ;;  %v4296_v42 = vld [vmem:[#allocation6 + $0x938] sm:$0xf0]  ;;  %v4347_v49 = vor.u32 %v4783_v46, %v4344_v48  ;;  %v4286_v50 = vld [vmem:[#allocation6 + $0x920] sm:$0xf]  ;;  %v4770_v51 = vld [vmem:[#allocation6 + $0x924] sm:$0xf0] }
 0x563   :  { %v4299_v43 = vor.u32 %v4771_v40, %v4296_v42  ;;  %v4809_v40 = vld [vmem:[#allocation9 + $0x60] sm:$0xff]  ;;  %v4808_v42 = vld [vmem:[#allocation9 + $0x58] sm:$0xff]  ;;  %v4806_v46 = vld [vmem:[#allocation9 + $0x48] sm:$0xff] }
 0x564   :  { %v2318_v56 = vadd.f32 %v2317_v55, %v2304_v54  ;;  %2576 = vmatmul.bf16.vlgmr.msra.gmra.mxu3 %v2353_v53  ;;  %2604 = vmatmul.bf16.vlgmr.msrb.gmra.mxu1 %v2353_v53  ;;  %v4287_v53 = vor.u32 %v4770_v51, %v4286_v50  ;;  %v4288_v54 = vld [vmem:[#allocation6 + $0x928] sm:$0xf0]  ;;  %v4805_v48 = vld [vmem:[#allocation9 + $0x40] sm:$0xff]  ;;  %v2650_v51 = vld [vmem:[#allocation7 + $0x12] sm:$0x3] }
 0x565   :  { %2848 = vmatpush.bf16.msra.mxu0 %v4299_v43  ;;  %2864 = vmatpush.bf16.msra.mxu1 %v4347_v49  ;;  %v4291_v55 = vor.u32 %v4769_v52, %v4288_v54  ;;  %v4801_v43 = vld [vmem:[#allocation9 + $0x20] sm:$0xff]  ;;  %v4798_v49 = vld [vmem:[#allocation9 + $0x8] sm:$0xff]  ;;  %v2653_v54 = vperm.slane %v2650_v51, 1 }
 0x566   :  { %v2350_v58 = vmax.f32 %v2318_v56, 0.0  ;;  %v4334_v56 = vld [vmem:[#allocation6 + $0x980] sm:$0xf]  ;;  %2821 = vmatpush.bf16.msrb.mxu2 %v4287_v53  ;;  %v4797_v50 = vld [vmem:[#allocation9] sm:$0xff] }
 0x568   :  { %v2352_v59 = vpack.c.bf16 %v2350_v58, %v2348_v57  ;;  %v4782_v57 = vld [vmem:[#allocation6 + $0x984] sm:$0xf0]  ;;  %v4781_v58 = vld [vmem:[#allocation6 + $0x984] sm:$0xf] }
 0x569   :  { %2849 = vmatpush.bf16.msra.mxu0 %v4291_v55  ;;  %v4339_v61 = vor.u32 %v4781_v58, %v4336_v60  ;;  %v2652_v58 = vperm.slane %v2650_v51, 0 }
 0x56a   :  { %2562 = vmatmul.bf16.vlgmr.msra.gmra.mxu2 %v2352_v59  ;;  %2590 = vmatmul.bf16.vlgmr.msrb.gmra.mxu0 %v2352_v59  ;;  %v4335_v59 = vor.u32 %v4782_v57, %v4334_v56 }
 0x56b   :  { %2865 = vmatpush.bf16.msra.mxu1 %v4339_v61  ;;  %2822 = vmatpush.bf16.msrb.mxu2 %v4279_v1 }
 0x56c   :  { %2837 = vmatpush.bf16.msrb.mxu3 %v4335_v59 }
 0x56d   :  { %2850 = vmatpush.bf16.msra.mxu0 %v4283_v3 }
 0x56f   :  { %2823 = vmatpush.bf16.msrb.mxu2 %v4271_v7 }
 0x570   :  { %3024 = vmatpush.bf16.msra.mxu3 %v4812_v10 }
 0x571   :  { %2851 = vmatpush.bf16.msra.mxu0 %v4275_v9 }
 0x573   :  { %3010 = vmatpush.bf16.msra.mxu2 %v4804_v11 }
 0x574   :  { %3025 = vmatpush.bf16.msra.mxu3 %v4811_v12  ;;  %v4825_v12 = vld [vmem:[#allocation10] ss:$0 sm:$0xff] }
 0x577   :  { %3011 = vmatpush.bf16.msra.mxu2 %v4803_v39 }
 0x578   :  { %3026 = vmatpush.bf16.msra.mxu3 %v4810_v38 }
 0x57b   :  { %3012 = vmatpush.bf16.msra.mxu2 %v4802_v41 }
 0x57c   :  { %3027 = vmatpush.bf16.msra.mxu3 %v4809_v40 }
 0x57f   :  { %3013 = vmatpush.bf16.msra.mxu2 %v4801_v43 }
 0x580   :  { %3028 = vmatpush.bf16.msra.mxu3 %v4808_v42 }
 0x583   :  { %3014 = vmatpush.bf16.msra.mxu2 %v4800_v45 }
 0x584   :  { %3029 = vmatpush.bf16.msra.mxu3 %v4807_v44 }
 0x587   :  { %3015 = vmatpush.bf16.msra.mxu2 %v4799_v47 }
 0x588   :  { %3030 = vmatpush.bf16.msra.mxu3 %v4806_v46 }
 0x58b   :  { %3016 = vmatpush.bf16.msra.mxu2 %v4798_v49 }
 0x58c   :  { %3031 = vmatpush.bf16.msra.mxu3 %v4805_v48 }
 0x58f   :  { %3017 = vmatpush.bf16.msra.mxu2 %v4797_v50 }
 0x5e1   :  { %v2605_v14 = vpop.f32.mrf.mxu1 }
 0x5e7   :  { %v2591_v15 = vpop.f32.mrf.mxu0  ;;  %v2577_v18 = vpop.f32.mrf.mxu3 }
 0x5e8   :  { %v2592_v17 = vadd.f32 %v2591_v15, %v2391_v16 }
 0x5e9   :  { %v2607_v24 = vpop.f32.mrf.mxu1 }
 0x5ea   :  { %v2606_v22 = vadd.f32 %v2605_v14, %v2592_v17 }
 0x5ec   :  { %v2611_v27 = vmax.f32 %v2606_v22, 0.0 }
 0x5ed   :  { %v2563_v19 = vpop.f32.mrf.mxu2 }
 0x5ee   :  { %v2564_v25 = vadd.f32 %v2563_v19, %v2390_v20 }
 0x5ef   :  { %v2593_v21 = vpop.f32.mrf.mxu0  ;;  %v2579_v33 = vpop.f32.mrf.mxu3 }
 0x5f0   :  { %v2594_v23 = vadd.f32 %v2593_v21, %v2391_v16  ;;  %v2578_v30 = vadd.f32 %v2577_v18, %v2564_v25 }
 0x5f2   :  { %v2608_v26 = vadd.f32 %v2607_v24, %v2594_v23  ;;  %v2610_v35 = vmax.f32 %v2578_v30, 0.0 }
 0x5f4   :  { %v2613_v28 = vmax.f32 %v2608_v26, 0.0 }
 0x5f5   :  { %v2565_v29 = vpop.f32.mrf.mxu2 }
 0x5f6   :  { %v2615_v31 = vpack.c.bf16 %v2613_v28, %v2611_v27  ;;  %v2566_v32 = vadd.f32 %v2565_v29, %v2390_v20 }
 0x5f8   :  { %v2580_v34 = vadd.f32 %v2579_v33, %v2566_v32  ;;  %2838 = vmatmul.bf16.vlgmr.msrb.gmra.mxu3 %v2615_v31  ;;  %2866 = vmatmul.bf16.vlgmr.msra.gmra.mxu1 %v2615_v31 }
 0x5fa   :  { %v2612_v36 = vmax.f32 %v2580_v34, 0.0 }
 0x5fc   :  { %v2614_v37 = vpack.c.bf16 %v2612_v36, %v2610_v35 }
 0x5fe   :  { %2824 = vmatmul.bf16.vlgmr.msrb.gmra.mxu2 %v2614_v37  ;;  %2852 = vmatmul.bf16.vlgmr.msra.gmra.mxu0 %v2614_v37 }
 0x675   :  { %v2867_v52 = vpop.f32.mrf.mxu1 }
 0x67b   :  { %v2853_v53 = vpop.f32.mrf.mxu0  ;;  %v2839_v56 = vpop.f32.mrf.mxu3 }
 0x67c   :  { %v2854_v55 = vadd.f32 %v2853_v53, %v2653_v54 }
 0x67d   :  { %v2869_v62 = vpop.f32.mrf.mxu1 }
 0x67e   :  { %v2868_v60 = vadd.f32 %v2867_v52, %v2854_v55 }
 0x680   :  { %v2873_v1 = vmax.f32 %v2868_v60, 0.0 }
 0x681   :  { %v2825_v57 = vpop.f32.mrf.mxu2 }
 0x682   :  { %v2826_v63 = vadd.f32 %v2825_v57, %v2652_v58 }
 0x683   :  { %v2855_v59 = vpop.f32.mrf.mxu0  ;;  %v2841_v7 = vpop.f32.mrf.mxu3 }
 0x684   :  { %v2856_v61 = vadd.f32 %v2855_v59, %v2653_v54  ;;  %v2840_v4 = vadd.f32 %v2839_v56, %v2826_v63 }
 0x686   :  { %v2870_v0 = vadd.f32 %v2869_v62, %v2856_v61  ;;  %v2872_v9 = vmax.f32 %v2840_v4, 0.0 }
 0x688   :  { %v2875_v2 = vmax.f32 %v2870_v0, 0.0 }
 0x689   :  { %v2827_v3 = vpop.f32.mrf.mxu2 }
 0x68a   :  { %v2877_v5 = vpack.c.bf16 %v2875_v2, %v2873_v1  ;;  %v2828_v6 = vadd.f32 %v2827_v3, %v2652_v58 }
 0x68c   :  { %v2842_v8 = vadd.f32 %v2841_v7, %v2828_v6  ;;  %3032 = vmatmul.bf16.vlgmr.msra.gmra.mxu3 %v2877_v5 }
 0x68e   :  { %v2874_v10 = vmax.f32 %v2842_v8, 0.0 }
 0x690   :  { %v2876_v11 = vpack.c.bf16 %v2874_v10, %v2872_v9 }
 0x692   :  { %3018 = vmatmul.bf16.vlgmr.msra.gmra.mxu2 %v2876_v11 }
 0x70f   :  { %v3033_v13 = vpop.f32.mrf.mxu3 }
 0x715   :  { %v3019_v14 = vpop.f32.mrf.mxu2 }
 0x716   :  { %v3020_v15 = vadd.f32 %v4825_v12, %v3019_v14 }
 0x717   :  { %v3035_v19 = vpop.f32.mrf.mxu3 }
 0x718   :  { %v3034_v16 = vadd.f32 %v3033_v13, %v3020_v15 }
 0x71a   :  { %3038 = vst [vmem:[%s5064_s7] sm:$0xff] %v3034_v16 }
 0x71d   :  { %v3021_v17 = vpop.f32.mrf.mxu2 }
 0x71e   :  { %v3022_v18 = vadd.f32 %v4825_v12, %v3021_v17 }
 0x720   :  { %v3036_v20 = vadd.f32 %v3035_v19, %v3022_v18 }
 0x722   :  { %3039 = vst [vmem:[%s5064_s7 + $0x8] sm:$0xff] %v3036_v20 }
 0x723   :  { %3044 = vsyncpa [#allocation3], 1 }
 0x724   :  { %3045 = vsyncpa [#allocation5], 1 }
 0x725   :  { %3046 = vsyncpa [#allocation8], 1 }
 0x726   :  { %3047 = vsyncpa [#allocation11], 1 }

</bundles_post_ra>
